<compile_context>
chip_gen: v7x
topology: tpu7x:2x2x1
jax: 0.10.0
libtpu: 0.0.40
codegen_flags: <defaults>
</compile_context>

<pallas_src>
import math
from functools import partial

import jax
import jax.numpy as jnp
from jax.experimental import pallas as pl
from jax.experimental.pallas import tpu as pltpu


# ---------------------------------------------------------------------------
# Kernel 1: QKV projection  qkv = x @ W + b, split into q/k/v (lane aligned)
# ---------------------------------------------------------------------------
def _make_qkv_proj_kernel(C):
    def kernel(x_ref, w_ref, b_ref, q_ref, k_ref, v_ref):
        # x_ref: (1, TM, C) bf16 ; w_ref: (C, 3C) bf16 ; b_ref: (1, 3C) f32
        x = x_ref[0]
        qkv = jnp.dot(x, w_ref[...], preferred_element_type=jnp.float32)
        qkv = qkv + b_ref[0]                       # bias add in f32
        q_ref[0] = qkv[:, :C].astype(q_ref.dtype)          # lane offsets are
        k_ref[0] = qkv[:, C:2 * C].astype(k_ref.dtype)     # multiples of 128
        v_ref[0] = qkv[:, 2 * C:].astype(v_ref.dtype)
    return kernel


def _qkv_projection(x_bf16, w_bf16, b_f32, *, tile_m):
    B, T, C = x_bf16.shape
    out = jax.ShapeDtypeStruct((B, T, C), jnp.bfloat16)
    xqkv_spec = pl.BlockSpec((1, tile_m, C), lambda b, i: (b, i, 0))
    return pl.pallas_call(
        _make_qkv_proj_kernel(C),
        out_shape=(out, out, out),
        grid=(B, T // tile_m),
        in_specs=[
            xqkv_spec,
            pl.BlockSpec((C, 3 * C), lambda b, i: (0, 0)),   # weight resident
            pl.BlockSpec((1, 3 * C), lambda b, i: (0, 0)),
        ],
        out_specs=(xqkv_spec, xqkv_spec, xqkv_spec),
        compiler_params=pltpu.CompilerParams(
            dimension_semantics=("parallel", "parallel")),
    )(x_bf16, w_bf16, b_f32)


# ---------------------------------------------------------------------------
# Kernel 2: causal flash attention over head-contiguous (H, TS, D) blocks
# ---------------------------------------------------------------------------
def _make_flash_attn_kernel(n_head, TS, D):
    scale = 1.0 / math.sqrt(D)

    def kernel(q_ref, k_ref, v_ref, o_ref, m_sc, l_sc, acc_sc):
        qi = pl.program_id(1)
        ki = pl.program_id(2)

        @pl.when(ki == 0)
        def _init():
            m_sc[...] = jnp.full(m_sc.shape, -jnp.inf, jnp.float32)
            l_sc[...] = jnp.zeros(l_sc.shape, jnp.float32)
            acc_sc[...] = jnp.zeros(acc_sc.shape, jnp.float32)

        def attend(apply_mask):
            q = q_ref[0]                       # (H, TS, D) bf16
            k = k_ref[0]                       # (H, TS, D) bf16
            v = v_ref[0]                       # (H, TS, D) bf16
            # batched-over-heads QK^T on the MXU, f32 accumulation
            s = jnp.einsum("hqd,hkd->hqk", q, k,
                           preferred_element_type=jnp.float32) * scale
            if apply_mask:
                row = jax.lax.broadcasted_iota(jnp.int32, (TS, TS), 0)
                col = jax.lax.broadcasted_iota(jnp.int32, (TS, TS), 1)
                s = jnp.where((row >= col)[None, :, :], s, -jnp.inf)
            m_prev = m_sc[...]                                  # (H, TS, 1)
            m_new = jnp.maximum(m_prev, jnp.max(s, axis=-1, keepdims=True))
            alpha = jnp.exp(m_prev - m_new)
            p = jnp.exp(s - m_new)                              # (H, TS, TS)
            l_sc[...] = alpha * l_sc[...] + jnp.sum(p, axis=-1, keepdims=True)
            acc_sc[...] = alpha * acc_sc[...] + jnp.einsum(
                "hqk,hkd->hqd", p.astype(v.dtype), v,
                preferred_element_type=jnp.float32)
            m_sc[...] = m_new

        # causal block structure (query tile == kv tile == TS):
        #   ki <  qi : fully visible  -> no mask, no compare/select
        #   ki == qi : diagonal block -> triangular mask
        #   ki >  qi : fully masked   -> skip compute entirely
        @pl.when(ki < qi)
        def _below_diag():
            attend(False)

        @pl.when(ki == qi)
        def _diag():
            attend(True)

        @pl.when(ki == pl.num_programs(2) - 1)
        def _finalize():
            inv_l = pl.reciprocal(l_sc[...], approx=True)       # EUP, ~free
            y = acc_sc[...] * inv_l                             # (H, TS, D) f32
            # merge heads once per query tile -> lane-dense (TS, C) store
            o_ref[0] = jnp.concatenate(
                [y[h] for h in range(n_head)], axis=-1).astype(o_ref.dtype)

    return kernel


# ---------------------------------------------------------------------------
# Forward wrapper (matches the PyTorch module's forward, which omits c_proj)
# ---------------------------------------------------------------------------
def causal_self_attention(x, w_attn, b_attn, n_head, *, seq_tile=128):
    """x: (B,T,C); w_attn: (C,3C) = W_pt.T; b_attn: (1,3C)."""
    B, T, C = x.shape
    assert C % n_head == 0
    assert C % 128 == 0, "n_embd must be a multiple of 128 lanes"
    H, D = n_head, C // n_head

    TS = min(seq_tile, T)
    assert T % TS == 0 and TS % 8 == 0

    tile_m = min(T, 256)
    if T % tile_m != 0:
        tile_m = TS
    assert T % tile_m == 0

    # bf16 inputs for the MXU, f32 accumulation / bias / softmax stats.
    xb = x.astype(jnp.bfloat16)
    wb = w_attn.astype(jnp.bfloat16)
    bb = b_attn.astype(jnp.float32)

    q, k, v = _qkv_projection(xb, wb, bb, tile_m=tile_m)

    # (B,T,C) -> (B,H,T,D): one-time XLA layout plumbing so the attention
    # kernel gets head-contiguous blocks (no per-step in-kernel relayouts).
    def to_heads(t):
        return t.reshape(B, T, H, D).transpose(0, 2, 1, 3)

    q, k, v = to_heads(q), to_heads(k), to_heads(v)

    n_tiles = T // TS
    q_map = lambda b, qi, ki: (b, 0, qi, 0)
    # clamp the KV block index so skipped (ki > qi) steps re-use the previous
    # block -> Pallas elides the redundant DMAs above the causal diagonal.
    kv_map = lambda b, qi, ki: (b, 0, jnp.minimum(ki, qi), 0)

    return pl.pallas_call(
        _make_flash_attn_kernel(H, TS, D),
        out_shape=jax.ShapeDtypeStruct((B, T, C), x.dtype),
        grid=(B, n_tiles, n_tiles),
        in_specs=[
            pl.BlockSpec((1, H, TS, D), q_map),
            pl.BlockSpec((1, H, TS, D), kv_map),
            pl.BlockSpec((1, H, TS, D), kv_map),
        ],
        out_specs=pl.BlockSpec((1, TS, C), lambda b, qi, ki: (b, qi, 0)),
        scratch_shapes=[
            pltpu.VMEM((H, TS, 1), jnp.float32),   # running max
            pltpu.VMEM((H, TS, 1), jnp.float32),   # running sum
            pltpu.VMEM((H, TS, D), jnp.float32),   # output accumulator
        ],
        compiler_params=pltpu.CompilerParams(
            dimension_semantics=("parallel", "parallel", "arbitrary")),
    )(q, k, v)


# ---------------------------------------------------------------------------
# Pure-JAX reference mirroring the PyTorch forward (f32 everywhere)
# ---------------------------------------------------------------------------
def _reference(x, w_attn, b_attn, n_head):
    B, T, C = x.shape
    D = C // n_head
    qkv = x @ w_attn + b_attn[0]
    q, k, v = jnp.split(qkv, 3, axis=-1)
    q = q.reshape(B, T, n_head, D).transpose(0, 2, 1, 3)
    k = k.reshape(B, T, n_head, D).transpose(0, 2, 1, 3)
    v = v.reshape(B, T, n_head, D).transpose(0, 2, 1, 3)
    s = jnp.einsum("bhtd,bhsd->bhts", q, k) / math.sqrt(D)
    mask = jnp.tril(jnp.ones((T, T), dtype=bool))
    s = jnp.where(mask, s, -jnp.inf)
    p = jax.nn.softmax(s, axis=-1)
    y = jnp.einsum("bhts,bhsd->bhtd", p, v)
    return y.transpose(0, 2, 1, 3).reshape(B, T, C)


if __name__ == "__main__":
    # Small config consistent with the module: n_embd % n_head == 0,
    # n_embd a multiple of 128 lanes, seq a multiple of the 128 tile.
    B, T, C, n_head = 2, 256, 128, 2

    key = jax.random.PRNGKey(0)
    kx, kw, kb = jax.random.split(key, 3)

    x = jax.random.normal(kx, (B, T, C), dtype=jnp.float32)

    # Deterministic nn.Linear(C, 3C)-style init: W_pt (3C, C), b (3C,)
    bound = 1.0 / math.sqrt(C)
    w_pt = jax.random.uniform(kw, (3 * C, C), jnp.float32, -bound, bound)
    b_pt = jax.random.uniform(kb, (3 * C,), jnp.float32, -bound, bound)
    w_attn = w_pt.T                      # (C, 3C) so kernels do x @ W.T + b
    b_attn = b_pt.reshape(1, 3 * C)

    fwd = jax.jit(partial(causal_self_attention, n_head=n_head))
    y = jax.block_until_ready(fwd(x, w_attn, b_attn))

    y_ref = _reference(x, w_attn, b_attn, n_head)
    assert y.shape == (B, T, C)
    assert not bool(jnp.any(jnp.isnan(y)))
    max_err = float(jnp.max(jnp.abs(y - y_ref)))
    # bf16 MXU inputs vs f32 reference -> relaxed tolerance
    assert bool(jnp.allclose(y, y_ref, atol=5e-2, rtol=5e-2)), \
        f"mismatch vs reference (max abs err {max_err})"

    print("KERNEL_OK")
</pallas_src>

<mosaic_0001>
module attributes {stable_mosaic.version = 11 : i64} {
  func.func @kernel(%arg0: i32, %arg1: i32, %arg2: memref<1x256x128xbf16, #tpu.memory_space<vmem>>, %arg3: memref<128x384xbf16, #tpu.memory_space<vmem>>, %arg4: memref<1x384xf32, #tpu.memory_space<vmem>>, %arg5: memref<1x256x128xbf16, #tpu.memory_space<vmem>>, %arg6: memref<1x256x128xbf16, #tpu.memory_space<vmem>>, %arg7: memref<1x256x128xbf16, #tpu.memory_space<vmem>>) attributes {dimension_semantics = [#tpu.dimension_semantics<parallel>, #tpu.dimension_semantics<parallel>], iteration_bounds = array<i64: 2, 1>, scalar_prefetch = 0 : i64, scratch_operands = 0 : i64, tpu.core_type = #tpu.core_type<tc>, window_params = [{transform_indices = @transform_0, window_bounds = array<i64: 1, 256, 128>}, {pipeline_mode = #tpu.pipeline_mode<synchronous>, transform_indices = @transform_1, window_bounds = array<i64: 128, 384>}, {pipeline_mode = #tpu.pipeline_mode<synchronous>, transform_indices = @transform_2, window_bounds = array<i64: 1, 384>}, {transform_indices = @transform_3, window_bounds = array<i64: 1, 256, 128>}, {transform_indices = @transform_4, window_bounds = array<i64: 1, 256, 128>}, {transform_indices = @transform_5, window_bounds = array<i64: 1, 256, 128>}]} {
    %c0 = arith.constant 0 : index
    %c0_0 = arith.constant 0 : index
    %c0_1 = arith.constant 0 : index
    %0 = vector.load %arg2[%c0, %c0_0, %c0_1] : memref<1x256x128xbf16, #tpu.memory_space<vmem>>, vector<1x256x128xbf16>
    %1 = vector.shape_cast %0 : vector<1x256x128xbf16> to vector<256x128xbf16>
    %c0_2 = arith.constant 0 : index
    %c0_3 = arith.constant 0 : index
    %2 = vector.load %arg3[%c0_2, %c0_3] : memref<128x384xbf16, #tpu.memory_space<vmem>>, vector<128x384xbf16>
    %cst = arith.constant dense<0.000000e+00> : vector<256x384xf32>
    %3 = tpu.matmul %1, %2, %cst {dimension_numbers = #tpu.dot_dimension_numbers<[1], [0], [0], [1], [0, 0, 1, 1], [], []>} : vector<256x128xbf16>, vector<128x384xbf16>, vector<256x384xf32> -> vector<256x384xf32>
    %c0_4 = arith.constant 0 : index
    %c0_5 = arith.constant 0 : index
    %4 = vector.load %arg4[%c0_4, %c0_5] : memref<1x384xf32, #tpu.memory_space<vmem>>, vector<1x384xf32>
    %5 = vector.shape_cast %4 : vector<1x384xf32> to vector<384xf32>
    %6 = vector.shape_cast %5 : vector<384xf32> to vector<1x384xf32>
    %7 = vector.broadcast %6 : vector<1x384xf32> to vector<256x384xf32>
    %8 = arith.addf %3, %7 : vector<256x384xf32>
    %9 = vector.extract_strided_slice %8 {offsets = [0, 0], sizes = [256, 128], strides = [1, 1]} : vector<256x384xf32> to vector<256x128xf32>
    %10 = arith.truncf %9 : vector<256x128xf32> to vector<256x128xbf16>
    %c0_6 = arith.constant 0 : index
    %c0_7 = arith.constant 0 : index
    %c0_8 = arith.constant 0 : index
    %11 = vector.load %arg5[%c0_6, %c0_7, %c0_8] : memref<1x256x128xbf16, #tpu.memory_space<vmem>>, vector<1x256x128xbf16>
    %12 = vector.shape_cast %11 : vector<1x256x128xbf16> to vector<256x128xbf16>
    %13 = vector.shape_cast %10 : vector<256x128xbf16> to vector<1x256x128xbf16>
    tpu.vector_store %arg5[%c0_6, %c0_7, %c0_8], %13 {strides = array<i32>} : memref<1x256x128xbf16, #tpu.memory_space<vmem>>, vector<1x256x128xbf16>,
    %14 = vector.extract_strided_slice %8 {offsets = [0, 128], sizes = [256, 128], strides = [1, 1]} : vector<256x384xf32> to vector<256x128xf32>
    %15 = arith.truncf %14 : vector<256x128xf32> to vector<256x128xbf16>
    %c0_9 = arith.constant 0 : index
    %c0_10 = arith.constant 0 : index
    %c0_11 = arith.constant 0 : index
    %16 = vector.load %arg6[%c0_9, %c0_10, %c0_11] : memref<1x256x128xbf16, #tpu.memory_space<vmem>>, vector<1x256x128xbf16>
    %17 = vector.shape_cast %16 : vector<1x256x128xbf16> to vector<256x128xbf16>
    %18 = vector.shape_cast %15 : vector<256x128xbf16> to vector<1x256x128xbf16>
    tpu.vector_store %arg6[%c0_9, %c0_10, %c0_11], %18 {strides = array<i32>} : memref<1x256x128xbf16, #tpu.memory_space<vmem>>, vector<1x256x128xbf16>,
    %19 = vector.extract_strided_slice %8 {offsets = [0, 256], sizes = [256, 128], strides = [1, 1]} : vector<256x384xf32> to vector<256x128xf32>
    %20 = arith.truncf %19 : vector<256x128xf32> to vector<256x128xbf16>
    %c0_12 = arith.constant 0 : index
    %c0_13 = arith.constant 0 : index
    %c0_14 = arith.constant 0 : index
    %21 = vector.load %arg7[%c0_12, %c0_13, %c0_14] : memref<1x256x128xbf16, #tpu.memory_space<vmem>>, vector<1x256x128xbf16>
    %22 = vector.shape_cast %21 : vector<1x256x128xbf16> to vector<256x128xbf16>
    %23 = vector.shape_cast %20 : vector<256x128xbf16> to vector<1x256x128xbf16>
    tpu.vector_store %arg7[%c0_12, %c0_13, %c0_14], %23 {strides = array<i32>} : memref<1x256x128xbf16, #tpu.memory_space<vmem>>, vector<1x256x128xbf16>,
    return
  }
  func.func @transform_0(%arg0: i32, %arg1: i32) -> (i32, i32, i32) {
    %c0_i32 = arith.constant 0 : i32
    %c0_i32_0 = arith.constant 0 : i32
    return %arg0, %arg1, %c0_i32 : i32, i32, i32
  }
  func.func @transform_1(%arg0: i32, %arg1: i32) -> (i32, i32) {
    %c0_i32 = arith.constant 0 : i32
    %c0_i32_0 = arith.constant 0 : i32
    %c0_i32_1 = arith.constant 0 : i32
    return %c0_i32, %c0_i32_0 : i32, i32
  }
  func.func @transform_2(%arg0: i32, %arg1: i32) -> (i32, i32) {
    %c0_i32 = arith.constant 0 : i32
    %c0_i32_0 = arith.constant 0 : i32
    %c0_i32_1 = arith.constant 0 : i32
    return %c0_i32, %c0_i32_0 : i32, i32
  }
  func.func @transform_3(%arg0: i32, %arg1: i32) -> (i32, i32, i32) {
    %c0_i32 = arith.constant 0 : i32
    %c0_i32_0 = arith.constant 0 : i32
    return %arg0, %arg1, %c0_i32 : i32, i32, i32
  }
  func.func @transform_4(%arg0: i32, %arg1: i32) -> (i32, i32, i32) {
    %c0_i32 = arith.constant 0 : i32
    %c0_i32_0 = arith.constant 0 : i32
    return %arg0, %arg1, %c0_i32 : i32, i32, i32
  }
  func.func @transform_5(%arg0: i32, %arg1: i32) -> (i32, i32, i32) {
    %c0_i32 = arith.constant 0 : i32
    %c0_i32_0 = arith.constant 0 : i32
    return %arg0, %arg1, %c0_i32 : i32, i32, i32
  }
}

module attributes {stable_mosaic.version = 11 : i64} {
  func.func @kernel(%arg0: i32, %arg1: i32, %arg2: i32, %arg3: memref<1x2x128x64xbf16, #tpu.memory_space<vmem>>, %arg4: memref<1x2x128x64xbf16, #tpu.memory_space<vmem>>, %arg5: memref<1x2x128x64xbf16, #tpu.memory_space<vmem>>, %arg6: memref<1x128x128xf32, #tpu.memory_space<vmem>>, %arg7: memref<2x128x1xf32, #tpu.memory_space<vmem>>, %arg8: memref<2x128x1xf32, #tpu.memory_space<vmem>>, %arg9: memref<2x128x64xf32, #tpu.memory_space<vmem>>) attributes {dimension_semantics = [#tpu.dimension_semantics<parallel>, #tpu.dimension_semantics<parallel>, #tpu.dimension_semantics<arbitrary>], iteration_bounds = array<i64: 2, 2, 2>, scalar_prefetch = 0 : i64, scratch_operands = 3 : i64, tpu.core_type = #tpu.core_type<tc>, window_params = [{transform_indices = @transform_0, window_bounds = array<i64: 1, 2, 128, 64>}, {transform_indices = @transform_1, window_bounds = array<i64: 1, 2, 128, 64>}, {transform_indices = @transform_2, window_bounds = array<i64: 1, 2, 128, 64>}, {transform_indices = @transform_3, window_bounds = array<i64: 1, 128, 128>}]} {
    %c0_i32 = arith.constant 0 : i32
    %0 = arith.cmpi eq, %arg2, %c0_i32 : i32
    %1 = arith.extui %0 : i1 to i32
    %c0_i32_0 = arith.constant 0 : i32
    %2 = arith.cmpi ne, %1, %c0_i32_0 : i32
    scf.if %2 {
      %cst = arith.constant 0xFF800000 : f32
      %12 = vector.broadcast %cst : f32 to vector<2x128x1xf32>
      %c0 = arith.constant 0 : index
      %c0_4 = arith.constant 0 : index
      %c0_5 = arith.constant 0 : index
      %13 = vector.load %arg7[%c0, %c0_4, %c0_5] : memref<2x128x1xf32, #tpu.memory_space<vmem>>, vector<2x128x1xf32>
      tpu.vector_store %arg7[%c0, %c0_4, %c0_5], %12 {strides = array<i32>} : memref<2x128x1xf32, #tpu.memory_space<vmem>>, vector<2x128x1xf32>,
      %cst_6 = arith.constant 0.000000e+00 : f32
      %14 = vector.broadcast %cst_6 : f32 to vector<2x128x1xf32>
      %c0_7 = arith.constant 0 : index
      %c0_8 = arith.constant 0 : index
      %c0_9 = arith.constant 0 : index
      %15 = vector.load %arg8[%c0_7, %c0_8, %c0_9] : memref<2x128x1xf32, #tpu.memory_space<vmem>>, vector<2x128x1xf32>
      tpu.vector_store %arg8[%c0_7, %c0_8, %c0_9], %14 {strides = array<i32>} : memref<2x128x1xf32, #tpu.memory_space<vmem>>, vector<2x128x1xf32>,
      %cst_10 = arith.constant 0.000000e+00 : f32
      %16 = vector.broadcast %cst_10 : f32 to vector<2x128x64xf32>
      %c0_11 = arith.constant 0 : index
      %c0_12 = arith.constant 0 : index
      %c0_13 = arith.constant 0 : index
      %17 = vector.load %arg9[%c0_11, %c0_12, %c0_13] : memref<2x128x64xf32, #tpu.memory_space<vmem>>, vector<2x128x64xf32>
      tpu.vector_store %arg9[%c0_11, %c0_12, %c0_13], %16 {strides = array<i32>} : memref<2x128x64xf32, #tpu.memory_space<vmem>>, vector<2x128x64xf32>,
    } else {
    }
    %3 = arith.cmpi slt, %arg2, %arg1 : i32
    %4 = arith.extui %3 : i1 to i32
    %c0_i32_1 = arith.constant 0 : i32
    %5 = arith.cmpi ne, %4, %c0_i32_1 : i32
    scf.if %5 {
      %c0 = arith.constant 0 : index
      %c0_4 = arith.constant 0 : index
      %c0_5 = arith.constant 0 : index
      %c0_6 = arith.constant 0 : index
      %12 = vector.load %arg3[%c0, %c0_4, %c0_5, %c0_6] : memref<1x2x128x64xbf16, #tpu.memory_space<vmem>>, vector<1x2x128x64xbf16>
      %13 = vector.shape_cast %12 : vector<1x2x128x64xbf16> to vector<2x128x64xbf16>
      %c0_7 = arith.constant 0 : index
      %c0_8 = arith.constant 0 : index
      %c0_9 = arith.constant 0 : index
      %c0_10 = arith.constant 0 : index
      %14 = vector.load %arg4[%c0_7, %c0_8, %c0_9, %c0_10] : memref<1x2x128x64xbf16, #tpu.memory_space<vmem>>, vector<1x2x128x64xbf16>
      %15 = vector.shape_cast %14 : vector<1x2x128x64xbf16> to vector<2x128x64xbf16>
      %c0_11 = arith.constant 0 : index
      %c0_12 = arith.constant 0 : index
      %c0_13 = arith.constant 0 : index
      %c0_14 = arith.constant 0 : index
      %16 = vector.load %arg5[%c0_11, %c0_12, %c0_13, %c0_14] : memref<1x2x128x64xbf16, #tpu.memory_space<vmem>>, vector<1x2x128x64xbf16>
      %17 = vector.shape_cast %16 : vector<1x2x128x64xbf16> to vector<2x128x64xbf16>
      "tpu.trace_start"() <{level = 10 : i32, message = "hqd,hkd->hqk"}> : () -> ()
      %cst = arith.constant dense<0.000000e+00> : vector<2x128x128xf32>
      %18 = tpu.matmul %13, %15, %cst {dimension_numbers = #tpu.dot_dimension_numbers<[2], [2], [1], [1], [0, 0, 0, 1, 1, 1], [0], [0]>} : vector<2x128x64xbf16>, vector<2x128x64xbf16>, vector<2x128x128xf32> -> vector<2x128x128xf32>
      "tpu.trace_stop"() : () -> ()
      %cst_15 = arith.constant 1.250000e-01 : f32
      %19 = vector.broadcast %cst_15 : f32 to vector<2x128x128xf32>
      %20 = arith.mulf %18, %19 : vector<2x128x128xf32>
      %c0_16 = arith.constant 0 : index
      %c0_17 = arith.constant 0 : index
      %c0_18 = arith.constant 0 : index
      %21 = vector.load %arg7[%c0_16, %c0_17, %c0_18] : memref<2x128x1xf32, #tpu.memory_space<vmem>>, vector<2x128x1xf32>
      %cst_19 = arith.constant dense<0xFF800000> : vector<2x128xf32>
      %22 = vector.multi_reduction <maximumf>, %20, %cst_19 [2] : vector<2x128x128xf32> to vector<2x128xf32>
      %23 = vector.shape_cast %22 : vector<2x128xf32> to vector<2x128x1xf32>
      %24 = arith.maximumf %21, %23 : vector<2x128x1xf32>
      %25 = arith.subf %21, %24 : vector<2x128x1xf32>
      %26 = math.exp %25 : vector<2x128x1xf32>
      %27 = vector.broadcast %24 : vector<2x128x1xf32> to vector<2x128x128xf32>
      %28 = arith.subf %20, %27 : vector<2x128x128xf32>
      %29 = math.exp %28 : vector<2x128x128xf32>
      %c0_20 = arith.constant 0 : index
      %c0_21 = arith.constant 0 : index
      %c0_22 = arith.constant 0 : index
      %30 = vector.load %arg8[%c0_20, %c0_21, %c0_22] : memref<2x128x1xf32, #tpu.memory_space<vmem>>, vector<2x128x1xf32>
      %31 = arith.mulf %26, %30 : vector<2x128x1xf32>
      %cst_23 = arith.constant dense<0.000000e+00> : vector<2x128xf32>
      %32 = vector.multi_reduction <add>, %29, %cst_23 [2] : vector<2x128x128xf32> to vector<2x128xf32>
      %33 = vector.shape_cast %32 : vector<2x128xf32> to vector<2x128x1xf32>
      %34 = arith.addf %31, %33 : vector<2x128x1xf32>
      %c0_24 = arith.constant 0 : index
      %c0_25 = arith.constant 0 : index
      %c0_26 = arith.constant 0 : index
      %35 = vector.load %arg8[%c0_24, %c0_25, %c0_26] : memref<2x128x1xf32, #tpu.memory_space<vmem>>, vector<2x128x1xf32>
      tpu.vector_store %arg8[%c0_24, %c0_25, %c0_26], %34 {strides = array<i32>} : memref<2x128x1xf32, #tpu.memory_space<vmem>>, vector<2x128x1xf32>,
      %c0_27 = arith.constant 0 : index
      %c0_28 = arith.constant 0 : index
      %c0_29 = arith.constant 0 : index
      %36 = vector.load %arg9[%c0_27, %c0_28, %c0_29] : memref<2x128x64xf32, #tpu.memory_space<vmem>>, vector<2x128x64xf32>
      %37 = vector.broadcast %26 : vector<2x128x1xf32> to vector<2x128x64xf32>
      %38 = arith.mulf %37, %36 : vector<2x128x64xf32>
      %39 = arith.truncf %29 : vector<2x128x128xf32> to vector<2x128x128xbf16>
      "tpu.trace_start"() <{level = 10 : i32, message = "hqk,hkd->hqd"}> : () -> ()
      %cst_30 = arith.constant dense<0.000000e+00> : vector<2x128x64xf32>
      %40 = tpu.matmul %39, %17, %cst_30 {dimension_numbers = #tpu.dot_dimension_numbers<[2], [1], [1], [2], [0, 0, 0, 1, 1, 2], [0], [0]>} : vector<2x128x128xbf16>, vector<2x128x64xbf16>, vector<2x128x64xf32> -> vector<2x128x64xf32>
      "tpu.trace_stop"() : () -> ()
      %41 = arith.addf %38, %40 : vector<2x128x64xf32>
      %c0_31 = arith.constant 0 : index
      %c0_32 = arith.constant 0 : index
      %c0_33 = arith.constant 0 : index
      %42 = vector.load %arg9[%c0_31, %c0_32, %c0_33] : memref<2x128x64xf32, #tpu.memory_space<vmem>>, vector<2x128x64xf32>
      tpu.vector_store %arg9[%c0_31, %c0_32, %c0_33], %41 {strides = array<i32>} : memref<2x128x64xf32, #tpu.memory_space<vmem>>, vector<2x128x64xf32>,
      %c0_34 = arith.constant 0 : index
      %c0_35 = arith.constant 0 : index
      %c0_36 = arith.constant 0 : index
      %43 = vector.load %arg7[%c0_34, %c0_35, %c0_36] : memref<2x128x1xf32, #tpu.memory_space<vmem>>, vector<2x128x1xf32>
      tpu.vector_store %arg7[%c0_34, %c0_35, %c0_36], %24 {strides = array<i32>} : memref<2x128x1xf32, #tpu.memory_space<vmem>>, vector<2x128x1xf32>,
    } else {
    }
    %6 = arith.cmpi eq, %arg2, %arg1 : i32
    %7 = arith.extui %6 : i1 to i32
    %c0_i32_2 = arith.constant 0 : i32
    %8 = arith.cmpi ne, %7, %c0_i32_2 : i32
    scf.if %8 {
      %c0 = arith.constant 0 : index
      %c0_4 = arith.constant 0 : index
      %c0_5 = arith.constant 0 : index
      %c0_6 = arith.constant 0 : index
      %12 = vector.load %arg3[%c0, %c0_4, %c0_5, %c0_6] : memref<1x2x128x64xbf16, #tpu.memory_space<vmem>>, vector<1x2x128x64xbf16>
      %13 = vector.shape_cast %12 : vector<1x2x128x64xbf16> to vector<2x128x64xbf16>
      %c0_7 = arith.constant 0 : index
      %c0_8 = arith.constant 0 : index
      %c0_9 = arith.constant 0 : index
      %c0_10 = arith.constant 0 : index
      %14 = vector.load %arg4[%c0_7, %c0_8, %c0_9, %c0_10] : memref<1x2x128x64xbf16, #tpu.memory_space<vmem>>, vector<1x2x128x64xbf16>
      %15 = vector.shape_cast %14 : vector<1x2x128x64xbf16> to vector<2x128x64xbf16>
      %c0_11 = arith.constant 0 : index
      %c0_12 = arith.constant 0 : index
      %c0_13 = arith.constant 0 : index
      %c0_14 = arith.constant 0 : index
      %16 = vector.load %arg5[%c0_11, %c0_12, %c0_13, %c0_14] : memref<1x2x128x64xbf16, #tpu.memory_space<vmem>>, vector<1x2x128x64xbf16>
      %17 = vector.shape_cast %16 : vector<1x2x128x64xbf16> to vector<2x128x64xbf16>
      "tpu.trace_start"() <{level = 10 : i32, message = "hqd,hkd->hqk"}> : () -> ()
      %cst = arith.constant dense<0.000000e+00> : vector<2x128x128xf32>
      %18 = tpu.matmul %13, %15, %cst {dimension_numbers = #tpu.dot_dimension_numbers<[2], [2], [1], [1], [0, 0, 0, 1, 1, 1], [0], [0]>} : vector<2x128x64xbf16>, vector<2x128x64xbf16>, vector<2x128x128xf32> -> vector<2x128x128xf32>
      "tpu.trace_stop"() : () -> ()
      %cst_15 = arith.constant 1.250000e-01 : f32
      %19 = vector.broadcast %cst_15 : f32 to vector<2x128x128xf32>
      %20 = arith.mulf %18, %19 : vector<2x128x128xf32>
      %21 = tpu.iota {dimensions = array<i32: 0>} : vector<128x128xi32>
      %22 = tpu.iota {dimensions = array<i32: 1>} : vector<128x128xi32>
      %23 = arith.cmpi sge, %21, %22 : vector<128x128xi32>
      %24 = vector.shape_cast %23 : vector<128x128xi1> to vector<1x128x128xi1>
      %cst_16 = arith.constant 0xFF800000 : f32
      %25 = vector.shape_cast %24 : vector<1x128x128xi1> to vector<1x128x128xi1>
      %26 = vector.broadcast %25 : vector<1x128x128xi1> to vector<2x128x128xi1>
      %27 = vector.broadcast %cst_16 : f32 to vector<2x128x128xf32>
      %28 = arith.select %26, %20, %27 : vector<2x128x128xi1>, vector<2x128x128xf32>
      %c0_17 = arith.constant 0 : index
      %c0_18 = arith.constant 0 : index
      %c0_19 = arith.constant 0 : index
      %29 = vector.load %arg7[%c0_17, %c0_18, %c0_19] : memref<2x128x1xf32, #tpu.memory_space<vmem>>, vector<2x128x1xf32>
      %cst_20 = arith.constant dense<0xFF800000> : vector<2x128xf32>
      %30 = vector.multi_reduction <maximumf>, %28, %cst_20 [2] : vector<2x128x128xf32> to vector<2x128xf32>
      %31 = vector.shape_cast %30 : vector<2x128xf32> to vector<2x128x1xf32>
      %32 = arith.maximumf %29, %31 : vector<2x128x1xf32>
      %33 = arith.subf %29, %32 : vector<2x128x1xf32>
      %34 = math.exp %33 : vector<2x128x1xf32>
      %35 = vector.broadcast %32 : vector<2x128x1xf32> to vector<2x128x128xf32>
      %36 = arith.subf %28, %35 : vector<2x128x128xf32>
      %37 = math.exp %36 : vector<2x128x128xf32>
      %c0_21 = arith.constant 0 : index
      %c0_22 = arith.constant 0 : index
      %c0_23 = arith.constant 0 : index
      %38 = vector.load %arg8[%c0_21, %c0_22, %c0_23] : memref<2x128x1xf32, #tpu.memory_space<vmem>>, vector<2x128x1xf32>
      %39 = arith.mulf %34, %38 : vector<2x128x1xf32>
      %cst_24 = arith.constant dense<0.000000e+00> : vector<2x128xf32>
      %40 = vector.multi_reduction <add>, %37, %cst_24 [2] : vector<2x128x128xf32> to vector<2x128xf32>
      %41 = vector.shape_cast %40 : vector<2x128xf32> to vector<2x128x1xf32>
      %42 = arith.addf %39, %41 : vector<2x128x1xf32>
      %c0_25 = arith.constant 0 : index
      %c0_26 = arith.constant 0 : index
      %c0_27 = arith.constant 0 : index
      %43 = vector.load %arg8[%c0_25, %c0_26, %c0_27] : memref<2x128x1xf32, #tpu.memory_space<vmem>>, vector<2x128x1xf32>
      tpu.vector_store %arg8[%c0_25, %c0_26, %c0_27], %42 {strides = array<i32>} : memref<2x128x1xf32, #tpu.memory_space<vmem>>, vector<2x128x1xf32>,
      %c0_28 = arith.constant 0 : index
      %c0_29 = arith.constant 0 : index
      %c0_30 = arith.constant 0 : index
      %44 = vector.load %arg9[%c0_28, %c0_29, %c0_30] : memref<2x128x64xf32, #tpu.memory_space<vmem>>, vector<2x128x64xf32>
      %45 = vector.broadcast %34 : vector<2x128x1xf32> to vector<2x128x64xf32>
      %46 = arith.mulf %45, %44 : vector<2x128x64xf32>
      %47 = arith.truncf %37 : vector<2x128x128xf32> to vector<2x128x128xbf16>
      "tpu.trace_start"() <{level = 10 : i32, message = "hqk,hkd->hqd"}> : () -> ()
      %cst_31 = arith.constant dense<0.000000e+00> : vector<2x128x64xf32>
      %48 = tpu.matmul %47, %17, %cst_31 {dimension_numbers = #tpu.dot_dimension_numbers<[2], [1], [1], [2], [0, 0, 0, 1, 1, 2], [0], [0]>} : vector<2x128x128xbf16>, vector<2x128x64xbf16>, vector<2x128x64xf32> -> vector<2x128x64xf32>
      "tpu.trace_stop"() : () -> ()
      %49 = arith.addf %46, %48 : vector<2x128x64xf32>
      %c0_32 = arith.constant 0 : index
      %c0_33 = arith.constant 0 : index
      %c0_34 = arith.constant 0 : index
      %50 = vector.load %arg9[%c0_32, %c0_33, %c0_34] : memref<2x128x64xf32, #tpu.memory_space<vmem>>, vector<2x128x64xf32>
      tpu.vector_store %arg9[%c0_32, %c0_33, %c0_34], %49 {strides = array<i32>} : memref<2x128x64xf32, #tpu.memory_space<vmem>>, vector<2x128x64xf32>,
      %c0_35 = arith.constant 0 : index
      %c0_36 = arith.constant 0 : index
      %c0_37 = arith.constant 0 : index
      %51 = vector.load %arg7[%c0_35, %c0_36, %c0_37] : memref<2x128x1xf32, #tpu.memory_space<vmem>>, vector<2x128x1xf32>
      tpu.vector_store %arg7[%c0_35, %c0_36, %c0_37], %32 {strides = array<i32>} : memref<2x128x1xf32, #tpu.memory_space<vmem>>, vector<2x128x1xf32>,
    } else {
    }
    %c1_i32 = arith.constant 1 : i32
    %9 = arith.cmpi eq, %arg2, %c1_i32 : i32
    %10 = arith.extui %9 : i1 to i32
    %c0_i32_3 = arith.constant 0 : i32
    %11 = arith.cmpi ne, %10, %c0_i32_3 : i32
    scf.if %11 {
      %c0 = arith.constant 0 : index
      %c0_4 = arith.constant 0 : index
      %c0_5 = arith.constant 0 : index
      %12 = vector.load %arg8[%c0, %c0_4, %c0_5] : memref<2x128x1xf32, #tpu.memory_space<vmem>>, vector<2x128x1xf32>
      %13 = tpu.reciprocal %12 {approx = true} : vector<2x128x1xf32> -> vector<2x128x1xf32>
      %c0_6 = arith.constant 0 : index
      %c0_7 = arith.constant 0 : index
      %c0_8 = arith.constant 0 : index
      %14 = vector.load %arg9[%c0_6, %c0_7, %c0_8] : memref<2x128x64xf32, #tpu.memory_space<vmem>>, vector<2x128x64xf32>
      %15 = vector.broadcast %13 : vector<2x128x1xf32> to vector<2x128x64xf32>
      %16 = arith.mulf %14, %15 : vector<2x128x64xf32>
      %17 = vector.extract_strided_slice %16 {offsets = [0, 0, 0], sizes = [1, 128, 64], strides = [1, 1, 1]} : vector<2x128x64xf32> to vector<1x128x64xf32>
      %18 = vector.shape_cast %17 : vector<1x128x64xf32> to vector<128x64xf32>
      %19 = vector.extract_strided_slice %16 {offsets = [1, 0, 0], sizes = [1, 128, 64], strides = [1, 1, 1]} : vector<2x128x64xf32> to vector<1x128x64xf32>
      %20 = vector.shape_cast %19 : vector<1x128x64xf32> to vector<128x64xf32>
      %21 = tpu.concatenate %18, %20 in 1 : vector<128x64xf32>, vector<128x64xf32> -> vector<128x128xf32>
      %c0_9 = arith.constant 0 : index
      %c0_10 = arith.constant 0 : index
      %c0_11 = arith.constant 0 : index
      %22 = vector.load %arg6[%c0_9, %c0_10, %c0_11] : memref<1x128x128xf32, #tpu.memory_space<vmem>>, vector<1x128x128xf32>
      %23 = vector.shape_cast %22 : vector<1x128x128xf32> to vector<128x128xf32>
      %24 = vector.shape_cast %21 : vector<128x128xf32> to vector<1x128x128xf32>
      tpu.vector_store %arg6[%c0_9, %c0_10, %c0_11], %24 {strides = array<i32>} : memref<1x128x128xf32, #tpu.memory_space<vmem>>, vector<1x128x128xf32>,
    } else {
    }
    return
  }
  func.func @transform_0(%arg0: i32, %arg1: i32, %arg2: i32) -> (i32, i32, i32, i32) {
    %c0_i32 = arith.constant 0 : i32
    %c0_i32_0 = arith.constant 0 : i32
    %c0_i32_1 = arith.constant 0 : i32
    return %arg0, %c0_i32, %arg1, %c0_i32_0 : i32, i32, i32, i32
  }
  func.func @transform_1(%arg0: i32, %arg1: i32, %arg2: i32) -> (i32, i32, i32, i32) {
    %0 = arith.minsi %arg2, %arg1 : i32
    %c0_i32 = arith.constant 0 : i32
    %c0_i32_0 = arith.constant 0 : i32
    %c0_i32_1 = arith.constant 0 : i32
    return %arg0, %c0_i32, %0, %c0_i32_0 : i32, i32, i32, i32
  }
  func.func @transform_2(%arg0: i32, %arg1: i32, %arg2: i32) -> (i32, i32, i32, i32) {
    %0 = arith.minsi %arg2, %arg1 : i32
    %c0_i32 = arith.constant 0 : i32
    %c0_i32_0 = arith.constant 0 : i32
    %c0_i32_1 = arith.constant 0 : i32
    return %arg0, %c0_i32, %0, %c0_i32_0 : i32, i32, i32, i32
  }
  func.func @transform_3(%arg0: i32, %arg1: i32, %arg2: i32) -> (i32, i32, i32) {
    %c0_i32 = arith.constant 0 : i32
    %c0_i32_0 = arith.constant 0 : i32
    return %arg0, %arg1, %c0_i32 : i32, i32, i32
  }
}

</mosaic_0001>

<bundles_post_ra>
// kernel: causal_self_attention.2
= control target key start
LH: loop header
LB: loop body
LE: loop exit
PB: predicated region body
PF: predicated region fallthrough
CT: control target
= control target key end

     0   :  { %s2390_s18 = smov 0   ;;  %s2392_s19 = smov 0   ;;  %s2718_s0 = inlined_call_operand.vmem [shape: bf16[2,256,128], index: 0, kind: input, shape index: {}]   ;;  %s2719_s1 = inlined_call_operand.vmem [shape: bf16[128,384], index: 1, kind: input, shape index: {}]   ;;  %s2720_s2 = inlined_call_operand.vmem [shape: f32[1,384], index: 2, kind: input, shape index: {}]   ;;  %s2721_s3 = inlined_call_operand.vmem [shape: bf16[2,256,128], index: 3, kind: output, shape index: {0}]   ;;  %s2722_s4 = inlined_call_operand.vmem [shape: bf16[2,256,128], index: 4, kind: output, shape index: {1}]   ;;  %s2723_s5 = inlined_call_operand.vmem [shape: bf16[2,256,128], index: 5, kind: output, shape index: {2}]  }
   0x1   :  { %s2394_s20 = smov 0  }
   0x2 LB: > { %s28_s21 = sadd.s32 1, %s2353_s19  ;;  %p1642_p0 = scmp.ge.s32.totalorder %s2357_s20, 1  ;;  %s2357_s20 = sphi %s2394_s20, %s16_s20   ;;  %s2353_s19 = sphi %s2392_s19, %s2725_s19   ;;  %s2349_s18 = sphi %s2390_s18, %s2724_s18  }
   0x3   : > { %p30_p1 = scmp.ge.s32.totalorder %s28_s21, 2  ;;  %p217_p2 = scmp.lt.s32.totalorder %s2357_s20, 3 }
   0x5   : > { %s2727_s21 = smov (%p30_p1, %s28_s21), 0  ;;  %p218_p3 = pnand %p1642_p0, %p217_p2 }
   0x6   : > { %v2287_v0 = vld [vmem:[%s2719_s1 + $0x4] ss:$12 sps:$4 sm:$0xff] (!%p218_p3)   ;;  %p272_p4 = scmp.lt.s32.totalorder (!%p218_p3), %s2349_s18, 1  ;;  %v2289_v1 = vld [vmem:[%s2719_s1] ss:$12 sps:$4 sm:$0xff] (!%p218_p3)   ;;  %v2359_v2 = vmov (!%p218_p3), 0   ;;  %v378_v41 = vlaneseq (!%p218_p3) }
   0x7   : > { %221 = sbr.rel (%p218_p3) target bundleno = 348 (0x15c), region = 32  ;;  %649 = vmatprep.mubr.bf16.mxu0 (!%p218_p3), %v2359_v2  ;;  %769 = vmatprep.mubr.bf16.mxu1 (!%p218_p3), %v2359_v2  ;;  %v2290_v3 = vld [vmem:[%s2719_s1 + $0x1c] ss:$12 sps:$4 sm:$0xff] (!%p218_p3)   ;;  %v2292_v4 = vld [vmem:[%s2719_s1 + $0x18] ss:$12 sps:$4 sm:$0xff] (!%p218_p3)  }
   0x8   : > { %617 = vmatprep.subr.bf16.mxu0 (!%p218_p3), %v2287_v0  ;;  %2246 = vmatprep.subr.bf16.mxu1 (!%p218_p3), %v2287_v0  ;;  %v2293_v5 = vld [vmem:[%s2719_s1 + $0x34] ss:$12 sps:$4 sm:$0xff] (!%p218_p3)   ;;  %v2295_v6 = vld [vmem:[%s2719_s1 + $0x30] ss:$12 sps:$4 sm:$0xff] (!%p218_p3)   ;;  %v2296_v7 = vld [vmem:[%s2719_s1 + $0x4c] ss:$12 sps:$4 sm:$0xff] (!%p218_p3)  }
   0x9   : > { %618 = vmatpush1.bf16.msra.mxu0 (!%p218_p3), %v2289_v1  ;;  %2254 = vmatpush1.bf16.msra.mxu1 (!%p218_p3), %v2289_v1  ;;  %v2298_v8 = vld [vmem:[%s2719_s1 + $0x48] ss:$12 sps:$4 sm:$0xff] (!%p218_p3)   ;;  %v2299_v9 = vld [vmem:[%s2719_s1 + $0x64] ss:$12 sps:$4 sm:$0xff] (!%p218_p3)   ;;  %v2301_v10 = vld [vmem:[%s2719_s1 + $0x60] ss:$12 sps:$4 sm:$0xff] (!%p218_p3)  }
   0xa   : > { %619 = vmatprep.subr.bf16.mxu0 (!%p218_p3), %v2290_v3  ;;  %2247 = vmatprep.subr.bf16.mxu1 (!%p218_p3), %v2290_v3  ;;  %v2302_v11 = vld [vmem:[%s2719_s1 + $0x7c] ss:$12 sps:$4 sm:$0xff] (!%p218_p3)   ;;  %v2304_v12 = vld [vmem:[%s2719_s1 + $0x78] ss:$12 sps:$4 sm:$0xff] (!%p218_p3)   ;;  %v2305_v13 = vld [vmem:[%s2719_s1 + $0x94] ss:$12 sps:$4 sm:$0xff] (!%p218_p3)  }
   0xb   : > { %v2307_v14 = vld [vmem:[%s2719_s1 + $0x90] ss:$12 sps:$4 sm:$0xff] (!%p218_p3)   ;;  %v2308_v15 = vld [vmem:[%s2719_s1 + $0xac] ss:$12 sps:$4 sm:$0xff] (!%p218_p3)   ;;  %v2310_v16 = vld [vmem:[%s2719_s1 + $0xa8] ss:$12 sps:$4 sm:$0xff] (!%p218_p3)  }
   0xc   : > { %v2313_v17 = vld [vmem:[%s2719_s1 + $0x8] ss:$12 sps:$4 sm:$0xff] (!%p218_p3)   ;;  %v2314_v20 = vld [vmem:[%s2719_s1 + $0x20] ss:$12 sps:$4 sm:$0xff] (!%p218_p3)   ;;  %v2317_v21 = vld [vmem:[%s2719_s1 + $0x38] ss:$12 sps:$4 sm:$0xff] (!%p218_p3)  }
   0xd   : > { %620 = vmatpush1.bf16.msra.mxu0 (!%p218_p3), %v2292_v4  ;;  %2255 = vmatpush1.bf16.msra.mxu1 (!%p218_p3), %v2292_v4  ;;  %v2318_v24 = vld [vmem:[%s2719_s1 + $0x50] ss:$12 sps:$4 sm:$0xff] (!%p218_p3)   ;;  %v2321_v25 = vld [vmem:[%s2719_s1 + $0x68] ss:$12 sps:$4 sm:$0xff] (!%p218_p3)   ;;  %v2322_v28 = vld [vmem:[%s2719_s1 + $0x80] ss:$12 sps:$4 sm:$0xff] (!%p218_p3)  }
   0xe   : > { %s2729_s18 = smov (!%p272_p4, %s2349_s18), 1  ;;  %621 = vmatprep.subr.bf16.mxu0 %v2293_v5  ;;  %2248 = vmatprep.subr.bf16.mxu1 %v2293_v5  ;;  %v2325_v29 = vld [vmem:[%s2719_s1 + $0x98] ss:$12 sps:$4 sm:$0xff]   ;;  %v2326_v32 = vld [vmem:[%s2719_s1 + $0xb0] ss:$12 sps:$4 sm:$0xff]   ;;  %v2528_v42 = vshrl.u32 %v378_v41, 7 }
   0xf   : > { %s2425_s7 = sshll.u32 %s2729_s18, 7  ;;  %v2534_v44 = vld [vmem:[%s2720_s2] sm:$0x7] }
  0x10   : > { %s2437_s14 = scalar_lea.vmem %s2718_s0, %s2425_s7  ;;  %v380_v43 = vsub.s32 0, %v2528_v42  ;;  %v384_v45 = vsub.s32 1, %v2528_v42  ;;  %s2553_s11 = scalar_lea.vmem %s2721_s3, %s2425_s7 }
  0x11   : > { %622 = vmatpush1.bf16.msra.mxu0 %v2295_v6  ;;  %2256 = vmatpush1.bf16.msra.mxu1 %v2295_v6  ;;  %v2311_v18 = vld [vmem:[%s2437_s14] sm:$0xff]   ;;  %v2315_v22 = vld [vmem:[%s2437_s14 + $0x8] sm:$0xff]   ;;  %v2319_v26 = vld [vmem:[%s2437_s14 + $0x10] sm:$0xff]   ;;  %s2561_s15 = scalar_lea.vmem %s2722_s4, %s2425_s7  ;;  %s2617_s18 = scalar_lea.vmem %s2723_s5, %s2425_s7 }
  0x12   : > { %623 = vmatprep.subr.bf16.mxu0 %v2296_v7  ;;  %2249 = vmatprep.subr.bf16.mxu1 %v2296_v7  ;;  %v2471_v19 = vld [vmem:[%s2437_s14 + $0x60] sm:$0xff]   ;;  %v2484_v23 = vld [vmem:[%s2437_s14 + $0x68] sm:$0xff]   ;;  %v2320_v27 = vld [vmem:[%s2437_s14 + $0x70] sm:$0xff]   ;;  %v2538_v46 = vrot.slane %v2534_v44, %v380_v43  ;;  %v2541_v49 = vrot.slane %v2534_v44, %v384_v45 }
  0x13   : > { %v2323_v30 = vld [vmem:[%s2437_s14 + $0x18] sm:$0xff]   ;;  %v2327_v33 = vld [vmem:[%s2437_s14 + $0x20] sm:$0xff]   ;;  %v2328_v34 = vld [vmem:[%s2437_s14 + $0x28] sm:$0xff]  }
  0x14   : > { %v2324_v31 = vld [vmem:[%s2437_s14 + $0x78] sm:$0xff]   ;;  %v2329_v35 = vld [vmem:[%s2437_s14 + $0x30] sm:$0xff]   ;;  %v2331_v37 = vld [vmem:[%s2437_s14 + $0x40] sm:$0xff]  }
  0x15   : > { %624 = vmatpush1.bf16.msra.mxu0 %v2298_v8  ;;  %2257 = vmatpush1.bf16.msra.mxu1 %v2298_v8  ;;  %v2330_v36 = vld [vmem:[%s2437_s14 + $0x38] sm:$0xff]   ;;  %v2332_v38 = vld [vmem:[%s2437_s14 + $0x48] sm:$0xff]   ;;  %v2333_v39 = vld [vmem:[%s2437_s14 + $0x50] sm:$0xff]  }
  0x16   : > { %625 = vmatprep.subr.bf16.mxu0 %v2299_v9  ;;  %2250 = vmatprep.subr.bf16.mxu1 %v2299_v9  ;;  %v2334_v40 = vld [vmem:[%s2437_s14 + $0x58] sm:$0xff]  }
  0x19   : > { %626 = vmatpush1.bf16.msra.mxu0 %v2301_v10  ;;  %2258 = vmatpush1.bf16.msra.mxu1 %v2301_v10 }
  0x1a   : > { %627 = vmatprep.subr.bf16.mxu0 %v2302_v11  ;;  %2251 = vmatprep.subr.bf16.mxu1 %v2302_v11 }
  0x1d   : > { %628 = vmatpush1.bf16.msra.mxu0 %v2304_v12  ;;  %2259 = vmatpush1.bf16.msra.mxu1 %v2304_v12 }
  0x1e   : > { %629 = vmatprep.subr.bf16.mxu0 %v2305_v13  ;;  %2252 = vmatprep.subr.bf16.mxu1 %v2305_v13 }
  0x21   : > { %630 = vmatpush1.bf16.msra.mxu0 %v2307_v14  ;;  %2260 = vmatpush1.bf16.msra.mxu1 %v2307_v14 }
  0x22   : > { %631 = vmatprep.subr.bf16.mxu0 %v2308_v15  ;;  %2253 = vmatprep.subr.bf16.mxu1 %v2308_v15 }
  0x25   : > { %632 = vmatpush1.bf16.msra.mxu0 %v2310_v16  ;;  %2261 = vmatpush1.bf16.msra.mxu1 %v2310_v16 }
  0x26   : > { %2198 = vmatprep.subr.bf16.mxu1 %v2313_v17 }
  0x28   : > { %650 = vmatmul.mubr.bf16.vlgmr.msra.gmra.mrb[0].mxu0 %v2311_v18  ;;  %770 = vmatmul.mubr.bf16.vlgmr.msra.gmra.mrb[0].mxu1 %v2471_v19 }
  0x29   : > { %2199 = vmatpush3.bf16.msra.mxu1 %v2313_v17  ;;  %659 = vmatprep.mubr.bf16.mxu0 %v2359_v2 }
  0x2a   : > { %2200 = vmatprep.subr.bf16.mxu1 %v2314_v20  ;;  %779 = vmatprep.mubr.bf16.mxu1 %v2359_v2 }
  0x2d   : > { %2201 = vmatpush3.bf16.msra.mxu1 %v2314_v20 }
  0x2e   : > { %2202 = vmatprep.subr.bf16.mxu1 %v2317_v21 }
  0x30   : > { %660 = vmatmul.mubr.bf16.gmra.mrb[4].mxu0 %v2315_v22  ;;  %780 = vmatmul.mubr.bf16.gmra.mrb[4].mxu1 %v2484_v23 }
  0x31   : > { %2203 = vmatpush3.bf16.msra.mxu1 %v2317_v21  ;;  %669 = vmatprep.mubr.bf16.mxu0 %v2359_v2 }
  0x32   : > { %2204 = vmatprep.subr.bf16.mxu1 %v2318_v24  ;;  %789 = vmatprep.mubr.bf16.mxu1 %v2359_v2 }
  0x35   : > { %2205 = vmatpush3.bf16.msra.mxu1 %v2318_v24 }
  0x36   : > { %2206 = vmatprep.subr.bf16.mxu1 %v2321_v25 }
  0x38   : > { %670 = vmatmul.mubr.bf16.gmra.mrb[8].mxu0 %v2319_v26  ;;  %790 = vmatmul.mubr.bf16.gmra.mrb[8].mxu1 %v2320_v27 }
  0x39   : > { %2207 = vmatpush3.bf16.msra.mxu1 %v2321_v25  ;;  %679 = vmatprep.mubr.bf16.mxu0 %v2359_v2 }
  0x3a   : > { %2208 = vmatprep.subr.bf16.mxu1 %v2322_v28  ;;  %799 = vmatprep.mubr.bf16.mxu1 %v2359_v2 }
  0x3d   : > { %2209 = vmatpush3.bf16.msra.mxu1 %v2322_v28 }
  0x3e   : > { %2210 = vmatprep.subr.bf16.mxu1 %v2325_v29 }
  0x40   : > { %680 = vmatmul.mubr.bf16.gmra.mrb[12].mxu0 %v2323_v30  ;;  %800 = vmatmul.mubr.bf16.gmra.mrb[12].mxu1 %v2324_v31 }
  0x41   : > { %2211 = vmatpush3.bf16.msra.mxu1 %v2325_v29  ;;  %689 = vmatprep.mubr.bf16.mxu0 %v2359_v2 }
  0x42   : > { %2212 = vmatprep.subr.bf16.mxu1 %v2326_v32  ;;  %2214 = vmatprep.mubr.bf16.mxu1 %v2311_v18 }
  0x45   : > { %2213 = vmatpush3.bf16.msra.mxu1 %v2326_v32 }
  0x48   : > { %690 = vmatmul.mubr.bf16.gmra.mrb[16].mxu0 %v2327_v33  ;;  %2215 = vmatmul.mubr.bf16.vlgmr.msra.gmra.mrb[16].mxu1 %v2315_v22 }
  0x49   : > { %699 = vmatprep.mubr.bf16.mxu0 %v2359_v2  ;;  %2218 = vmatprep.mubr.bf16.mxu1 %v2319_v26 }
  0x50   : > { %700 = vmatmul.mubr.bf16.gmra.mrb[20].mxu0 %v2328_v34  ;;  %2219 = vmatmul.mubr.bf16.gmra.mrb[20].mxu1 %v2323_v30 }
  0x51   : > { %709 = vmatprep.mubr.bf16.mxu0 %v2359_v2  ;;  %2222 = vmatprep.mubr.bf16.mxu1 %v2327_v33 }
  0x58   : > { %710 = vmatmul.mubr.bf16.gmra.mrb[24].mxu0 %v2329_v35  ;;  %2223 = vmatmul.mubr.bf16.gmra.mrb[24].mxu1 %v2328_v34 }
  0x59   : > { %719 = vmatprep.mubr.bf16.mxu0 %v2359_v2  ;;  %2226 = vmatprep.mubr.bf16.mxu1 %v2329_v35 }
  0x60   : > { %720 = vmatmul.mubr.bf16.gmra.mrb[28].mxu0 %v2330_v36  ;;  %2227 = vmatmul.mubr.bf16.gmra.mrb[28].mxu1 %v2330_v36 }
  0x61   : > { %729 = vmatprep.mubr.bf16.mxu0 %v2359_v2  ;;  %2230 = vmatprep.mubr.bf16.mxu1 %v2331_v37 }
  0x68   : > { %730 = vmatmul.mubr.bf16.gmra.mrb[32].mxu0 %v2331_v37  ;;  %2231 = vmatmul.mubr.bf16.gmra.mrb[32].mxu1 %v2332_v38 }
  0x69   : > { %739 = vmatprep.mubr.bf16.mxu0 %v2359_v2  ;;  %2234 = vmatprep.mubr.bf16.mxu1 %v2333_v39 }
  0x70   : > { %740 = vmatmul.mubr.bf16.gmra.mrb[36].mxu0 %v2332_v38  ;;  %2235 = vmatmul.mubr.bf16.gmra.mrb[36].mxu1 %v2334_v40 }
  0x71   : > { %749 = vmatprep.mubr.bf16.mxu0 %v2359_v2  ;;  %2238 = vmatprep.mubr.bf16.mxu1 %v2471_v19 }
  0x78   : > { %750 = vmatmul.mubr.bf16.gmra.mrb[40].mxu0 %v2333_v39  ;;  %2239 = vmatmul.mubr.bf16.gmra.mrb[40].mxu1 %v2484_v23 }
  0x79   : > { %759 = vmatprep.mubr.bf16.mxu0 %v2359_v2  ;;  %2242 = vmatprep.mubr.bf16.mxu1 %v2320_v27 }
  0x80   : > { %760 = vmatmul.mubr.bf16.gmra.mrb[44].mxu0 %v2334_v40  ;;  %2243 = vmatmul.mubr.bf16.gmra.mrb[44].mxu1 %v2324_v31 }
  0xfb   : > { %v651_v47 = vpop.f32.mrb[0].mxu0  ;;  %v771_v48 = vpop.f32.mrb[0].mxu1 }
  0xfc   : > { %v653_v50 = vpop.f32.mrb[1].mxu0  ;;  %v773_v51 = vpop.f32.mrb[1].mxu1  ;;  %v652_v54 = vadd.f32 %v651_v47, %v2538_v46  ;;  %v772_v55 = vadd.f32 %v771_v48, %v2538_v46 }
  0xfd   : > { %v655_v52 = vpop.f32.mrb[2].mxu0  ;;  %v775_v53 = vpop.f32.mrb[2].mxu1  ;;  %v654_v60 = vadd.f32 %v653_v50, %v2541_v49  ;;  %v774_v61 = vadd.f32 %v773_v51, %v2541_v49 }
  0xfe   : > { %v656_v56 = vadd.f32 %v655_v52, %v2538_v46  ;;  %v776_v57 = vadd.f32 %v775_v53, %v2538_v46  ;;  %v657_v58 = vpop.f32.mrb[3].mxu0  ;;  %v777_v59 = vpop.f32.mrb[3].mxu1 }
  0xff   : > { %v658_v62 = vadd.f32 %v657_v58, %v2541_v49  ;;  %v778_v63 = vadd.f32 %v777_v59, %v2541_v49 }
 0x100   : > { %v1892_v0 = vpack.c.bf16 %v656_v56, %v652_v54  ;;  %v1952_v1 = vpack.c.bf16 %v776_v57, %v772_v55  ;;  %v388_v54 = vsub.s32 2, %v2528_v42 }
 0x101   : > { %v1972_v2 = vpack.c.bf16 %v658_v62, %v654_v60  ;;  %v2032_v3 = vpack.c.bf16 %v778_v63, %v774_v61 }
 0x102   : > { %1893 = vst [vmem:[%s2553_s11] sm:$0xff] %v1892_v0   ;;  %2140 = vst [vmem:[%s2553_s11 + $0x60] sm:$0xff] %v1952_v1  }
 0x103   : > { %1973 = vst [vmem:[%s2561_s15] sm:$0xff] %v1972_v2   ;;  %2155 = vst [vmem:[%s2561_s15 + $0x60] sm:$0xff] %v2032_v3   ;;  %v661_v4 = vpop.f32.mrb[4].mxu0  ;;  %v781_v5 = vpop.f32.mrb[4].mxu1 }
 0x104   : > { %v663_v6 = vpop.f32.mrb[5].mxu0  ;;  %v783_v7 = vpop.f32.mrb[5].mxu1  ;;  %v662_v10 = vadd.f32 %v661_v4, %v2538_v46  ;;  %v782_v11 = vadd.f32 %v781_v5, %v2538_v46  ;;  %v2603_v4 = vrot.slane %v2534_v44, %v388_v54 }
 0x105   : > { %v665_v8 = vpop.f32.mrb[6].mxu0  ;;  %v785_v9 = vpop.f32.mrb[6].mxu1  ;;  %v664_v16 = vadd.f32 %v663_v6, %v2541_v49  ;;  %v784_v17 = vadd.f32 %v783_v7, %v2541_v49 }
 0x106   : > { %v666_v12 = vadd.f32 %v665_v8, %v2538_v46  ;;  %v786_v13 = vadd.f32 %v785_v9, %v2538_v46  ;;  %v667_v14 = vpop.f32.mrb[7].mxu0  ;;  %v787_v15 = vpop.f32.mrb[7].mxu1 }
 0x107   : > { %v668_v18 = vadd.f32 %v667_v14, %v2541_v49  ;;  %v788_v19 = vadd.f32 %v787_v15, %v2541_v49 }
 0x108   : > { %v1897_v20 = vpack.c.bf16 %v666_v12, %v662_v10  ;;  %v1957_v21 = vpack.c.bf16 %v786_v13, %v782_v11 }
 0x109   : > { %v1977_v22 = vpack.c.bf16 %v668_v18, %v664_v16  ;;  %v2037_v23 = vpack.c.bf16 %v788_v19, %v784_v17 }
 0x10a   : > { %2129 = vst [vmem:[%s2553_s11 + $0x8] sm:$0xff] %v1897_v20   ;;  %2141 = vst [vmem:[%s2553_s11 + $0x68] sm:$0xff] %v1957_v21  }
 0x10b   : > { %2144 = vst [vmem:[%s2561_s15 + $0x8] sm:$0xff] %v1977_v22   ;;  %2156 = vst [vmem:[%s2561_s15 + $0x68] sm:$0xff] %v2037_v23   ;;  %v671_v24 = vpop.f32.mrb[8].mxu0  ;;  %v791_v25 = vpop.f32.mrb[8].mxu1 }
 0x10c   : > { %v673_v26 = vpop.f32.mrb[9].mxu0  ;;  %v793_v27 = vpop.f32.mrb[9].mxu1  ;;  %v672_v30 = vadd.f32 %v671_v24, %v2538_v46  ;;  %v792_v31 = vadd.f32 %v791_v25, %v2538_v46 }
 0x10d   : > { %v675_v28 = vpop.f32.mrb[10].mxu0  ;;  %v795_v29 = vpop.f32.mrb[10].mxu1  ;;  %v674_v36 = vadd.f32 %v673_v26, %v2541_v49  ;;  %v794_v37 = vadd.f32 %v793_v27, %v2541_v49 }
 0x10e   : > { %v676_v32 = vadd.f32 %v675_v28, %v2538_v46  ;;  %v796_v33 = vadd.f32 %v795_v29, %v2538_v46  ;;  %v677_v34 = vpop.f32.mrb[11].mxu0  ;;  %v797_v35 = vpop.f32.mrb[11].mxu1 }
 0x10f   : > { %v678_v38 = vadd.f32 %v677_v34, %v2541_v49  ;;  %v798_v39 = vadd.f32 %v797_v35, %v2541_v49 }
 0x110   : > { %v1902_v40 = vpack.c.bf16 %v676_v32, %v672_v30  ;;  %v1962_v41 = vpack.c.bf16 %v796_v33, %v792_v31 }
 0x111   : > { %v1982_v43 = vpack.c.bf16 %v678_v38, %v674_v36  ;;  %v2042_v45 = vpack.c.bf16 %v798_v39, %v794_v37 }
 0x112   : > { %2130 = vst [vmem:[%s2553_s11 + $0x10] sm:$0xff] %v1902_v40   ;;  %2142 = vst [vmem:[%s2553_s11 + $0x70] sm:$0xff] %v1962_v41  }
 0x113   : > { %2145 = vst [vmem:[%s2561_s15 + $0x10] sm:$0xff] %v1982_v43   ;;  %2157 = vst [vmem:[%s2561_s15 + $0x70] sm:$0xff] %v2042_v45   ;;  %v681_v47 = vpop.f32.mrb[12].mxu0  ;;  %v801_v48 = vpop.f32.mrb[12].mxu1 }
 0x114   : > { %v683_v50 = vpop.f32.mrb[13].mxu0  ;;  %v803_v51 = vpop.f32.mrb[13].mxu1  ;;  %v682_v55 = vadd.f32 %v681_v47, %v2538_v46  ;;  %v802_v56 = vadd.f32 %v801_v48, %v2538_v46 }
 0x115   : > { %v685_v52 = vpop.f32.mrb[14].mxu0  ;;  %v805_v53 = vpop.f32.mrb[14].mxu1  ;;  %v684_v61 = vadd.f32 %v683_v50, %v2541_v49  ;;  %v804_v62 = vadd.f32 %v803_v51, %v2541_v49 }
 0x116   : > { %v686_v57 = vadd.f32 %v685_v52, %v2538_v46  ;;  %v806_v58 = vadd.f32 %v805_v53, %v2538_v46  ;;  %v687_v59 = vpop.f32.mrb[15].mxu0  ;;  %v807_v60 = vpop.f32.mrb[15].mxu1 }
 0x117   : > { %v688_v63 = vadd.f32 %v687_v59, %v2541_v49  ;;  %v808_v42 = vadd.f32 %v807_v60, %v2541_v49 }
 0x118   : > { %v1907_v0 = vpack.c.bf16 %v686_v57, %v682_v55  ;;  %v1967_v1 = vpack.c.bf16 %v806_v58, %v802_v56 }
 0x119   : > { %v1987_v2 = vpack.c.bf16 %v688_v63, %v684_v61  ;;  %v2047_v3 = vpack.c.bf16 %v808_v42, %v804_v62 }
 0x11a   : > { %2131 = vst [vmem:[%s2553_s11 + $0x18] sm:$0xff] %v1907_v0   ;;  %2143 = vst [vmem:[%s2553_s11 + $0x78] sm:$0xff] %v1967_v1  }
 0x11b   : > { %2146 = vst [vmem:[%s2561_s15 + $0x18] sm:$0xff] %v1987_v2   ;;  %2158 = vst [vmem:[%s2561_s15 + $0x78] sm:$0xff] %v2047_v3   ;;  %v691_v5 = vpop.f32.mrb[16].mxu0  ;;  %v2216_v6 = vpop.f32.mrb[16].mxu1 }
 0x11c   : > { %v693_v7 = vpop.f32.mrb[17].mxu0  ;;  %v844_v8 = vpop.f32.mrb[17].mxu1  ;;  %v692_v11 = vadd.f32 %v691_v5, %v2538_v46  ;;  %v853_v12 = vadd.f32 %v2216_v6, %v2603_v4 }
 0x11d   : > { %v695_v9 = vpop.f32.mrb[18].mxu0  ;;  %v2217_v10 = vpop.f32.mrb[18].mxu1  ;;  %v694_v16 = vadd.f32 %v693_v7, %v2541_v49  ;;  %v845_v17 = vadd.f32 %v844_v8, %v2603_v4 }
 0x11e   : > { %v696_v13 = vadd.f32 %v695_v9, %v2538_v46  ;;  %v856_v44 = vadd.f32 %v2217_v10, %v2603_v4  ;;  %v697_v14 = vpop.f32.mrb[19].mxu0  ;;  %v847_v15 = vpop.f32.mrb[19].mxu1 }
 0x11f   : > { %v698_v18 = vadd.f32 %v697_v14, %v2541_v49  ;;  %v848_v19 = vadd.f32 %v847_v15, %v2603_v4 }
 0x120   : > { %v1912_v20 = vpack.c.bf16 %v696_v13, %v692_v11  ;;  %v2057_v21 = vpack.c.bf16 %v856_v44, %v853_v12 }
 0x121   : > { %v1992_v22 = vpack.c.bf16 %v698_v18, %v694_v16  ;;  %v2052_v23 = vpack.c.bf16 %v848_v19, %v845_v17 }
 0x122   : > { %2132 = vst [vmem:[%s2553_s11 + $0x20] sm:$0xff] %v1912_v20   ;;  %2159 = vst [vmem:[%s2617_s18 + $0x8] sm:$0xff] %v2057_v21  }
 0x123   : > { %2147 = vst [vmem:[%s2561_s15 + $0x20] sm:$0xff] %v1992_v22   ;;  %2053 = vst [vmem:[%s2617_s18] sm:$0xff] %v2052_v23   ;;  %v701_v24 = vpop.f32.mrb[20].mxu0  ;;  %v2220_v25 = vpop.f32.mrb[20].mxu1 }
 0x124   : > { %v703_v26 = vpop.f32.mrb[21].mxu0  ;;  %v860_v27 = vpop.f32.mrb[21].mxu1  ;;  %v702_v30 = vadd.f32 %v701_v24, %v2538_v46  ;;  %v869_v31 = vadd.f32 %v2220_v25, %v2603_v4 }
 0x125   : > { %v705_v28 = vpop.f32.mrb[22].mxu0  ;;  %v2221_v29 = vpop.f32.mrb[22].mxu1  ;;  %v704_v36 = vadd.f32 %v703_v26, %v2541_v49  ;;  %v861_v37 = vadd.f32 %v860_v27, %v2603_v4 }
 0x126   : > { %v706_v32 = vadd.f32 %v705_v28, %v2538_v46  ;;  %v872_v33 = vadd.f32 %v2221_v29, %v2603_v4  ;;  %v707_v34 = vpop.f32.mrb[23].mxu0  ;;  %v863_v35 = vpop.f32.mrb[23].mxu1 }
 0x127   : > { %v708_v38 = vadd.f32 %v707_v34, %v2541_v49  ;;  %v864_v39 = vadd.f32 %v863_v35, %v2603_v4 }
 0x128   : > { %v1917_v40 = vpack.c.bf16 %v706_v32, %v702_v30  ;;  %v2067_v41 = vpack.c.bf16 %v872_v33, %v869_v31 }
 0x129   : > { %v1997_v43 = vpack.c.bf16 %v708_v38, %v704_v36  ;;  %v2062_v45 = vpack.c.bf16 %v864_v39, %v861_v37 }
 0x12a   : > { %2133 = vst [vmem:[%s2553_s11 + $0x28] sm:$0xff] %v1917_v40   ;;  %2161 = vst [vmem:[%s2617_s18 + $0x18] sm:$0xff] %v2067_v41  }
 0x12b   : > { %2148 = vst [vmem:[%s2561_s15 + $0x28] sm:$0xff] %v1997_v43   ;;  %2160 = vst [vmem:[%s2617_s18 + $0x10] sm:$0xff] %v2062_v45   ;;  %v711_v47 = vpop.f32.mrb[24].mxu0  ;;  %v2224_v48 = vpop.f32.mrb[24].mxu1 }
 0x12c   : > { %v713_v50 = vpop.f32.mrb[25].mxu0  ;;  %v876_v51 = vpop.f32.mrb[25].mxu1  ;;  %v712_v54 = vadd.f32 %v711_v47, %v2538_v46  ;;  %v885_v55 = vadd.f32 %v2224_v48, %v2603_v4 }
 0x12d   : > { %v715_v52 = vpop.f32.mrb[26].mxu0  ;;  %v2225_v53 = vpop.f32.mrb[26].mxu1  ;;  %v714_v60 = vadd.f32 %v713_v50, %v2541_v49  ;;  %v877_v61 = vadd.f32 %v876_v51, %v2603_v4 }
 0x12e   : > { %v716_v56 = vadd.f32 %v715_v52, %v2538_v46  ;;  %v888_v57 = vadd.f32 %v2225_v53, %v2603_v4  ;;  %v717_v58 = vpop.f32.mrb[27].mxu0  ;;  %v879_v59 = vpop.f32.mrb[27].mxu1 }
 0x12f   : > { %v718_v62 = vadd.f32 %v717_v58, %v2541_v49  ;;  %v880_v63 = vadd.f32 %v879_v59, %v2603_v4 }
 0x130   : > { %v1922_v42 = vpack.c.bf16 %v716_v56, %v712_v54  ;;  %v2077_v0 = vpack.c.bf16 %v888_v57, %v885_v55 }
 0x131   : > { %v2002_v1 = vpack.c.bf16 %v718_v62, %v714_v60  ;;  %v2072_v2 = vpack.c.bf16 %v880_v63, %v877_v61 }
 0x132   : > { %2134 = vst [vmem:[%s2553_s11 + $0x30] sm:$0xff] %v1922_v42   ;;  %2163 = vst [vmem:[%s2617_s18 + $0x28] sm:$0xff] %v2077_v0  }
 0x133   : > { %2149 = vst [vmem:[%s2561_s15 + $0x30] sm:$0xff] %v2002_v1   ;;  %2162 = vst [vmem:[%s2617_s18 + $0x20] sm:$0xff] %v2072_v2   ;;  %v721_v3 = vpop.f32.mrb[28].mxu0  ;;  %v2228_v5 = vpop.f32.mrb[28].mxu1 }
 0x134   : > { %v723_v6 = vpop.f32.mrb[29].mxu0  ;;  %v892_v7 = vpop.f32.mrb[29].mxu1  ;;  %v722_v10 = vadd.f32 %v721_v3, %v2538_v46  ;;  %v901_v11 = vadd.f32 %v2228_v5, %v2603_v4 }
 0x135   : > { %v725_v8 = vpop.f32.mrb[30].mxu0  ;;  %v2229_v9 = vpop.f32.mrb[30].mxu1  ;;  %v724_v15 = vadd.f32 %v723_v6, %v2541_v49  ;;  %v893_v16 = vadd.f32 %v892_v7, %v2603_v4 }
 0x136   : > { %v726_v12 = vadd.f32 %v725_v8, %v2538_v46  ;;  %v904_v13 = vadd.f32 %v2229_v9, %v2603_v4  ;;  %v727_v44 = vpop.f32.mrb[31].mxu0  ;;  %v895_v14 = vpop.f32.mrb[31].mxu1 }
 0x137   : > { %v728_v17 = vadd.f32 %v727_v44, %v2541_v49  ;;  %v896_v18 = vadd.f32 %v895_v14, %v2603_v4 }
 0x138   : > { %v1927_v19 = vpack.c.bf16 %v726_v12, %v722_v10  ;;  %v2087_v20 = vpack.c.bf16 %v904_v13, %v901_v11 }
 0x139   : > { %v2007_v21 = vpack.c.bf16 %v728_v17, %v724_v15  ;;  %v2082_v22 = vpack.c.bf16 %v896_v18, %v893_v16 }
 0x13a   : > { %2135 = vst [vmem:[%s2553_s11 + $0x38] sm:$0xff] %v1927_v19   ;;  %2165 = vst [vmem:[%s2617_s18 + $0x38] sm:$0xff] %v2087_v20  }
 0x13b   : > { %2150 = vst [vmem:[%s2561_s15 + $0x38] sm:$0xff] %v2007_v21   ;;  %2164 = vst [vmem:[%s2617_s18 + $0x30] sm:$0xff] %v2082_v22   ;;  %v731_v23 = vpop.f32.mrb[32].mxu0  ;;  %v2232_v24 = vpop.f32.mrb[32].mxu1 }
 0x13c   : > { %v733_v25 = vpop.f32.mrb[33].mxu0  ;;  %v908_v26 = vpop.f32.mrb[33].mxu1  ;;  %v732_v29 = vadd.f32 %v731_v23, %v2538_v46  ;;  %v917_v30 = vadd.f32 %v2232_v24, %v2603_v4 }
 0x13d   : > { %v735_v27 = vpop.f32.mrb[34].mxu0  ;;  %v2233_v28 = vpop.f32.mrb[34].mxu1  ;;  %v734_v35 = vadd.f32 %v733_v25, %v2541_v49  ;;  %v909_v36 = vadd.f32 %v908_v26, %v2603_v4 }
 0x13e   : > { %v736_v31 = vadd.f32 %v735_v27, %v2538_v46  ;;  %v920_v32 = vadd.f32 %v2233_v28, %v2603_v4  ;;  %v737_v33 = vpop.f32.mrb[35].mxu0  ;;  %v911_v34 = vpop.f32.mrb[35].mxu1 }
 0x13f   : > { %v738_v37 = vadd.f32 %v737_v33, %v2541_v49  ;;  %v912_v38 = vadd.f32 %v911_v34, %v2603_v4 }
 0x140   : > { %v1932_v39 = vpack.c.bf16 %v736_v31, %v732_v29  ;;  %v2097_v40 = vpack.c.bf16 %v920_v32, %v917_v30 }
 0x141   : > { %v2012_v41 = vpack.c.bf16 %v738_v37, %v734_v35  ;;  %v2092_v43 = vpack.c.bf16 %v912_v38, %v909_v36 }
 0x142   : > { %2136 = vst [vmem:[%s2553_s11 + $0x40] sm:$0xff] %v1932_v39   ;;  %2167 = vst [vmem:[%s2617_s18 + $0x48] sm:$0xff] %v2097_v40  }
 0x143   : > { %2151 = vst [vmem:[%s2561_s15 + $0x40] sm:$0xff] %v2012_v41   ;;  %2166 = vst [vmem:[%s2617_s18 + $0x40] sm:$0xff] %v2092_v43   ;;  %v741_v45 = vpop.f32.mrb[36].mxu0  ;;  %v2236_v47 = vpop.f32.mrb[36].mxu1 }
 0x144   : > { %v743_v48 = vpop.f32.mrb[37].mxu0  ;;  %v924_v50 = vpop.f32.mrb[37].mxu1  ;;  %v742_v53 = vadd.f32 %v741_v45, %v2538_v46  ;;  %v933_v54 = vadd.f32 %v2236_v47, %v2603_v4 }
 0x145   : > { %v745_v51 = vpop.f32.mrb[38].mxu0  ;;  %v2237_v52 = vpop.f32.mrb[38].mxu1  ;;  %v744_v59 = vadd.f32 %v743_v48, %v2541_v49  ;;  %v925_v60 = vadd.f32 %v924_v50, %v2603_v4 }
 0x146   : > { %v746_v55 = vadd.f32 %v745_v51, %v2538_v46  ;;  %v936_v56 = vadd.f32 %v2237_v52, %v2603_v4  ;;  %v747_v57 = vpop.f32.mrb[39].mxu0  ;;  %v927_v58 = vpop.f32.mrb[39].mxu1 }
 0x147   : > { %v748_v61 = vadd.f32 %v747_v57, %v2541_v49  ;;  %v928_v62 = vadd.f32 %v927_v58, %v2603_v4 }
 0x148   : > { %v1937_v63 = vpack.c.bf16 %v746_v55, %v742_v53  ;;  %v2107_v42 = vpack.c.bf16 %v936_v56, %v933_v54 }
 0x149   : > { %v2017_v0 = vpack.c.bf16 %v748_v61, %v744_v59  ;;  %v2102_v1 = vpack.c.bf16 %v928_v62, %v925_v60 }
 0x14a   : > { %2137 = vst [vmem:[%s2553_s11 + $0x48] sm:$0xff] %v1937_v63   ;;  %2169 = vst [vmem:[%s2617_s18 + $0x58] sm:$0xff] %v2107_v42  }
 0x14b   : > { %2152 = vst [vmem:[%s2561_s15 + $0x48] sm:$0xff] %v2017_v0   ;;  %2168 = vst [vmem:[%s2617_s18 + $0x50] sm:$0xff] %v2102_v1   ;;  %v751_v2 = vpop.f32.mrb[40].mxu0  ;;  %v2240_v3 = vpop.f32.mrb[40].mxu1 }
 0x14c   : > { %v753_v5 = vpop.f32.mrb[41].mxu0  ;;  %v940_v6 = vpop.f32.mrb[41].mxu1  ;;  %v752_v9 = vadd.f32 %v751_v2, %v2538_v46  ;;  %v949_v10 = vadd.f32 %v2240_v3, %v2603_v4 }
 0x14d   : > { %v755_v7 = vpop.f32.mrb[42].mxu0  ;;  %v2241_v8 = vpop.f32.mrb[42].mxu1  ;;  %v754_v14 = vadd.f32 %v753_v5, %v2541_v49  ;;  %v941_v15 = vadd.f32 %v940_v6, %v2603_v4 }
 0x14e   : > { %v756_v11 = vadd.f32 %v755_v7, %v2538_v46  ;;  %v952_v12 = vadd.f32 %v2241_v8, %v2603_v4  ;;  %v757_v13 = vpop.f32.mrb[43].mxu0  ;;  %v943_v44 = vpop.f32.mrb[43].mxu1 }
 0x14f   : > { %v758_v16 = vadd.f32 %v757_v13, %v2541_v49  ;;  %v944_v17 = vadd.f32 %v943_v44, %v2603_v4 }
 0x150   : > { %v1942_v18 = vpack.c.bf16 %v756_v11, %v752_v9  ;;  %v2117_v19 = vpack.c.bf16 %v952_v12, %v949_v10 }
 0x151   : > { %v2022_v20 = vpack.c.bf16 %v758_v16, %v754_v14  ;;  %v2112_v21 = vpack.c.bf16 %v944_v17, %v941_v15 }
 0x152   : > { %2138 = vst [vmem:[%s2553_s11 + $0x50] sm:$0xff] %v1942_v18   ;;  %2171 = vst [vmem:[%s2617_s18 + $0x68] sm:$0xff] %v2117_v19  }
 0x153   : > { %2153 = vst [vmem:[%s2561_s15 + $0x50] sm:$0xff] %v2022_v20   ;;  %2170 = vst [vmem:[%s2617_s18 + $0x60] sm:$0xff] %v2112_v21   ;;  %v761_v22 = vpop.f32.mrb[44].mxu0  ;;  %v2244_v23 = vpop.f32.mrb[44].mxu1 }
 0x154   : > { %v763_v24 = vpop.f32.mrb[45].mxu0  ;;  %v956_v25 = vpop.f32.mrb[45].mxu1  ;;  %v762_v28 = vadd.f32 %v761_v22, %v2538_v46  ;;  %v965_v29 = vadd.f32 %v2244_v23, %v2603_v4 }
 0x155   : > { %v765_v26 = vpop.f32.mrb[46].mxu0  ;;  %v2245_v27 = vpop.f32.mrb[46].mxu1  ;;  %v764_v34 = vadd.f32 %v763_v24, %v2541_v49  ;;  %v957_v35 = vadd.f32 %v956_v25, %v2603_v4 }
 0x156   : > { %v766_v30 = vadd.f32 %v765_v26, %v2538_v46  ;;  %v968_v31 = vadd.f32 %v2245_v27, %v2603_v4  ;;  %v767_v32 = vpop.f32.mrb[47].mxu0  ;;  %v959_v33 = vpop.f32.mrb[47].mxu1 }
 0x157   : > { %v768_v36 = vadd.f32 %v767_v32, %v2541_v49  ;;  %v960_v37 = vadd.f32 %v959_v33, %v2603_v4 }
 0x158   : > { %v1947_v38 = vpack.c.bf16 %v766_v30, %v762_v28  ;;  %v2127_v39 = vpack.c.bf16 %v968_v31, %v965_v29 }
 0x159   : > { %v2027_v40 = vpack.c.bf16 %v768_v36, %v764_v34  ;;  %v2122_v41 = vpack.c.bf16 %v960_v37, %v957_v35 }
 0x15a   : > { %2139 = vst [vmem:[%s2553_s11 + $0x58] sm:$0xff] %v1947_v38   ;;  %2173 = vst [vmem:[%s2617_s18 + $0x78] sm:$0xff] %v2127_v39  }
 0x15b   : > { %2154 = vst [vmem:[%s2561_s15 + $0x58] sm:$0xff] %v2027_v40   ;;  %2172 = vst [vmem:[%s2617_s18 + $0x70] sm:$0xff] %v2122_v41  }
 0x15c PF: > { %s16_s20 = sadd.s32 1, %s2357_s20   ;;  %s2724_s18 = smov %s2353_s19 }
 0x15d   : > { %p13_p5 = scmp.ge.s32.totalorder %s16_s20, 4   ;;  %s2725_s19 = smov %s2727_s21 }
 0x15f   :  { %15 = sbr.rel (!%p13_p5) target bundleno = 2 (0x2), region = 86 }

// kernel: causal_self_attention.3
= control target key start
LH: loop header
LB: loop body
LE: loop exit
PB: predicated region body
PF: predicated region fallthrough
CT: control target
= control target key end

     0   :  { %s8873_s0 = inlined_call_operand.vmem [shape: bf16[2,2,256,64], index: 0, kind: input, shape index: {}]   ;;  %s8874_s1 = inlined_call_operand.vmem [shape: bf16[2,2,256,64], index: 1, kind: input, shape index: {}]   ;;  %s8875_s2 = inlined_call_operand.vmem [shape: bf16[2,2,256,64], index: 2, kind: input, shape index: {}]   ;;  %s8876_s3 = inlined_call_operand.hbm [shape: f32[2,256,128], index: 3, kind: output, shape index: {}]  }
   0x1   :  { %8952 = sst [smem:[#allocation87_spill]] %s8876_s3 }
   0x2   :  { %8 = vsyncpa [#allocation9], 0 }
   0x3   :  { %10 = vsyncpa [#allocation9 + $0x1], 0  ;;  %s6529_s12 = smov 0   ;;  %s6531_s13 = smov 0  }
   0x4   :  { %s6533_s14 = smov 0   ;;  %s6535_s15 = smov 0  }
   0x5   :  { %s6537_s16 = smov 0   ;;  %s6539_s17 = smov 0  }
   0x6   :  { %s6541_s18 = smov 0   ;;  %s6543_s19 = smov 0  }
   0x7   :  { %s6545_s20 = smov 0   ;;  %s6547_s21 = smov 0  }
   0x8   :  { %s6549_s22 = smov 0   ;;  %s6551_s23 = smov 0  }
   0x9 LB: > { %8953 = sst [smem:[#allocation11_spill]] %s6478_s18  ;;  %s5264_s24 = sadd.s32 4294967295, %s6498_s23   ;;  %s6498_s23 = sphi %s6551_s23, %s16_s23   ;;  %s6494_s22 = sphi %s6549_s22, %s9192_s22   ;;  %s6490_s21 = sphi %s6547_s21, %s9191_s21   ;;  %s6486_s20 = sphi %s6545_s20, %s9190_s20   ;;  %s6482_s19 = sphi %s6543_s19, %s9189_s19   ;;  %s6478_s18 = sphi %s6541_s18, %s9188_s18   ;;  %s6474_s17 = sphi %s6539_s17, %s9181_s17   ;;  %s6470_s16 = sphi %s6537_s16, %s9187_s16   ;;  %s6466_s15 = sphi %s6535_s15, %s9186_s15   ;;  %s6462_s14 = sphi %s6533_s14, %s9185_s14   ;;  %s6458_s13 = sphi %s6531_s13, %s9184_s13   ;;  %s6454_s12 = sphi %s6529_s12, %s9183_s12  }
   0xa   : > { %8954 = sst [smem:[#allocation12_spill]] %s6482_s19  ;;  %s28_s26 = sadd.s32 1, %s6486_s20 }
   0xb   : > { %8955 = sst [smem:[#allocation13_spill]] %s6486_s20  ;;  %s31_s27 = sadd.s32 1, %s6490_s21 }
   0xc   : > { %p29_p0 = scmp.ge.s32.totalorder %s28_s26, 2  ;;  %s35_s28 = sadd.s32 1, %s6494_s22 }
   0xd   : > { %s44_s29 = sadd.s32 1, %s6470_s16  ;;  %p51_p1 = scmp.ne.s32.totalorder %s6470_s16, %s6466_s15 }
   0xe   : > { %s9194_s26 = smov (%p29_p0, %s28_s26), 0  ;;  %s9196_s27 = smov (!%p29_p0, %s31_s27), %s6490_s21 }
   0xf   : > { %p52_p2 = scmp.eq.s32.totalorder %s6498_s23, 0  ;;  %p67_p3 = scmp.lt.s32.totalorder %s6486_s20, %s6490_s21 }
  0x10   : > { %p33_p4 = scmp.ge.s32.totalorder %s9196_s27, 2  ;;  %s76_s30 = sadd.s32 1, %s6462_s14 }
  0x11   : > { %p6607_p5 = por %p52_p2, %p51_p1  ;;  %p83_p6 = scmp.ne.s32.totalorder %s6462_s14, %s6458_s13 }
  0x12   : > { %s9198_s27 = smov (%p33_p4, %s9196_s27), 0  ;;  %s9200_s28 = smov (!%p33_p4, %s35_s28), %s6494_s22 }
  0x13   : > { %s40_s5 = ssub.s32 %s6490_s21, %s9198_s27  ;;  %p69_p7 = scmp.lt.s32.totalorder %s9194_s26, %s9198_s27 }
  0x14   : > { %p37_p8 = scmp.ge.s32.totalorder %s9200_s28, 2  ;;  %p6620_p9 = por %p83_p6, %p52_p2 }
  0x15   : > { %s6626_s7 = scalar_select %p67_p3, %s6486_s20, %s6490_s21 }
  0x16   : > { %s9202_s28 = smov (%p37_p8, %s9200_s28), 0  ;;  %p147_p10 = scmp.eq.s32.totalorder %s5264_s24, 7 }
  0x17   : > { %8958 = sst [smem:[#allocation14_spill]] %s9202_s28  ;;  %s39_s9 = ssub.s32 %s6494_s22, %s9202_s28 }
  0x18   : > { %s70_s8 = scalar_select %p69_p7, %s9194_s26, %s9198_s27 }
  0x19   : > { %s41_s10 = sor.u32 %s40_s5, %s39_s9  ;;  %p6638_p13 = por %p147_p10, %p51_p1 }
  0x1a   : > { %s72_s11 = ssub.s32 %s6626_s7, %s70_s8  ;;  %p42_p11 = scmp.eq.s32.totalorder %s41_s10, 0 }
  0x1b   : > { %s73_s25 = sor.u32 %s72_s11, %s39_s9  ;;  %p152_p0 = scmp.ne.s32.totalorder %s6466_s15, %s6454_s12 }
  0x1c   : > { %p74_p12 = scmp.eq.s32.totalorder %s73_s25, 0  ;;  %s8960_s18 = sadd.s32 4294967294, %s6498_s23  }
  0x1d   : > { %s6643_s19 = scalar_select %p42_p11, %s6470_s16, %s44_s29  }
  0x1e   : > { %s6646_s20 = scalar_select %p74_p12, %s6462_s14, %s76_s30  }
  0x1f   : > { %p153_p2 = scmp.eq.s32.totalorder %s8960_s18, 7  ;;  %p5267_p4 = scmp.ge.s32.totalorder %s6498_s23, 8 }
  0x21   : > { %p6652_p3 = por %p153_p2, %p152_p0  ;;  %169 = sbr.rel (%p5267_p4) target bundleno = 85 (0x55), region = 16 }
  0x28   : > { %172 = sbr.rel (!%p6607_p5) target bundleno = 55 (0x37), region = 20  ;;  %s174_s24 = sand.u32 (%p6607_p5), 1, %s6470_s16  }
  0x29   : > { %s5269_s25 = sshll.u32 (%p6607_p5), %s6490_s21, 4  ;;  %s5268_s29 = sshll.u32 (%p6607_p5), %s174_s24, 7 }
  0x2a   : > { %s5270_s30 = sshll.u32 (%p6607_p5), %s6494_s22, 6  ;;  %s176_s4 = scalar_lea.vmem (%p6607_p5), [#allocation5], %s5268_s29 }
  0x2b   : > { %s179_s5 = sadd.s32 (%p6607_p5), %s5270_s30, %s5269_s25 }
  0x2c   : > { %s5271_s8 = sshll.u32 (%p6607_p5), %s179_s5, 2 }
  0x2d   : > { %s6665_s10 = scalar_lea.vmem (%p6607_p5), %s8873_s0, %s5271_s8 }
  0x2e   : > { %v197_v0 = vld [vmem:[%s6665_s10] sm:$0xff] (%p6607_p5)   ;;  %v201_v1 = vld [vmem:[%s6665_s10 + $0x8] sm:$0xff] (%p6607_p5)   ;;  %v205_v2 = vld [vmem:[%s6665_s10 + $0x10] sm:$0xff] (%p6607_p5)  }
  0x2f   : > { %198 = vst [vmem:[%s176_s4] sm:$0xff] %v197_v0   ;;  %202 = vst [vmem:[%s176_s4 + $0x8] sm:$0xff] %v201_v1   ;;  %v209_v3 = vld [vmem:[%s6665_s10 + $0x18] sm:$0xff]   ;;  %v213_v4 = vld [vmem:[%s6665_s10 + $0x20] sm:$0xff]  }
  0x30   : > { %206 = vst [vmem:[%s176_s4 + $0x10] sm:$0xff] %v205_v2   ;;  %v217_v5 = vld [vmem:[%s6665_s10 + $0x28] sm:$0xff]   ;;  %210 = vst [vmem:[%s176_s4 + $0x18] sm:$0xff] %v209_v3   ;;  %v221_v6 = vld [vmem:[%s6665_s10 + $0x30] sm:$0xff]  }
  0x31   : > { %214 = vst [vmem:[%s176_s4 + $0x20] sm:$0xff] %v213_v4   ;;  %218 = vst [vmem:[%s176_s4 + $0x28] sm:$0xff] %v217_v5   ;;  %v225_v7 = vld [vmem:[%s6665_s10 + $0x38] sm:$0xff]   ;;  %v229_v8 = vld [vmem:[%s6665_s10 + $0x80] sm:$0xff]  }
  0x32   : > { %222 = vst [vmem:[%s176_s4 + $0x30] sm:$0xff] %v221_v6   ;;  %226 = vst [vmem:[%s176_s4 + $0x38] sm:$0xff] %v225_v7   ;;  %v233_v9 = vld [vmem:[%s6665_s10 + $0x88] sm:$0xff]   ;;  %v237_v10 = vld [vmem:[%s6665_s10 + $0x90] sm:$0xff]  }
  0x33   : > { %230 = vst [vmem:[%s176_s4 + $0x40] sm:$0xff] %v229_v8   ;;  %v241_v11 = vld [vmem:[%s6665_s10 + $0x98] sm:$0xff]   ;;  %234 = vst [vmem:[%s176_s4 + $0x48] sm:$0xff] %v233_v9   ;;  %v245_v12 = vld [vmem:[%s6665_s10 + $0xa0] sm:$0xff]  }
  0x34   : > { %238 = vst [vmem:[%s176_s4 + $0x50] sm:$0xff] %v237_v10   ;;  %242 = vst [vmem:[%s176_s4 + $0x58] sm:$0xff] %v241_v11   ;;  %v249_v13 = vld [vmem:[%s6665_s10 + $0xa8] sm:$0xff]   ;;  %v253_v14 = vld [vmem:[%s6665_s10 + $0xb0] sm:$0xff]  }
  0x35   : > { %246 = vst [vmem:[%s176_s4 + $0x60] sm:$0xff] %v245_v12   ;;  %250 = vst [vmem:[%s176_s4 + $0x68] sm:$0xff] %v249_v13   ;;  %v257_v15 = vld [vmem:[%s6665_s10 + $0xb8] sm:$0xff]  }
  0x36   : > { %254 = vst [vmem:[%s176_s4 + $0x70] sm:$0xff] %v253_v14   ;;  %258 = vst [vmem:[%s176_s4 + $0x78] sm:$0xff] %v257_v15  }
  0x37 PF: > { %347 = sbr.rel (!%p6620_p9) target bundleno = 70 (0x46), region = 61  ;;  %s349_s11 = sand.u32 (%p6620_p9), 1, %s6462_s14  }
  0x38   : > { %s5273_s24 = sshll.u32 (%p6620_p9), %s6626_s7, 4  ;;  %s5272_s25 = sshll.u32 (%p6620_p9), %s349_s11, 7 }
  0x39   : > { %s5274_s29 = sshll.u32 (%p6620_p9), %s6494_s22, 6  ;;  %s351_s10 = scalar_lea.vmem (%p6620_p9), [#allocation6], %s5272_s25 }
  0x3a   : > { %s356_s30 = sadd.s32 (%p6620_p9), %s5274_s29, %s5273_s24 }
  0x3b   : > { %s5275_s5 = sshll.u32 (%p6620_p9), %s356_s30, 2 }
  0x3c   : > { %s6691_s9 = scalar_lea.vmem (%p6620_p9), %s8874_s1, %s5275_s5 }
  0x3d   : > { %v374_v16 = vld [vmem:[%s6691_s9] sm:$0xff] (%p6620_p9)   ;;  %v378_v17 = vld [vmem:[%s6691_s9 + $0x8] sm:$0xff] (%p6620_p9)   ;;  %v382_v18 = vld [vmem:[%s6691_s9 + $0x10] sm:$0xff] (%p6620_p9)  }
  0x3e   : > { %375 = vst [vmem:[%s351_s10] sm:$0xff] %v374_v16   ;;  %379 = vst [vmem:[%s351_s10 + $0x8] sm:$0xff] %v378_v17   ;;  %v386_v19 = vld [vmem:[%s6691_s9 + $0x18] sm:$0xff]   ;;  %v390_v20 = vld [vmem:[%s6691_s9 + $0x20] sm:$0xff]  }
  0x3f   : > { %383 = vst [vmem:[%s351_s10 + $0x10] sm:$0xff] %v382_v18   ;;  %v394_v21 = vld [vmem:[%s6691_s9 + $0x28] sm:$0xff]   ;;  %387 = vst [vmem:[%s351_s10 + $0x18] sm:$0xff] %v386_v19   ;;  %v398_v22 = vld [vmem:[%s6691_s9 + $0x30] sm:$0xff]  }
  0x40   : > { %391 = vst [vmem:[%s351_s10 + $0x20] sm:$0xff] %v390_v20   ;;  %395 = vst [vmem:[%s351_s10 + $0x28] sm:$0xff] %v394_v21   ;;  %v402_v23 = vld [vmem:[%s6691_s9 + $0x38] sm:$0xff]   ;;  %v406_v24 = vld [vmem:[%s6691_s9 + $0x80] sm:$0xff]  }
  0x41   : > { %399 = vst [vmem:[%s351_s10 + $0x30] sm:$0xff] %v398_v22   ;;  %403 = vst [vmem:[%s351_s10 + $0x38] sm:$0xff] %v402_v23   ;;  %v410_v25 = vld [vmem:[%s6691_s9 + $0x88] sm:$0xff]   ;;  %v414_v26 = vld [vmem:[%s6691_s9 + $0x90] sm:$0xff]  }
  0x42   : > { %407 = vst [vmem:[%s351_s10 + $0x40] sm:$0xff] %v406_v24   ;;  %v418_v27 = vld [vmem:[%s6691_s9 + $0x98] sm:$0xff]   ;;  %411 = vst [vmem:[%s351_s10 + $0x48] sm:$0xff] %v410_v25   ;;  %v422_v28 = vld [vmem:[%s6691_s9 + $0xa0] sm:$0xff]  }
  0x43   : > { %415 = vst [vmem:[%s351_s10 + $0x50] sm:$0xff] %v414_v26   ;;  %419 = vst [vmem:[%s351_s10 + $0x58] sm:$0xff] %v418_v27   ;;  %v426_v29 = vld [vmem:[%s6691_s9 + $0xa8] sm:$0xff]   ;;  %v430_v30 = vld [vmem:[%s6691_s9 + $0xb0] sm:$0xff]  }
  0x44   : > { %423 = vst [vmem:[%s351_s10 + $0x60] sm:$0xff] %v422_v28   ;;  %427 = vst [vmem:[%s351_s10 + $0x68] sm:$0xff] %v426_v29   ;;  %v434_v31 = vld [vmem:[%s6691_s9 + $0xb8] sm:$0xff]  }
  0x45   : > { %431 = vst [vmem:[%s351_s10 + $0x70] sm:$0xff] %v430_v30   ;;  %435 = vst [vmem:[%s351_s10 + $0x78] sm:$0xff] %v434_v31  }
  0x46 PF: > { %524 = sbr.rel (!%p6620_p9) target bundleno = 85 (0x55), region = 102  ;;  %s526_s4 = sand.u32 (%p6620_p9), 1, %s6462_s14  }
  0x47   : > { %s5277_s11 = sshll.u32 (%p6620_p9), %s6626_s7, 4  ;;  %s5276_s24 = sshll.u32 (%p6620_p9), %s526_s4, 7 }
  0x48   : > { %s5278_s25 = sshll.u32 (%p6620_p9), %s6494_s22, 6  ;;  %s528_s6 = scalar_lea.vmem (%p6620_p9), [#allocation7], %s5276_s24 }
  0x49   : > { %s533_s29 = sadd.s32 (%p6620_p9), %s5278_s25, %s5277_s11 }
  0x4a   : > { %s5279_s30 = sshll.u32 (%p6620_p9), %s533_s29, 2 }
  0x4b   : > { %s6717_s18 = scalar_lea.vmem (%p6620_p9), %s8875_s2, %s5279_s30 }
  0x4c   : > { %v551_v32 = vld [vmem:[%s6717_s18] sm:$0xff] (%p6620_p9)   ;;  %v555_v33 = vld [vmem:[%s6717_s18 + $0x8] sm:$0xff] (%p6620_p9)   ;;  %v559_v34 = vld [vmem:[%s6717_s18 + $0x10] sm:$0xff] (%p6620_p9)  }
  0x4d   : > { %552 = vst [vmem:[%s528_s6] sm:$0xff] %v551_v32   ;;  %556 = vst [vmem:[%s528_s6 + $0x8] sm:$0xff] %v555_v33   ;;  %v563_v35 = vld [vmem:[%s6717_s18 + $0x18] sm:$0xff]   ;;  %v567_v36 = vld [vmem:[%s6717_s18 + $0x20] sm:$0xff]  }
  0x4e   : > { %560 = vst [vmem:[%s528_s6 + $0x10] sm:$0xff] %v559_v34   ;;  %v571_v37 = vld [vmem:[%s6717_s18 + $0x28] sm:$0xff]   ;;  %564 = vst [vmem:[%s528_s6 + $0x18] sm:$0xff] %v563_v35   ;;  %v575_v38 = vld [vmem:[%s6717_s18 + $0x30] sm:$0xff]  }
  0x4f   : > { %568 = vst [vmem:[%s528_s6 + $0x20] sm:$0xff] %v567_v36   ;;  %572 = vst [vmem:[%s528_s6 + $0x28] sm:$0xff] %v571_v37   ;;  %v579_v39 = vld [vmem:[%s6717_s18 + $0x38] sm:$0xff]   ;;  %v583_v40 = vld [vmem:[%s6717_s18 + $0x80] sm:$0xff]  }
  0x50   : > { %576 = vst [vmem:[%s528_s6 + $0x30] sm:$0xff] %v575_v38   ;;  %580 = vst [vmem:[%s528_s6 + $0x38] sm:$0xff] %v579_v39   ;;  %v587_v41 = vld [vmem:[%s6717_s18 + $0x88] sm:$0xff]   ;;  %v591_v42 = vld [vmem:[%s6717_s18 + $0x90] sm:$0xff]  }
  0x51   : > { %584 = vst [vmem:[%s528_s6 + $0x40] sm:$0xff] %v583_v40   ;;  %v595_v43 = vld [vmem:[%s6717_s18 + $0x98] sm:$0xff]   ;;  %588 = vst [vmem:[%s528_s6 + $0x48] sm:$0xff] %v587_v41   ;;  %v599_v44 = vld [vmem:[%s6717_s18 + $0xa0] sm:$0xff]  }
  0x52   : > { %592 = vst [vmem:[%s528_s6 + $0x50] sm:$0xff] %v591_v42   ;;  %596 = vst [vmem:[%s528_s6 + $0x58] sm:$0xff] %v595_v43   ;;  %v603_v45 = vld [vmem:[%s6717_s18 + $0xa8] sm:$0xff]   ;;  %v607_v46 = vld [vmem:[%s6717_s18 + $0xb0] sm:$0xff]  }
  0x53   : > { %600 = vst [vmem:[%s528_s6 + $0x60] sm:$0xff] %v599_v44   ;;  %604 = vst [vmem:[%s528_s6 + $0x68] sm:$0xff] %v603_v45   ;;  %v611_v47 = vld [vmem:[%s6717_s18 + $0xb8] sm:$0xff]  }
  0x54   : > { %608 = vst [vmem:[%s528_s6 + $0x70] sm:$0xff] %v607_v46   ;;  %612 = vst [vmem:[%s528_s6 + $0x78] sm:$0xff] %v611_v47  }
  0x55 PF: > { %p5280_p1 = scmp.ge.s32.totalorder %s6498_s23, 1  ;;  %p700_p5 = scmp.lt.s32.totalorder %s6498_s23, 9 }
  0x57   : > { %p701_p6 = pnand %p5280_p1, %p700_p5 }
  0x58   : > { %s707_s7 = sand.u32 (!%p701_p6), 1, %s6466_s15   ;;  %s714_s9 = sand.u32 (!%p701_p6), 1, %s6458_s13  }
  0x59   : > { %704 = sbr.rel (%p701_p6) target bundleno = 2241 (0x8c1), region = 143  ;;  %s5281_s10 = sshll.u32 (!%p701_p6), %s707_s7, 7 }
  0x5a   : > { %s5282_s4 = sshll.u32 (!%p701_p6), %s714_s9, 7  ;;  %s6741_s11 = scalar_lea.vmem (!%p701_p6), [#allocation5], %s5281_s10 }
  0x5b   : > { %s6743_s24 = scalar_lea.vmem (!%p701_p6), [#allocation6], %s5282_s4  ;;  %s6745_s25 = scalar_lea.vmem (!%p701_p6), [#allocation7], %s5282_s4 }
  0x5c   : > { %s6747_s29 = scalar_lea.vmem (!%p701_p6), [#allocation8], %s5281_s10  ;;  %p5285_p7 = scmp.ne.s32.totalorder (!%p701_p6), %s6474_s17, 0 }
  0x60   : > { %764 = sbr.rel (%p5285_p7) target bundleno = 145 (0x91), region = 159  ;;  %vm765_vm0 = vcmask (!%p5285_p7), 7168   ;;  %vm830_vm1 = vcmask (!%p5285_p7), 523264   ;;  %v6500_v48 = vmov (!%p5285_p7), -inf   ;;  %v6501_v49 = vmov (!%p5285_p7), 0.0  }
  0x61   : > { %766 = vst.msk [vmem:[#allocation2] sm:$0xff] (!%p5285_p7), %vm765_vm0, %v6500_v48  ;;  %767 = vst.msk [vmem:[#allocation2 + $0x8] sm:$0xff] (!%p5285_p7), %vm765_vm0, %v6500_v48 }
  0x62   : > { %768 = vst.msk [vmem:[#allocation2 + $0x10] sm:$0xff] (!%p5285_p7), %vm765_vm0, %v6500_v48  ;;  %769 = vst.msk [vmem:[#allocation2 + $0x18] sm:$0xff] (!%p5285_p7), %vm765_vm0, %v6500_v48 }
  0x63   : > { %770 = vst.msk [vmem:[#allocation2 + $0x20] sm:$0xff] (!%p5285_p7), %vm765_vm0, %v6500_v48  ;;  %771 = vst.msk [vmem:[#allocation2 + $0x28] sm:$0xff] (!%p5285_p7), %vm765_vm0, %v6500_v48 }
  0x64   : > { %772 = vst.msk [vmem:[#allocation2 + $0x30] sm:$0xff] (!%p5285_p7), %vm765_vm0, %v6500_v48  ;;  %773 = vst.msk [vmem:[#allocation2 + $0x38] sm:$0xff] (!%p5285_p7), %vm765_vm0, %v6500_v48 }
  0x65   : > { %774 = vst.msk [vmem:[#allocation2 + $0x40] sm:$0xff] (!%p5285_p7), %vm765_vm0, %v6500_v48  ;;  %775 = vst.msk [vmem:[#allocation2 + $0x48] sm:$0xff] (!%p5285_p7), %vm765_vm0, %v6500_v48 }
  0x66   : > { %776 = vst.msk [vmem:[#allocation2 + $0x50] sm:$0xff] (!%p5285_p7), %vm765_vm0, %v6500_v48  ;;  %777 = vst.msk [vmem:[#allocation2 + $0x58] sm:$0xff] (!%p5285_p7), %vm765_vm0, %v6500_v48 }
  0x67   : > { %778 = vst.msk [vmem:[#allocation2 + $0x60] sm:$0xff] %vm765_vm0, %v6500_v48  ;;  %779 = vst.msk [vmem:[#allocation2 + $0x68] sm:$0xff] %vm765_vm0, %v6500_v48 }
  0x68   : > { %780 = vst.msk [vmem:[#allocation2 + $0x70] sm:$0xff] %vm765_vm0, %v6500_v48  ;;  %781 = vst.msk [vmem:[#allocation2 + $0x78] sm:$0xff] %vm765_vm0, %v6500_v48 }
  0x69   : > { %782 = vst.msk [vmem:[#allocation2 + $0x80] sm:$0xff] %vm765_vm0, %v6500_v48  ;;  %783 = vst.msk [vmem:[#allocation2 + $0x88] sm:$0xff] %vm765_vm0, %v6500_v48 }
  0x6a   : > { %784 = vst.msk [vmem:[#allocation2 + $0x90] sm:$0xff] %vm765_vm0, %v6500_v48  ;;  %785 = vst.msk [vmem:[#allocation2 + $0x98] sm:$0xff] %vm765_vm0, %v6500_v48 }
  0x6b   : > { %786 = vst.msk [vmem:[#allocation2 + $0xa0] sm:$0xff] %vm765_vm0, %v6500_v48  ;;  %787 = vst.msk [vmem:[#allocation2 + $0xa8] sm:$0xff] %vm765_vm0, %v6500_v48 }
  0x6c   : > { %788 = vst.msk [vmem:[#allocation2 + $0xb0] sm:$0xff] %vm765_vm0, %v6500_v48  ;;  %789 = vst.msk [vmem:[#allocation2 + $0xb8] sm:$0xff] %vm765_vm0, %v6500_v48 }
  0x6d   : > { %790 = vst.msk [vmem:[#allocation2 + $0xc0] sm:$0xff] %vm765_vm0, %v6500_v48  ;;  %791 = vst.msk [vmem:[#allocation2 + $0xc8] sm:$0xff] %vm765_vm0, %v6500_v48 }
  0x6e   : > { %792 = vst.msk [vmem:[#allocation2 + $0xd0] sm:$0xff] %vm765_vm0, %v6500_v48  ;;  %793 = vst.msk [vmem:[#allocation2 + $0xd8] sm:$0xff] %vm765_vm0, %v6500_v48 }
  0x6f   : > { %794 = vst.msk [vmem:[#allocation2 + $0xe0] sm:$0xff] %vm765_vm0, %v6500_v48  ;;  %795 = vst.msk [vmem:[#allocation2 + $0xe8] sm:$0xff] %vm765_vm0, %v6500_v48 }
  0x70   : > { %796 = vst.msk [vmem:[#allocation2 + $0xf0] sm:$0xff] %vm765_vm0, %v6500_v48  ;;  %797 = vst.msk [vmem:[#allocation2 + $0xf8] sm:$0xff] %vm765_vm0, %v6500_v48 }
  0x71   : > { %798 = vst.msk [vmem:[#allocation3] sm:$0xff] %vm765_vm0, %v6501_v49  ;;  %799 = vst.msk [vmem:[#allocation3 + $0x8] sm:$0xff] %vm765_vm0, %v6501_v49 }
  0x72   : > { %800 = vst.msk [vmem:[#allocation3 + $0x10] sm:$0xff] %vm765_vm0, %v6501_v49  ;;  %801 = vst.msk [vmem:[#allocation3 + $0x18] sm:$0xff] %vm765_vm0, %v6501_v49 }
  0x73   : > { %802 = vst.msk [vmem:[#allocation3 + $0x20] sm:$0xff] %vm765_vm0, %v6501_v49  ;;  %803 = vst.msk [vmem:[#allocation3 + $0x28] sm:$0xff] %vm765_vm0, %v6501_v49 }
  0x74   : > { %804 = vst.msk [vmem:[#allocation3 + $0x30] sm:$0xff] %vm765_vm0, %v6501_v49  ;;  %805 = vst.msk [vmem:[#allocation3 + $0x38] sm:$0xff] %vm765_vm0, %v6501_v49 }
  0x75   : > { %806 = vst.msk [vmem:[#allocation3 + $0x40] sm:$0xff] %vm765_vm0, %v6501_v49  ;;  %807 = vst.msk [vmem:[#allocation3 + $0x48] sm:$0xff] %vm765_vm0, %v6501_v49 }
  0x76   : > { %808 = vst.msk [vmem:[#allocation3 + $0x50] sm:$0xff] %vm765_vm0, %v6501_v49  ;;  %809 = vst.msk [vmem:[#allocation3 + $0x58] sm:$0xff] %vm765_vm0, %v6501_v49 }
  0x77   : > { %810 = vst.msk [vmem:[#allocation3 + $0x60] sm:$0xff] %vm765_vm0, %v6501_v49  ;;  %811 = vst.msk [vmem:[#allocation3 + $0x68] sm:$0xff] %vm765_vm0, %v6501_v49 }
  0x78   : > { %812 = vst.msk [vmem:[#allocation3 + $0x70] sm:$0xff] %vm765_vm0, %v6501_v49  ;;  %813 = vst.msk [vmem:[#allocation3 + $0x78] sm:$0xff] %vm765_vm0, %v6501_v49 }
  0x79   : > { %814 = vst.msk [vmem:[#allocation3 + $0x80] sm:$0xff] %vm765_vm0, %v6501_v49  ;;  %815 = vst.msk [vmem:[#allocation3 + $0x88] sm:$0xff] %vm765_vm0, %v6501_v49 }
  0x7a   : > { %816 = vst.msk [vmem:[#allocation3 + $0x90] sm:$0xff] %vm765_vm0, %v6501_v49  ;;  %817 = vst.msk [vmem:[#allocation3 + $0x98] sm:$0xff] %vm765_vm0, %v6501_v49 }
  0x7b   : > { %818 = vst.msk [vmem:[#allocation3 + $0xa0] sm:$0xff] %vm765_vm0, %v6501_v49  ;;  %819 = vst.msk [vmem:[#allocation3 + $0xa8] sm:$0xff] %vm765_vm0, %v6501_v49 }
  0x7c   : > { %820 = vst.msk [vmem:[#allocation3 + $0xb0] sm:$0xff] %vm765_vm0, %v6501_v49  ;;  %821 = vst.msk [vmem:[#allocation3 + $0xb8] sm:$0xff] %vm765_vm0, %v6501_v49 }
  0x7d   : > { %822 = vst.msk [vmem:[#allocation3 + $0xc0] sm:$0xff] %vm765_vm0, %v6501_v49  ;;  %823 = vst.msk [vmem:[#allocation3 + $0xc8] sm:$0xff] %vm765_vm0, %v6501_v49 }
  0x7e   : > { %824 = vst.msk [vmem:[#allocation3 + $0xd0] sm:$0xff] %vm765_vm0, %v6501_v49  ;;  %825 = vst.msk [vmem:[#allocation3 + $0xd8] sm:$0xff] %vm765_vm0, %v6501_v49 }
  0x7f   : > { %826 = vst.msk [vmem:[#allocation3 + $0xe0] sm:$0xff] %vm765_vm0, %v6501_v49  ;;  %827 = vst.msk [vmem:[#allocation3 + $0xe8] sm:$0xff] %vm765_vm0, %v6501_v49 }
  0x80   : > { %828 = vst.msk [vmem:[#allocation3 + $0xf0] sm:$0xff] %vm765_vm0, %v6501_v49  ;;  %829 = vst.msk [vmem:[#allocation3 + $0xf8] sm:$0xff] %vm765_vm0, %v6501_v49 }
  0x81   : > { %831 = vst.msk [vmem:[#allocation4] sm:$0xff] %vm830_vm1, %v6501_v49  ;;  %832 = vst.msk [vmem:[#allocation4 + $0x8] sm:$0xff] %vm830_vm1, %v6501_v49 }
  0x82   : > { %833 = vst.msk [vmem:[#allocation4 + $0x10] sm:$0xff] %vm830_vm1, %v6501_v49  ;;  %834 = vst.msk [vmem:[#allocation4 + $0x18] sm:$0xff] %vm830_vm1, %v6501_v49 }
  0x83   : > { %835 = vst.msk [vmem:[#allocation4 + $0x20] sm:$0xff] %vm830_vm1, %v6501_v49  ;;  %836 = vst.msk [vmem:[#allocation4 + $0x28] sm:$0xff] %vm830_vm1, %v6501_v49 }
  0x84   : > { %837 = vst.msk [vmem:[#allocation4 + $0x30] sm:$0xff] %vm830_vm1, %v6501_v49  ;;  %838 = vst.msk [vmem:[#allocation4 + $0x38] sm:$0xff] %vm830_vm1, %v6501_v49 }
  0x85   : > { %839 = vst.msk [vmem:[#allocation4 + $0x40] sm:$0xff] %vm830_vm1, %v6501_v49  ;;  %840 = vst.msk [vmem:[#allocation4 + $0x48] sm:$0xff] %vm830_vm1, %v6501_v49 }
  0x86   : > { %841 = vst.msk [vmem:[#allocation4 + $0x50] sm:$0xff] %vm830_vm1, %v6501_v49  ;;  %842 = vst.msk [vmem:[#allocation4 + $0x58] sm:$0xff] %vm830_vm1, %v6501_v49 }
  0x87   : > { %843 = vst.msk [vmem:[#allocation4 + $0x60] sm:$0xff] %vm830_vm1, %v6501_v49  ;;  %844 = vst.msk [vmem:[#allocation4 + $0x68] sm:$0xff] %vm830_vm1, %v6501_v49 }
  0x88   : > { %845 = vst.msk [vmem:[#allocation4 + $0x70] sm:$0xff] %vm830_vm1, %v6501_v49  ;;  %846 = vst.msk [vmem:[#allocation4 + $0x78] sm:$0xff] %vm830_vm1, %v6501_v49 }
  0x89   : > { %847 = vst.msk [vmem:[#allocation4 + $0x80] sm:$0xff] %vm830_vm1, %v6501_v49  ;;  %848 = vst.msk [vmem:[#allocation4 + $0x88] sm:$0xff] %vm830_vm1, %v6501_v49 }
  0x8a   : > { %849 = vst.msk [vmem:[#allocation4 + $0x90] sm:$0xff] %vm830_vm1, %v6501_v49  ;;  %850 = vst.msk [vmem:[#allocation4 + $0x98] sm:$0xff] %vm830_vm1, %v6501_v49 }
  0x8b   : > { %851 = vst.msk [vmem:[#allocation4 + $0xa0] sm:$0xff] %vm830_vm1, %v6501_v49  ;;  %852 = vst.msk [vmem:[#allocation4 + $0xa8] sm:$0xff] %vm830_vm1, %v6501_v49 }
  0x8c   : > { %853 = vst.msk [vmem:[#allocation4 + $0xb0] sm:$0xff] %vm830_vm1, %v6501_v49  ;;  %854 = vst.msk [vmem:[#allocation4 + $0xb8] sm:$0xff] %vm830_vm1, %v6501_v49 }
  0x8d   : > { %855 = vst.msk [vmem:[#allocation4 + $0xc0] sm:$0xff] %vm830_vm1, %v6501_v49  ;;  %856 = vst.msk [vmem:[#allocation4 + $0xc8] sm:$0xff] %vm830_vm1, %v6501_v49 }
  0x8e   : > { %857 = vst.msk [vmem:[#allocation4 + $0xd0] sm:$0xff] %vm830_vm1, %v6501_v49  ;;  %858 = vst.msk [vmem:[#allocation4 + $0xd8] sm:$0xff] %vm830_vm1, %v6501_v49 }
  0x8f   : > { %859 = vst.msk [vmem:[#allocation4 + $0xe0] sm:$0xff] %vm830_vm1, %v6501_v49  ;;  %860 = vst.msk [vmem:[#allocation4 + $0xe8] sm:$0xff] %vm830_vm1, %v6501_v49 }
  0x90   : > { %861 = vst.msk [vmem:[#allocation4 + $0xf0] sm:$0xff] %vm830_vm1, %v6501_v49  ;;  %862 = vst.msk [vmem:[#allocation4 + $0xf8] sm:$0xff] %vm830_vm1, %v6501_v49 }
  0x91 PF: > { %s8962_s13 = sld [smem:[#allocation11_spill]] }
  0x97   : > { %p5286_p8 = scmp.ge.s32.totalorder %s6474_s17, %s8962_s13 }
  0x99   : > { %866 = sbr.rel (%p5286_p8) target bundleno = 1023 (0x3ff), region = 163 }
  0xa0   : > { %v5952_v50 = vld [vmem:[%s6743_s24] sm:$0xff]   ;;  %vm1043_vm2 = vcmask 523264   ;;  %v5954_v53 = vld [vmem:[%s6743_s24 + $0x8] sm:$0xff]   ;;  %v5956_v57 = vld [vmem:[%s6743_s24 + $0x10] sm:$0xff]   ;;  %vm2086_vm3 = vcmask 7168  }
  0xa1   : > { %v5953_v51 = vld [vmem:[%s6743_s24 + $0x40] sm:$0xff]   ;;  %5807 = vmatprep.subr.msk.bf16.mxu0 %vm1043_vm2, %v5952_v50  ;;  %v1069_v52 = vsel %vm1043_vm2, %v5952_v50, 0  ;;  %v5955_v55 = vld [vmem:[%s6743_s24 + $0x48] sm:$0xff]   ;;  %v1072_v56 = vsel %vm1043_vm2, %v5954_v53, 0  ;;  %v5957_v59 = vld [vmem:[%s6743_s24 + $0x50] sm:$0xff]   ;;  %v1075_v62 = vsel %vm1043_vm2, %v5956_v57, 0 }
  0xa2   : > { %5815 = vmatprep.subr.msk.bf16.mxu1 %vm1043_vm2, %v5953_v51  ;;  %5552 = vmatpush3.bf16.xpose.msra.mxu0 %v1069_v52  ;;  %v1294_v54 = vsel %vm1043_vm2, %v5953_v51, 0  ;;  %v1297_v58 = vsel %vm1043_vm2, %v5955_v55, 0  ;;  %v5958_v60 = vld [vmem:[%s6743_s24 + $0x18] sm:$0xff]   ;;  %v5968_v63 = vld [vmem:[%s6741_s11] sm:$0xff]   ;;  %v1300_v0 = vsel %vm1043_vm2, %v5957_v59, 0  ;;  %v5962_v6 = vld [vmem:[%s6743_s24 + $0x28] sm:$0xff]  }
  0xa3   : > { %5584 = vmatpush3.bf16.xpose.msra.mxu1 %v1294_v54  ;;  %5808 = vmatprep.subr.msk.bf16.mxu0 %vm1043_vm2, %v5954_v53  ;;  %v5959_v61 = vld [vmem:[%s6743_s24 + $0x58] sm:$0xff]   ;;  %v5969_v1 = vld [vmem:[%s6741_s11 + $0x40] sm:$0xff]   ;;  %v1078_v2 = vsel %vm1043_vm2, %v5958_v60, 0  ;;  %v5963_v7 = vld [vmem:[%s6743_s24 + $0x68] sm:$0xff]   ;;  %v1084_v10 = vsel %vm1043_vm2, %v5962_v6, 0 }
  0xa4   : > { %5816 = vmatprep.subr.msk.bf16.mxu1 %vm1043_vm2, %v5955_v55  ;;  %5567 = vmatprep.mubr.msk.bf16.mxu0 %vm1043_vm2, %v5968_v63  ;;  %v5960_v3 = vld [vmem:[%s6743_s24 + $0x20] sm:$0xff]   ;;  %v1303_v4 = vsel %vm1043_vm2, %v5959_v61, 0  ;;  %v1309_v11 = vsel %vm1043_vm2, %v5963_v7, 0  ;;  %v5964_v12 = vld [vmem:[%s6743_s24 + $0x30] sm:$0xff]   ;;  %v5966_v15 = vld [vmem:[%s6743_s24 + $0x38] sm:$0xff]  }
  0xa5   : > { %5599 = vmatprep.mubr.msk.bf16.mxu1 %vm1043_vm2, %v5969_v1  ;;  %v5961_v5 = vld [vmem:[%s6743_s24 + $0x60] sm:$0xff]   ;;  %v1081_v8 = vsel %vm1043_vm2, %v5960_v3, 0  ;;  %v5965_v13 = vld [vmem:[%s6743_s24 + $0x70] sm:$0xff]   ;;  %v1087_v14 = vsel %vm1043_vm2, %v5964_v12, 0  ;;  %v5967_v17 = vld [vmem:[%s6743_s24 + $0x78] sm:$0xff]   ;;  %v1090_v18 = vsel %vm1043_vm2, %v5966_v15, 0 }
  0xa6   : > { %v1306_v9 = vsel %vm1043_vm2, %v5961_v5, 0  ;;  %v1312_v16 = vsel %vm1043_vm2, %v5965_v13, 0  ;;  %v1315_v19 = vsel %vm1043_vm2, %v5967_v17, 0  ;;  %v5970_v20 = vld [vmem:[%s6741_s11 + $0x8] sm:$0xff]   ;;  %v5972_v22 = vld [vmem:[%s6741_s11 + $0x10] sm:$0xff]   ;;  %v5973_v24 = vld [vmem:[%s6741_s11 + $0x18] sm:$0xff]  }
  0xa7   : > { %v5971_v21 = vld [vmem:[%s6741_s11 + $0x48] sm:$0xff]   ;;  %v5974_v23 = vld [vmem:[%s6741_s11 + $0x50] sm:$0xff]   ;;  %v5975_v25 = vld [vmem:[%s6741_s11 + $0x58] sm:$0xff]  }
  0xa8   : > { %v5976_v26 = vld [vmem:[%s6741_s11 + $0x20] sm:$0xff]   ;;  %v5977_v28 = vld [vmem:[%s6741_s11 + $0x28] sm:$0xff]   ;;  %v5980_v30 = vld [vmem:[%s6741_s11 + $0x30] sm:$0xff]  }
  0xa9   : > { %v5978_v27 = vld [vmem:[%s6741_s11 + $0x60] sm:$0xff]   ;;  %v5979_v29 = vld [vmem:[%s6741_s11 + $0x68] sm:$0xff]   ;;  %v5982_v31 = vld [vmem:[%s6741_s11 + $0x70] sm:$0xff]  }
  0xaa   : > { %5554 = vmatpush3.bf16.xpose.msra.mxu0 %v1072_v56  ;;  %v5981_v32 = vld [vmem:[%s6741_s11 + $0x38] sm:$0xff]  }
  0xab   : > { %5586 = vmatpush3.bf16.xpose.msra.mxu1 %v1297_v58  ;;  %5809 = vmatprep.subr.msk.bf16.mxu0 %vm1043_vm2, %v5956_v57  ;;  %v5983_v33 = vld [vmem:[%s6741_s11 + $0x78] sm:$0xff]  }
  0xac   : > { %5817 = vmatprep.subr.msk.bf16.mxu1 %vm1043_vm2, %v5957_v59 }
  0xb2   : > { %5556 = vmatpush3.bf16.xpose.msra.mxu0 %v1075_v62 }
  0xb3   : > { %5588 = vmatpush3.bf16.xpose.msra.mxu1 %v1300_v0  ;;  %5810 = vmatprep.subr.msk.bf16.mxu0 %vm1043_vm2, %v5958_v60 }
  0xb4   : > { %5818 = vmatprep.subr.msk.bf16.mxu1 %vm1043_vm2, %v5959_v61 }
  0xba   : > { %5558 = vmatpush3.bf16.xpose.msra.mxu0 %v1078_v2 }
  0xbb   : > { %5590 = vmatpush3.bf16.xpose.msra.mxu1 %v1303_v4  ;;  %5811 = vmatprep.subr.msk.bf16.mxu0 %vm1043_vm2, %v5960_v3  ;;  %v6502_v4 = vmov 0  }
  0xbc   : > { %5819 = vmatprep.subr.msk.bf16.mxu1 %vm1043_vm2, %v5961_v5  ;;  %5951 = vset.pattern.permute.xlu0 %v6502_v4 }
  0xbd   : > { %5950 = vset.pattern.permute.xlu1 %v6502_v4  ;;  %v7189_v4 = vld [vmem:[#allocation2 + $0x28] sm:$0xff] }
  0xc2   : > { %5560 = vmatpush3.bf16.xpose.msra.mxu0 %v1081_v8 }
  0xc3   : > { %5592 = vmatpush3.bf16.xpose.msra.mxu1 %v1306_v9  ;;  %5812 = vmatprep.subr.msk.bf16.mxu0 %vm1043_vm2, %v5962_v6 }
  0xc4   : > { %5820 = vmatprep.subr.msk.bf16.mxu1 %vm1043_vm2, %v5963_v7 }
  0xca   : > { %5562 = vmatpush3.bf16.xpose.msra.mxu0 %v1084_v10 }
  0xcb   : > { %5594 = vmatpush3.bf16.xpose.msra.mxu1 %v1309_v11  ;;  %5813 = vmatprep.subr.msk.bf16.mxu0 %vm1043_vm2, %v5964_v12 }
  0xcc   : > { %5821 = vmatprep.subr.msk.bf16.mxu1 %vm1043_vm2, %v5965_v13 }
  0xd2   : > { %5564 = vmatpush3.bf16.xpose.msra.mxu0 %v1087_v14 }
  0xd3   : > { %5596 = vmatpush3.bf16.xpose.msra.mxu1 %v1312_v16  ;;  %5814 = vmatprep.subr.msk.bf16.mxu0 %vm1043_vm2, %v5966_v15 }
  0xd4   : > { %5822 = vmatprep.subr.msk.bf16.mxu1 %vm1043_vm2, %v5967_v17 }
  0xda   : > { %5566 = vmatpush3.bf16.xpose.msra.mxu0 %v1090_v18 }
  0xdb   : > { %5598 = vmatpush3.bf16.xpose.msra.mxu1 %v1315_v19 }
  0xe1   : > { %5568 = vmatmul.mubr.msk.bf16.vlgmr.msra.gmra.mrb[0].mxu0 %vm1043_vm2, %v5970_v20 }
  0xe2   : > { %5600 = vmatmul.mubr.msk.bf16.vlgmr.msra.gmra.mrb[0].mxu1 %vm1043_vm2, %v5971_v21  ;;  %5571 = vmatprep.mubr.msk.bf16.mxu0 %vm1043_vm2, %v5972_v22 }
  0xe3   : > { %5603 = vmatprep.mubr.msk.bf16.mxu1 %vm1043_vm2, %v5974_v23 }
  0xe9   : > { %5572 = vmatmul.mubr.msk.bf16.gmra.mrb[4].mxu0 %vm1043_vm2, %v5973_v24 }
  0xea   : > { %5604 = vmatmul.mubr.msk.bf16.gmra.mrb[4].mxu1 %vm1043_vm2, %v5975_v25  ;;  %5575 = vmatprep.mubr.msk.bf16.mxu0 %vm1043_vm2, %v5976_v26 }
  0xeb   : > { %5607 = vmatprep.mubr.msk.bf16.mxu1 %vm1043_vm2, %v5978_v27 }
  0xf1   : > { %5576 = vmatmul.mubr.msk.bf16.gmra.mrb[8].mxu0 %vm1043_vm2, %v5977_v28 }
  0xf2   : > { %5608 = vmatmul.mubr.msk.bf16.gmra.mrb[8].mxu1 %vm1043_vm2, %v5979_v29  ;;  %5579 = vmatprep.mubr.msk.bf16.mxu0 %vm1043_vm2, %v5980_v30 }
  0xf3   : > { %5611 = vmatprep.mubr.msk.bf16.mxu1 %vm1043_vm2, %v5982_v31 }
  0xf9   : > { %5580 = vmatmul.mubr.msk.bf16.gmra.mrb[12].mxu0 %vm1043_vm2, %v5981_v32 }
  0xfa   : > { %5612 = vmatmul.mubr.msk.bf16.gmra.mrb[12].mxu1 %vm1043_vm2, %v5983_v33 }
 0x1b4   : > { %v5569_v34 = vpop.f32.mrb[0].mxu0 }
 0x1b5   : > { %v6992_v35 = vmul.f32 0.125, %v5569_v34  ;;  %v5601_v36 = vpop.f32.mrb[0].mxu1  ;;  %v1126_v37 = vpop.f32.mrb[1].mxu0 }
 0x1b6   : > { %v6994_v38 = vmul.f32 0.125, %v5601_v36  ;;  %v1351_v39 = vpop.f32.mrb[1].mxu1  ;;  %v5570_v40 = vpop.f32.mrb[2].mxu0  ;;  %v6999_v44 = vmul.f32 0.125, %v1126_v37  ;;  %v7088_v36 = vld [vmem:[#allocation2 + $0x10] sm:$0xff] }
 0x1b7   : > { %8963 = vst [vmem:[#allocation15_spill] sm:$0xff] %v6992_v35  ;;  %v6996_v41 = vmul.f32 0.125, %v5570_v40  ;;  %v5602_v42 = vpop.f32.mrb[2].mxu1  ;;  %1482 = vmax.xlane.f32.xlu1 %v6992_v35  ;;  %v1129_v43 = vpop.f32.mrb[3].mxu0  ;;  %v7006_v50 = vmul.f32 0.125, %v1351_v39  ;;  %v7090_v37 = vld [vmem:[#allocation2 + $0x90] sm:$0xff] }
 0x1b8   : > { %8964 = vst [vmem:[#allocation16_spill] sm:$0xff] %v6994_v38  ;;  %8966 = vst [vmem:[#allocation18_spill] sm:$0xff] %v6999_v44  ;;  %1514 = vmax.xlane.f32.xlu0 %v6994_v38  ;;  %v1354_v45 = vpop.f32.mrb[3].mxu1  ;;  %v7004_v47 = vmul.f32 0.125, %v5602_v42  ;;  %v7012_v57 = vmul.f32 0.125, %v1129_v43  ;;  %v7360_v35 = vld [vmem:[#allocation2 + $0xe8] sm:$0xff] }
 0x1b9   : > { %8965 = vst [vmem:[#allocation17_spill] sm:$0xff] %v6996_v41  ;;  %8968 = vst [vmem:[#allocation20_spill] sm:$0xff] %v7006_v50  ;;  %v7010_v56 = vmul.f32 0.125, %v1354_v45  ;;  %v7098_v45 = vld [vmem:[#allocation2 + $0x18] sm:$0xff] }
 0x1ba   : > { %8967 = vst [vmem:[#allocation19_spill] sm:$0xff] %v7004_v47  ;;  %8970 = vst [vmem:[#allocation22_spill] sm:$0xff] %v7012_v57 }
 0x1bb   : > { %1484 = vmax.xlane.f32.xlu1 %v6996_v41  ;;  %8969 = vst [vmem:[#allocation21_spill] sm:$0xff] %v7010_v56  ;;  %v7344_v41 = vld [vmem:[#allocation2 + $0x60] sm:$0xff] }
 0x1bc   : > { %1478 = vmax.xlane.f32.xlu0 %v6999_v44  ;;  %v5573_v46 = vpop.f32.mrb[4].mxu0  ;;  %8998 = vst [vmem:[#allocation50_spill] sm:$0xff] %v7344_v41  ;;  %v7364_v44 = vld [vmem:[#allocation2 + $0xe0] sm:$0xff] }
 0x1bd   : > { %v1142_v48 = vpop.f32.mrb[5].mxu0  ;;  %v5605_v49 = vpop.f32.mrb[4].mxu1  ;;  %v7017_v59 = vmul.f32 0.125, %v5573_v46  ;;  %v5991_v46 = vld [vmem:[%s6745_s25 + $0x20] sm:$0xff]  }
 0x1be   : > { %v5574_v51 = vpop.f32.mrb[6].mxu0  ;;  %v1367_v52 = vpop.f32.mrb[5].mxu1  ;;  %v7023_v5 = vmul.f32 0.125, %v5605_v49  ;;  %v7029_v8 = vmul.f32 0.125, %v1142_v48  ;;  %v7105_v48 = vld [vmem:[#allocation2] sm:$0xff] }
 0x1bf   : > { %1516 = vmax.xlane.f32.xlu1 %v7004_v47  ;;  %v5606_v53 = vpop.f32.mrb[6].mxu1  ;;  %v1145_v54 = vpop.f32.mrb[7].mxu0  ;;  %v7015_v58 = vmul.f32 0.125, %v5574_v51  ;;  %8972 = vst [vmem:[#allocation24_spill] sm:$0xff] %v7017_v59  ;;  %v7035_v17 = vmul.f32 0.125, %v1367_v52  ;;  %v7338_v47 = vld [vmem:[#allocation2 + $0x68] sm:$0xff] }
 0x1c0   : > { %1510 = vmax.xlane.f32.xlu0 %v7006_v50  ;;  %v1370_v55 = vpop.f32.mrb[7].mxu1  ;;  %v7021_v1 = vmul.f32 0.125, %v5606_v53  ;;  %8974 = vst [vmem:[#allocation26_spill] sm:$0xff] %v7023_v5  ;;  %v7027_v7 = vmul.f32 0.125, %v1145_v54  ;;  %8976 = vst [vmem:[#allocation28_spill] sm:$0xff] %v7029_v8 }
 0x1c1   : > { %8971 = vst [vmem:[#allocation23_spill] sm:$0xff] %v7015_v58  ;;  %v7033_v14 = vmul.f32 0.125, %v1370_v55  ;;  %8978 = vst [vmem:[#allocation30_spill] sm:$0xff] %v7035_v17  ;;  %v7118_v55 = vld [vmem:[#allocation2 + $0x98] sm:$0xff] }
 0x1c2   : > { %8973 = vst [vmem:[#allocation25_spill] sm:$0xff] %v7021_v1  ;;  %8975 = vst [vmem:[#allocation27_spill] sm:$0xff] %v7027_v7 }
 0x1c3   : > { %1512 = vmax.xlane.f32.xlu1 %v7010_v56  ;;  %8977 = vst [vmem:[#allocation29_spill] sm:$0xff] %v7033_v14 }
 0x1c4   : > { %1480 = vmax.xlane.f32.xlu0 %v7012_v57  ;;  %v5577_v60 = vpop.f32.mrb[8].mxu0 }
 0x1c5   : > { %v1158_v61 = vpop.f32.mrb[9].mxu0  ;;  %v5609_v62 = vpop.f32.mrb[8].mxu1  ;;  %v7042_v20 = vmul.f32 0.125, %v5577_v60  ;;  %v7122_v60 = vld [vmem:[#allocation2 + $0x80] sm:$0xff] }
 0x1c6   : > { %v5578_v63 = vpop.f32.mrb[10].mxu0  ;;  %v1383_v0 = vpop.f32.mrb[9].mxu1  ;;  %v7047_v22 = vmul.f32 0.125, %v5609_v62  ;;  %v7053_v24 = vmul.f32 0.125, %v1158_v61  ;;  %v5984_v62 = vld [vmem:[%s6745_s25] sm:$0xff]  }
 0x1c7   : > { %1492 = vmax.xlane.f32.xlu1 %v7015_v58  ;;  %v5610_v2 = vpop.f32.mrb[10].mxu1  ;;  %v1161_v3 = vpop.f32.mrb[11].mxu0  ;;  %v7039_v19 = vmul.f32 0.125, %v5578_v63  ;;  %8980 = vst [vmem:[#allocation32_spill] sm:$0xff] %v7042_v20  ;;  %v7059_v26 = vmul.f32 0.125, %v1383_v0  ;;  %5615 = vmatprep.subr.bf16.mxu0 %v5984_v62  ;;  %v7324_v58 = vld [vmem:[#allocation2 + $0xf0] sm:$0xff] }
 0x1c8   : > { %1490 = vmax.xlane.f32.xlu0 %v7017_v59  ;;  %v1386_v6 = vpop.f32.mrb[11].mxu1  ;;  %v7045_v21 = vmul.f32 0.125, %v5610_v2  ;;  %8982 = vst [vmem:[#allocation34_spill] sm:$0xff] %v7047_v22  ;;  %v7051_v23 = vmul.f32 0.125, %v1161_v3  ;;  %8984 = vst [vmem:[#allocation36_spill] sm:$0xff] %v7053_v24  ;;  %v7134_v3 = vld [vmem:[#allocation2 + $0x88] sm:$0xff]  ;;  %5616 = vmatpush3.bf16.msra.mxu0 %v5984_v62 }
 0x1c9   : > { %8979 = vst [vmem:[#allocation31_spill] sm:$0xff] %v7039_v19  ;;  %v7057_v25 = vmul.f32 0.125, %v1386_v6  ;;  %8986 = vst [vmem:[#allocation38_spill] sm:$0xff] %v7059_v26  ;;  %v7140_v6 = vld [vmem:[#allocation2 + $0x8] sm:$0xff]  ;;  %v7320_v59 = vld [vmem:[#allocation2 + $0xf8] sm:$0xff] }
 0x1ca   : > { %8981 = vst [vmem:[#allocation33_spill] sm:$0xff] %v7045_v21  ;;  %8983 = vst [vmem:[#allocation35_spill] sm:$0xff] %v7051_v23 }
 0x1cb   : > { %1524 = vmax.xlane.f32.xlu1 %v7021_v1  ;;  %8985 = vst [vmem:[#allocation37_spill] sm:$0xff] %v7057_v25  ;;  %v7284_v1 = vld [vmem:[#allocation2 + $0xc8] sm:$0xff]  ;;  %8996 = vst [vmem:[#allocation48_spill] sm:$0xff] %v7320_v59 }
 0x1cc   : > { %1522 = vmax.xlane.f32.xlu0 %v7023_v5  ;;  %v5581_v9 = vpop.f32.mrb[12].mxu0  ;;  %8997 = vst [vmem:[#allocation49_spill] sm:$0xff] %v7324_v58 }
 0x1cd   : > { %v1174_v10 = vpop.f32.mrb[13].mxu0  ;;  %v5613_v11 = vpop.f32.mrb[12].mxu1  ;;  %v7065_v28 = vmul.f32 0.125, %v5581_v9 }
 0x1ce   : > { %v5582_v12 = vpop.f32.mrb[14].mxu0  ;;  %v1399_v13 = vpop.f32.mrb[13].mxu1  ;;  %v7071_v30 = vmul.f32 0.125, %v5613_v11  ;;  %v7077_v32 = vmul.f32 0.125, %v1174_v10  ;;  %v5985_v11 = vld [vmem:[%s6745_s25 + $0x8] sm:$0xff]  }
 0x1cf   : > { %1488 = vmax.xlane.f32.xlu1 %v7027_v7  ;;  %v5614_v15 = vpop.f32.mrb[14].mxu1  ;;  %v1177_v16 = vpop.f32.mrb[15].mxu0  ;;  %v7063_v27 = vmul.f32 0.125, %v5582_v12  ;;  %8988 = vst [vmem:[#allocation40_spill] sm:$0xff] %v7065_v28  ;;  %v7083_v34 = vmul.f32 0.125, %v1399_v13  ;;  %v5986_v12 = vld [vmem:[%s6745_s25 + $0x40] sm:$0xff]   ;;  %5617 = vmatprep.subr.bf16.mxu0 %v5985_v11 }
 0x1d0   : > { %1486 = vmax.xlane.f32.xlu0 %v7029_v8  ;;  %v1402_v18 = vpop.f32.mrb[15].mxu1  ;;  %v7069_v29 = vmul.f32 0.125, %v5614_v15  ;;  %8990 = vst [vmem:[#allocation42_spill] sm:$0xff] %v7071_v30  ;;  %v7075_v31 = vmul.f32 0.125, %v1177_v16  ;;  %8992 = vst [vmem:[#allocation44_spill] sm:$0xff] %v7077_v32  ;;  %5647 = vmatprep.subr.bf16.mxu1 %v5986_v12  ;;  %v7302_v8 = vld [vmem:[#allocation2 + $0x78] sm:$0xff] }
 0x1d1   : > { %8987 = vst [vmem:[#allocation39_spill] sm:$0xff] %v7063_v27  ;;  %v7081_v33 = vmul.f32 0.125, %v1402_v18  ;;  %8994 = vst [vmem:[#allocation46_spill] sm:$0xff] %v7083_v34  ;;  %v7155_v18 = vld [vmem:[#allocation2 + $0x38] sm:$0xff]  ;;  %5618 = vmatpush3.bf16.msra.mxu0 %v5985_v11  ;;  %5648 = vmatpush3.bf16.msra.mxu1 %v5986_v12  ;;  %v7176_v11 = vld [vmem:[#allocation2 + $0xb0] sm:$0xff] }
 0x1d2   : > { %8989 = vst [vmem:[#allocation41_spill] sm:$0xff] %v7069_v29  ;;  %8991 = vst [vmem:[#allocation43_spill] sm:$0xff] %v7075_v31 }
 0x1d3   : > { %1520 = vmax.xlane.f32.xlu1 %v7033_v14  ;;  %8993 = vst [vmem:[#allocation45_spill] sm:$0xff] %v7081_v33  ;;  %v5999_v14 = vld [vmem:[%s6745_s25 + $0x78] sm:$0xff]  }
 0x1d4   : > { %1518 = vmax.xlane.f32.xlu0 %v7035_v17  ;;  %v7306_v17 = vld [vmem:[#allocation2 + $0x70] sm:$0xff] }
 0x1d5   : > { %8995 = vst [vmem:[#allocation47_spill] sm:$0xff] %v7306_v17 }
 0x1d7   : > { %1500 = vmax.xlane.f32.xlu1 %v7039_v19  ;;  %v5997_v19 = vld [vmem:[%s6745_s25 + $0x38] sm:$0xff]  }
 0x1d8   : > { %1498 = vmax.xlane.f32.xlu0 %v7042_v20  ;;  %v7269_v20 = vld [vmem:[#allocation2 + $0x40] sm:$0xff] }
 0x1db   : > { %1532 = vmax.xlane.f32.xlu1 %v7045_v21 }
 0x1dc   : > { %1530 = vmax.xlane.f32.xlu0 %v7047_v22  ;;  %v5998_v22 = vld [vmem:[%s6745_s25 + $0x70] sm:$0xff]  }
 0x1df   : > { %1496 = vmax.xlane.f32.xlu1 %v7051_v23 }
 0x1e0   : > { %1494 = vmax.xlane.f32.xlu0 %v7053_v24 }
 0x1e3   : > { %1528 = vmax.xlane.f32.xlu1 %v7057_v25 }
 0x1e4   : > { %1526 = vmax.xlane.f32.xlu0 %v7059_v26  ;;  %v5996_v26 = vld [vmem:[%s6745_s25 + $0x68] sm:$0xff]  }
 0x1e7   : > { %1508 = vmax.xlane.f32.xlu1 %v7063_v27 }
 0x1e8   : > { %1506 = vmax.xlane.f32.xlu0 %v7065_v28  ;;  %v7227_v28 = vld [vmem:[#allocation2 + $0x58] sm:$0xff] }
 0x1eb   : > { %1540 = vmax.xlane.f32.xlu1 %v7069_v29  ;;  %v5993_v29 = vld [vmem:[%s6745_s25 + $0x28] sm:$0xff]  }
 0x1ec   : > { %1538 = vmax.xlane.f32.xlu0 %v7071_v30 }
 0x1ef   : > { %1504 = vmax.xlane.f32.xlu1 %v7075_v31  ;;  %v5995_v31 = vld [vmem:[%s6745_s25 + $0x30] sm:$0xff]  }
 0x1f0   : > { %1502 = vmax.xlane.f32.xlu0 %v7077_v32 }
 0x1f3   : > { %1536 = vmax.xlane.f32.xlu1 %v7081_v33 }
 0x1f4   : > { %1534 = vmax.xlane.f32.xlu0 %v7083_v34 }
 0x244   : > { %v1483_v39 = vpop.xlane.xlu1 %1482 }
 0x245   : > { %v1515_v40 = vpop.xlane.xlu0 %1514  ;;  %v7093_v42 = vmax.f32 %v7088_v36, %v1483_v39  ;;  %v7159_v39 = vld [vmem:[#allocation2 + $0x30] sm:$0xff] }
 0x246   : > { %v7096_v43 = vmax.f32 %v7090_v37, %v1515_v40 }
 0x247   : > { %2715 = vst.msk [vmem:[#allocation2 + $0x10] sm:$0xff] %vm2086_vm3, %v7093_v42  ;;  %1682 = vperm.xlu1 %5950, %v7093_v42  }
 0x248   : > { %2731 = vst.msk [vmem:[#allocation2 + $0x90] sm:$0xff] %vm2086_vm3, %v7096_v43  ;;  %1762 = vperm.xlu0 %5951, %v7096_v43   ;;  %v1485_v51 = vpop.xlane.xlu1 %1484 }
 0x249   : > { %v1479_v52 = vpop.xlane.xlu0 %1478  ;;  %v7113_v53 = vmax.f32 %v7098_v45, %v1485_v51  ;;  %v5987_v51 = vld [vmem:[%s6745_s25 + $0x10] sm:$0xff]  }
 0x24a   : > { %v7116_v54 = vmax.f32 %v7105_v48, %v1479_v52  ;;  %v5988_v52 = vld [vmem:[%s6745_s25 + $0x48] sm:$0xff]   ;;  %5619 = vmatprep.subr.bf16.mxu0 %v5987_v51 }
 0x24b   : > { %2716 = vst.msk [vmem:[#allocation2 + $0x18] sm:$0xff] %vm2086_vm3, %v7113_v53  ;;  %5649 = vmatprep.subr.bf16.mxu1 %v5988_v52  ;;  %5620 = vmatpush3.bf16.msra.mxu0 %v5987_v51  ;;  %v5992_v51 = vld [vmem:[%s6745_s25 + $0x58] sm:$0xff]  }
 0x24c   : > { %2713 = vst.msk [vmem:[#allocation2] sm:$0xff] %vm2086_vm3, %v7116_v54  ;;  %1672 = vperm.xlu0 %5951, %v7116_v54   ;;  %v1517_v61 = vpop.xlane.xlu1 %1516  ;;  %5650 = vmatpush3.bf16.msra.mxu1 %v5988_v52  ;;  %v7195_v52 = vld [vmem:[#allocation2 + $0x20] sm:$0xff] }
 0x24d   : > { %v1511_v63 = vpop.xlane.xlu0 %1510  ;;  %v7129_v0 = vmax.f32 %v7118_v55, %v1517_v61 }
 0x24e   : > { %v7132_v2 = vmax.f32 %v7122_v60, %v1511_v63 }
 0x24f   : > { %2732 = vst.msk [vmem:[#allocation2 + $0x98] sm:$0xff] %vm2086_vm3, %v7129_v0 }
 0x250   : > { %2729 = vst.msk [vmem:[#allocation2 + $0x80] sm:$0xff] %vm2086_vm3, %v7132_v2  ;;  %1752 = vperm.xlu1 %5950, %v7132_v2   ;;  %v1513_v10 = vpop.xlane.xlu1 %1512 }
 0x251   : > { %v7150_v13 = vmax.f32 %v7134_v3, %v1513_v10  ;;  %v1481_v15 = vpop.xlane.xlu0 %1480  ;;  %v7172_v10 = vld [vmem:[#allocation2 + $0xb8] sm:$0xff] }
 0x252   : > { %v7153_v16 = vmax.f32 %v7140_v6, %v1481_v15  ;;  %v5989_v15 = vld [vmem:[%s6745_s25 + $0x18] sm:$0xff]  }
 0x253   : > { %2730 = vst.msk [vmem:[#allocation2 + $0x88] sm:$0xff] %vm2086_vm3, %v7150_v13  ;;  %5621 = vmatprep.subr.bf16.mxu0 %v5989_v15 }
 0x254   : > { %2714 = vst.msk [vmem:[#allocation2 + $0x8] sm:$0xff] %vm2086_vm3, %v7153_v16  ;;  %1687 = vperm.xlu1 %5950, %v7113_v53   ;;  %v1493_v40 = vpop.xlane.xlu1 %1492  ;;  %5622 = vmatpush3.bf16.msra.mxu0 %v5989_v15 }
 0x255   : > { %v1491_v61 = vpop.xlane.xlu0 %1490  ;;  %v7167_v62 = vmax.f32 %v7155_v18, %v1493_v40  ;;  %v5990_v40 = vld [vmem:[%s6745_s25 + $0x50] sm:$0xff]   ;;  %5623 = vmatprep.subr.bf16.mxu0 %v5991_v46 }
 0x256   : > { %v7170_v63 = vmax.f32 %v7159_v39, %v1491_v61  ;;  %5651 = vmatprep.subr.bf16.mxu1 %v5990_v40 }
 0x257   : > { %2720 = vst.msk [vmem:[#allocation2 + $0x38] sm:$0xff] %vm2086_vm3, %v7167_v62  ;;  %5652 = vmatpush3.bf16.msra.mxu1 %v5990_v40  ;;  %v7210_v40 = vld [vmem:[#allocation2 + $0xa8] sm:$0xff] }
 0x258   : > { %2719 = vst.msk [vmem:[#allocation2 + $0x30] sm:$0xff] %vm2086_vm3, %v7170_v63  ;;  %1767 = vperm.xlu1 %5950, %v7129_v0   ;;  %v1525_v12 = vpop.xlane.xlu1 %1524  ;;  %5653 = vmatprep.subr.bf16.mxu1 %v5992_v51 }
 0x259   : > { %v1523_v61 = vpop.xlane.xlu0 %1522  ;;  %v7184_v49 = vmax.f32 %v7172_v10, %v1525_v12  ;;  %v7214_v12 = vld [vmem:[#allocation2 + $0xa0] sm:$0xff]  ;;  %5624 = vmatpush3.bf16.msra.mxu0 %v5991_v46  ;;  %v7231_v46 = vld [vmem:[#allocation2 + $0x50] sm:$0xff] }
 0x25a   : > { %v7187_v9 = vmax.f32 %v7176_v11, %v1523_v61  ;;  %5625 = vmatprep.subr.bf16.mxu0 %v5993_v29 }
 0x25b   : > { %2736 = vst.msk [vmem:[#allocation2 + $0xb8] sm:$0xff] %vm2086_vm3, %v7184_v49  ;;  %5654 = vmatpush3.bf16.msra.mxu1 %v5992_v51 }
 0x25c   : > { %2735 = vst.msk [vmem:[#allocation2 + $0xb0] sm:$0xff] %vm2086_vm3, %v7187_v9  ;;  %1677 = vperm.xlu1 %5950, %v7153_v16   ;;  %v1489_v61 = vpop.xlane.xlu1 %1488 }
 0x25d   : > { %v1487_v30 = vpop.xlane.xlu0 %1486  ;;  %v7205_v34 = vmax.f32 %v7189_v4, %v1489_v61  ;;  %5626 = vmatpush3.bf16.msra.mxu0 %v5993_v29  ;;  %v7245_v29 = vld [vmem:[#allocation2 + $0xd8] sm:$0xff] }
 0x25e   : > { %v7208_v15 = vmax.f32 %v7195_v52, %v1487_v30  ;;  %v5994_v30 = vld [vmem:[%s6745_s25 + $0x60] sm:$0xff]   ;;  %5627 = vmatprep.subr.bf16.mxu0 %v5995_v31 }
 0x25f   : > { %2718 = vst.msk [vmem:[#allocation2 + $0x28] sm:$0xff] %vm2086_vm3, %v7205_v34  ;;  %5655 = vmatprep.subr.bf16.mxu1 %v5994_v30 }
 0x260   : > { %2717 = vst.msk [vmem:[#allocation2 + $0x20] sm:$0xff] %vm2086_vm3, %v7208_v15  ;;  %1757 = vperm.xlu1 %5950, %v7150_v13   ;;  %v1521_v61 = vpop.xlane.xlu1 %1520  ;;  %5656 = vmatpush3.bf16.msra.mxu1 %v5994_v30  ;;  %v7249_v30 = vld [vmem:[#allocation2 + $0xd0] sm:$0xff] }
 0x261   : > { %v1519_v32 = vpop.xlane.xlu0 %1518  ;;  %v7222_v33 = vmax.f32 %v7210_v40, %v1521_v61  ;;  %5657 = vmatprep.subr.bf16.mxu1 %v5996_v26  ;;  %5628 = vmatpush3.bf16.msra.mxu0 %v5995_v31 }
 0x262   : > { %v7225_v27 = vmax.f32 %v7214_v12, %v1519_v32  ;;  %5629 = vmatprep.subr.bf16.mxu0 %v5997_v19 }
 0x263   : > { %2734 = vst.msk [vmem:[#allocation2 + $0xa8] sm:$0xff] %vm2086_vm3, %v7222_v33 }
 0x264   : > { %2733 = vst.msk [vmem:[#allocation2 + $0xa0] sm:$0xff] %vm2086_vm3, %v7225_v27  ;;  %1772 = vperm.xlu0 %5951, %v7225_v27   ;;  %1702 = vperm.xlu1 %5950, %v7170_v63   ;;  %v1501_v32 = vpop.xlane.xlu1 %1500 }
 0x265   : > { %v1499_v51 = vpop.xlane.xlu0 %1498  ;;  %v7238_v61 = vmax.f32 %v7227_v28, %v1501_v32  ;;  %5658 = vmatpush3.bf16.msra.mxu1 %v5996_v26  ;;  %v7265_v32 = vld [vmem:[#allocation2 + $0x48] sm:$0xff]  ;;  %5630 = vmatpush3.bf16.msra.mxu0 %v5997_v19 }
 0x266   : > { %v7243_v21 = vmax.f32 %v7231_v46, %v1499_v51  ;;  %5659 = vmatprep.subr.bf16.mxu1 %v5998_v22 }
 0x267   : > { %2724 = vst.msk [vmem:[#allocation2 + $0x58] sm:$0xff] %vm2086_vm3, %v7238_v61 }
 0x268   : > { %2723 = vst.msk [vmem:[#allocation2 + $0x50] sm:$0xff] %vm2086_vm3, %v7243_v21  ;;  %1707 = vperm.xlu0 %5951, %v7167_v62   ;;  %1782 = vperm.xlu1 %5950, %v7187_v9   ;;  %v1533_v51 = vpop.xlane.xlu1 %1532 }
 0x269   : > { %v1531_v24 = vpop.xlane.xlu0 %1530  ;;  %v7258_v25 = vmax.f32 %v7245_v29, %v1533_v51  ;;  %5660 = vmatpush3.bf16.msra.mxu1 %v5998_v22  ;;  %v7288_v51 = vld [vmem:[#allocation2 + $0xc0] sm:$0xff] }
 0x26a   : > { %v7263_v23 = vmax.f32 %v7249_v30, %v1531_v24  ;;  %5661 = vmatprep.subr.bf16.mxu1 %v5999_v14 }
 0x26b   : > { %2740 = vst.msk [vmem:[#allocation2 + $0xd8] sm:$0xff] %vm2086_vm3, %v7258_v25 }
 0x26c   : > { %2739 = vst.msk [vmem:[#allocation2 + $0xd0] sm:$0xff] %vm2086_vm3, %v7263_v23  ;;  %1787 = vperm.xlu0 %5951, %v7184_v49   ;;  %1692 = vperm.xlu1 %5950, %v7208_v15   ;;  %v1497_v24 = vpop.xlane.xlu1 %1496 }
 0x26d   : > { %v1495_v26 = vpop.xlane.xlu0 %1494  ;;  %v7278_v31 = vmax.f32 %v7265_v32, %v1497_v24  ;;  %5662 = vmatpush3.bf16.msra.mxu1 %v5999_v14 }
 0x26e   : > { %v7282_v7 = vmax.f32 %v7269_v20, %v1495_v26 }
 0x26f   : > { %2722 = vst.msk [vmem:[#allocation2 + $0x48] sm:$0xff] %vm2086_vm3, %v7278_v31 }
 0x270   : > { %2721 = vst.msk [vmem:[#allocation2 + $0x40] sm:$0xff] %vm2086_vm3, %v7282_v7  ;;  %1727 = vperm.xlu0 %5951, %v7238_v61   ;;  %1697 = vperm.xlu1 %5950, %v7205_v34   ;;  %v1529_v19 = vpop.xlane.xlu1 %1528 }
 0x271   : > { %v1527_v22 = vpop.xlane.xlu0 %1526  ;;  %v7297_v24 = vmax.f32 %v7284_v1, %v1529_v19 }
 0x272   : > { %v7300_v26 = vmax.f32 %v7288_v51, %v1527_v22 }
 0x273   : > { %2738 = vst.msk [vmem:[#allocation2 + $0xc8] sm:$0xff] %vm2086_vm3, %v7297_v24 }
 0x274   : > { %2737 = vst.msk [vmem:[#allocation2 + $0xc0] sm:$0xff] %vm2086_vm3, %v7300_v26  ;;  %1807 = vperm.xlu0 %5951, %v7258_v25   ;;  %1777 = vperm.xlu1 %5950, %v7222_v33   ;;  %v1509_v14 = vpop.xlane.xlu1 %1508 }
 0x275   : > { %v1507_v19 = vpop.xlane.xlu0 %1506  ;;  %v7315_v22 = vmax.f32 %v7302_v8, %v1509_v14 }
 0x276   : > { %v7318_v5 = vmax.f32 %v7306_v17, %v1507_v19  ;;  %v1575_v17 = vsub.f32 %v7140_v6, %v7153_v16  ;;  %v1581_v6 = vsub.f32 %v7155_v18, %v7167_v62 }
 0x277   : > { %2728 = vst.msk [vmem:[#allocation2 + $0x78] sm:$0xff] %vm2086_vm3, %v7315_v22 }
 0x278   : > { %2727 = vst.msk [vmem:[#allocation2 + $0x70] sm:$0xff] %vm2086_vm3, %v7318_v5  ;;  %1717 = vperm.xlu0 %5951, %v7278_v31   ;;  %1722 = vperm.xlu1 %5950, %v7243_v21   ;;  %v1541_v14 = vpop.xlane.xlu1 %1540 }
 0x279   : > { %v1539_v19 = vpop.xlane.xlu0 %1538  ;;  %v7333_v57 = vmax.f32 %v7320_v59, %v1541_v14 }
 0x27a   : > { %v7336_v50 = vmax.f32 %v7324_v58, %v1539_v19  ;;  %v1574_v19 = vsub.f32 %v7105_v48, %v7116_v54 }
 0x27b   : > { %2744 = vst.msk [vmem:[#allocation2 + $0xf8] sm:$0xff] %vm2086_vm3, %v7333_v57 }
 0x27c   : > { %2743 = vst.msk [vmem:[#allocation2 + $0xf0] sm:$0xff] %vm2086_vm3, %v7336_v50  ;;  %1797 = vperm.xlu0 %5951, %v7297_v24   ;;  %1802 = vperm.xlu1 %5950, %v7263_v23   ;;  %v1505_v14 = vpop.xlane.xlu1 %1504  ;;  %v1606_v54 = vmul.f32 1.442695, %v1574_v19  ;;  %v1608_v19 = vmul.f32 1.442695, %v1575_v17 }
 0x27d   : > { %v1503_v56 = vpop.xlane.xlu0 %1502  ;;  %v7355_v59 = vmax.f32 %v7338_v47, %v1505_v14  ;;  %v1620_v17 = vmul.f32 1.442695, %v1581_v6  ;;  %v1585_v6 = vsub.f32 %v7227_v28, %v7238_v61  ;;  %v9004_v28 = vsub.f32 %v7176_v11, %v7187_v9 }
 0x27e   : > { %v7358_v38 = vmax.f32 %v7344_v41, %v1503_v56  ;;  %v1577_v56 = vsub.f32 %v7098_v45, %v7113_v53  ;;  %6000 = vpow2.f32 %v1606_v54  ;;  %v1579_v53 = vsub.f32 %v7189_v4, %v7205_v34 }
 0x27f   : > { %2726 = vst.msk [vmem:[#allocation2 + $0x68] sm:$0xff] %vm2086_vm3, %v7355_v59  ;;  %v1591_v54 = vsub.f32 %v7134_v3, %v7150_v13  ;;  %v1578_v34 = vsub.f32 %v7195_v52, %v7208_v15  ;;  %v9000_v13 = vsub.f32 %v7118_v55, %v7129_v0  ;;  %v1595_v15 = vsub.f32 %v7210_v40, %v7222_v33 }
 0x280   : > { %2725 = vst.msk [vmem:[#allocation2 + $0x60] sm:$0xff] %vm2086_vm3, %v7358_v38  ;;  %1747 = vperm.xlu0 %5951, %v7315_v22   ;;  %1712 = vperm.xlu1 %5950, %v7282_v7   ;;  %v1537_v48 = vpop.xlane.xlu1 %1536  ;;  %v1612_v45 = vmul.f32 1.442695, %v1577_v56  ;;  %v1616_v16 = vmul.f32 1.442695, %v1579_v53  ;;  %v9002_v33 = vsub.f32 %v7090_v37, %v7096_v43 }
 0x281   : > { %v1535_v14 = vpop.xlane.xlu0 %1534  ;;  %v7373_v58 = vmax.f32 %v7360_v35, %v1537_v48  ;;  %v8999_v48 = vsub.f32 %v7088_v36, %v7093_v42  ;;  %v1640_v18 = vmul.f32 1.442695, %v1591_v54  ;;  %v1580_v36 = vsub.f32 %v7159_v39, %v7170_v63 }
 0x282   : > { %v7376_v41 = vmax.f32 %v7364_v44, %v1535_v14  ;;  %6002 = vpow2.f32 %v1612_v45  ;;  %v1614_v42 = vmul.f32 1.442695, %v1578_v34  ;;  %v1644_v62 = vmul.f32 1.442695, %v9000_v13 }
 0x283   : > { %2742 = vst.msk [vmem:[#allocation2 + $0xe8] sm:$0xff] %vm2086_vm3, %v7373_v58  ;;  %v1610_v14 = vmul.f32 1.442695, %v8999_v48  ;;  %6004 = vpow2.f32 %v1608_v19  ;;  %v1618_v52 = vmul.f32 1.442695, %v1580_v36  ;;  %v9001_v63 = vsub.f32 %v7122_v60, %v7132_v2 }
 0x284   : > { %2741 = vst.msk [vmem:[#allocation2 + $0xe0] sm:$0xff] %vm2086_vm3, %v7376_v41  ;;  %1792 = vperm.xlu1 %5950, %v7300_v26   ;;  %1737 = vperm.xlu0 %5951, %v7355_v59   ;;  %6006 = vpow2.f32 %v1616_v16  ;;  %v1648_v55 = vmul.f32 1.442695, %v1595_v15  ;;  %v1642_v40 = vmul.f32 1.442695, %v9002_v33  ;;  %v1594_v60 = vsub.f32 %v7214_v12, %v7225_v27 }
 0x285   : > { %6008 = vpow2.f32 %v1610_v14  ;;  %v1638_v45 = vmul.f32 1.442695, %v9001_v63  ;;  %v9003_v2 = vsub.f32 %v7172_v10, %v7184_v49  ;;  %v1628_v27 = vmul.f32 1.442695, %v1585_v6 }
 0x286   : > { %6010 = vpow2.f32 %v1620_v17  ;;  %v1646_v43 = vmul.f32 1.442695, %v1594_v60  ;;  %v1601_v49 = vsub.f32 %v7245_v29, %v7258_v25  ;;  %v1650_v61 = vmul.f32 1.442695, %v9004_v28 }
 0x287   : > { %6012 = vpow2.f32 %v1640_v18  ;;  %v1652_v19 = vmul.f32 1.442695, %v9003_v2  ;;  %v1583_v14 = vsub.f32 %v7265_v32, %v7278_v31  ;;  %v9005_v29 = vsub.f32 %v7231_v46, %v7243_v21 }
 0x288   : > { %1742 = vperm.xlu1 %5950, %v7318_v5   ;;  %1817 = vperm.xlu0 %5951, %v7373_v58   ;;  %v7401_v4 = vpop.eup %6000  ;;  %6014 = vpow2.f32 %v1614_v42  ;;  %v1660_v48 = vmul.f32 1.442695, %v1601_v49  ;;  %v1599_v17 = vsub.f32 %v7284_v1, %v7297_v24  ;;  %v9006_v31 = vsub.f32 %v7249_v30, %v7263_v23 }
 0x289   : > { %6016 = vpow2.f32 %v1644_v62  ;;  %v1626_v9 = vmul.f32 1.442695, %v9005_v29  ;;  %v1624_v11 = vmul.f32 1.442695, %v1583_v14  ;;  %v1589_v46 = vsub.f32 %v7302_v8, %v7315_v22  ;;  %v9013_v29 = vld [vmem:[#allocation16_spill] sm:$0xff] }
 0x28a   : > { %6018 = vpow2.f32 %v1618_v52  ;;  %v1658_v18 = vmul.f32 1.442695, %v9006_v31  ;;  %v1656_v21 = vmul.f32 1.442695, %v1599_v17  ;;  %v9007_v24 = vsub.f32 %v7269_v20, %v7282_v7  ;;  %v9015_v31 = vld [vmem:[#allocation17_spill] sm:$0xff] }
 0x28b   : > { %6020 = vpow2.f32 %v1638_v45  ;;  %v1636_v23 = vmul.f32 1.442695, %v1589_v46  ;;  %v1587_v30 = vsub.f32 %v7338_v47, %v7355_v59  ;;  %v9008_v22 = vsub.f32 %v7288_v51, %v7300_v26  ;;  %v9009_v59 = vld [vmem:[#allocation47_spill] sm:$0xff]  ;;  %v9011_v51 = vld [vmem:[#allocation50_spill] sm:$0xff] }
 0x28c   : > { %1732 = vperm.xlu1 %5950, %v7358_v38   ;;  %1827 = vperm.xlu0 %5951, %v7333_v57   ;;  %v7407_v3 = vpop.eup %6002  ;;  %6022 = vpow2.f32 %v1648_v55  ;;  %v1622_v42 = vmul.f32 1.442695, %v9007_v24  ;;  %v1603_v20 = vsub.f32 %v7360_v35, %v7373_v58  ;;  %v9010_v15 = vsub.f32 %v9009_v59, %v7318_v5  ;;  %v9018_v59 = vld [vmem:[#allocation22_spill] sm:$0xff] }
 0x28d   : > { %v7416_v56 = vpop.eup %6004  ;;  %6024 = vpow2.f32 %v1642_v40  ;;  %v1654_v62 = vmul.f32 1.442695, %v9008_v22  ;;  %v1632_v7 = vmul.f32 1.442695, %v1587_v30  ;;  %v1586_v26 = vsub.f32 %v9011_v51, %v7358_v38  ;;  %v9017_v22 = vld [vmem:[#allocation20_spill] sm:$0xff] }
 0x28e   : > { %v7418_v39 = vpop.eup %6006  ;;  %6026 = vpow2.f32 %v1652_v19  ;;  %v1634_v63 = vmul.f32 1.442695, %v9010_v15  ;;  %v1664_v45 = vmul.f32 1.442695, %v1603_v20  ;;  %v1602_v5 = vsub.f32 %v7364_v44, %v7376_v41 }
 0x28f   : > { %v7425_v0 = vpop.eup %6008  ;;  %6028 = vpow2.f32 %v1646_v43  ;;  %v1630_v58 = vmul.f32 1.442695, %v1586_v26 }
 0x290   : > { %1812 = vperm.xlu1 %5950, %v7376_v41   ;;  %2153 = vperm.xlu0 %5951, %v7401_v4   ;;  %v7427_v53 = vpop.eup %6010  ;;  %6030 = vpow2.f32 %v1628_v27  ;;  %v1662_v38 = vmul.f32 1.442695, %v1602_v5 }
 0x291   : > { %v7441_v16 = vpop.eup %6012  ;;  %6032 = vpow2.f32 %v1650_v61 }
 0x292   : > { %v7443_v37 = vpop.eup %6014  ;;  %6034 = vpow2.f32 %v1660_v48  ;;  %v9012_v48 = vld [vmem:[#allocation15_spill] sm:$0xff] }
 0x293   : > { %v7449_v10 = vpop.eup %6016  ;;  %6036 = vpow2.f32 %v1626_v9 }
 0x294   : > { %1822 = vperm.xlu1 %5950, %v7336_v50   ;;  %2168 = vperm.xlu0 %5951, %v7407_v3   ;;  %v7451_v12 = vpop.eup %6018  ;;  %6038 = vpow2.f32 %v1624_v11  ;;  %v9014_v11 = vld [vmem:[#allocation18_spill] sm:$0xff] }
 0x295   : > { %v7460_v54 = vpop.eup %6020  ;;  %6040 = vpow2.f32 %v1658_v18 }
 0x296   : > { %v7462_v25 = vpop.eup %6022  ;;  %6042 = vpow2.f32 %v1656_v21 }
 0x297   : > { %v7471_v34 = vpop.eup %6024  ;;  %6044 = vpow2.f32 %v1622_v42 }
 0x298   : > { %2158 = vperm.xlu1 %5950, %v7416_v56   ;;  %2178 = vperm.xlu0 %5951, %v7418_v39   ;;  %v7473_v32 = vpop.eup %6026  ;;  %6046 = vpow2.f32 %v1636_v23  ;;  %v9016_v23 = vld [vmem:[#allocation19_spill] sm:$0xff] }
 0x299   : > { %v7482_v36 = vpop.eup %6028  ;;  %6048 = vpow2.f32 %v1654_v62 }
 0x29a   : > { %v7484_v1 = vpop.eup %6030  ;;  %6050 = vpow2.f32 %v1632_v7 }
 0x29b   : > { %v7493_v13 = vpop.eup %6032  ;;  %6052 = vpow2.f32 %v1634_v63 }
 0x29c   : > { %2163 = vperm.xlu1 %5950, %v7425_v0   ;;  %2188 = vperm.xlu0 %5951, %v7427_v53   ;;  %v7495_v8 = vpop.eup %6034  ;;  %6054 = vpow2.f32 %v1664_v45 }
 0x29d   : > { %v7504_v52 = vpop.eup %6036  ;;  %6056 = vpow2.f32 %v1630_v58  ;;  %v9019_v58 = vld [vmem:[#allocation21_spill] sm:$0xff] }
 0x29e   : > { %v7506_v47 = vpop.eup %6038  ;;  %6058 = vpow2.f32 %v1662_v38 }
 0x29f   : > { %v7515_v55 = vpop.eup %6040 }
 0x2a0   : > { %2173 = vperm.xlu1 %5950, %v7443_v37   ;;  %2238 = vperm.xlu0 %5951, %v7441_v16   ;;  %v7517_v35 = vpop.eup %6042 }
 0x2a1   : > { %v7523_v33 = vpop.eup %6044 }
 0x2a2   : > { %v7525_v40 = vpop.eup %6046 }
 0x2a3   : > { %v7529_v60 = vpop.eup %6048 }
 0x2a4   : > { %2183 = vperm.xlu1 %5950, %v7451_v12   ;;  %2248 = vperm.xlu0 %5951, %v7449_v10   ;;  %v7531_v2 = vpop.eup %6050 }
 0x2a5   : > { %v7535_v41 = vpop.eup %6052 }
 0x2a6   : > { %v7537_v44 = vpop.eup %6054 }
 0x2a7   : > { %v7541_v19 = vpop.eup %6056 }
 0x2a8   : > { %2233 = vperm.xlu1 %5950, %v7460_v54   ;;  %2258 = vperm.xlu0 %5951, %v7462_v25   ;;  %v7544_v27 = vpop.eup %6058 }
 0x2ac   : > { %2243 = vperm.xlu1 %5950, %v7471_v34   ;;  %2268 = vperm.xlu0 %5951, %v7473_v32  }
 0x2b0   : > { %2253 = vperm.xlu1 %5950, %v7482_v36   ;;  %2208 = vperm.xlu0 %5951, %v7484_v1  }
 0x2b4   : > { %2263 = vperm.xlu1 %5950, %v7493_v13   ;;  %2288 = vperm.xlu0 %5951, %v7495_v8  }
 0x2b8   : > { %2203 = vperm.xlu1 %5950, %v7504_v52   ;;  %2198 = vperm.xlu0 %5951, %v7506_v47  }
 0x2bc   : > { %2283 = vperm.xlu1 %5950, %v7515_v55   ;;  %2278 = vperm.xlu0 %5951, %v7517_v35  }
 0x2c0   : > { %2193 = vperm.xlu1 %5950, %v7523_v33   ;;  %2228 = vperm.xlu0 %5951, %v7525_v40  }
 0x2c4   : > { %2273 = vperm.xlu1 %5950, %v7529_v60   ;;  %2218 = vperm.xlu0 %5951, %v7531_v2  }
 0x2c6   : > { %v1683_v6 = vpop.permute.xlu1 %1682 }
 0x2c7   : > { %v1763_v43 = vpop.permute.xlu0 %1762  ;;  %v1832_v14 = vsub.f32 %v9012_v48, %v1683_v6 }
 0x2c8   : > { %2223 = vperm.xlu1 %5950, %v7535_v41   ;;  %2298 = vperm.xlu0 %5951, %v7537_v44   ;;  %v1848_v9 = vsub.f32 %v9013_v29, %v1763_v43 }
 0x2c9   : > { %v1866_v46 = vmul.f32 1.442695, %v1832_v14 }
 0x2ca   : > { %v1898_v24 = vmul.f32 1.442695, %v1848_v9 }
 0x2cb   : > { %v1673_v28 = vpop.permute.xlu0 %1672  ;;  %6060 = vpow2.f32 %v1866_v46  ;;  %v9022_v46 = vld [vmem:[#allocation23_spill] sm:$0xff] }
 0x2cc   : > { %2213 = vperm.xlu1 %5950, %v7541_v19   ;;  %v1830_v17 = vsub.f32 %v9014_v11, %v1673_v28  ;;  %6062 = vpow2.f32 %v1898_v24 }
 0x2ce   : > { %v1862_v42 = vmul.f32 1.442695, %v1830_v17  ;;  %v9021_v17 = vld [vmem:[#allocation26_spill] sm:$0xff] }
 0x2cf   : > { %v1753_v49 = vpop.permute.xlu1 %1752 }
 0x2d0   : > { %2293 = vperm.xlu1 %5950, %v7544_v27   ;;  %v1846_v62 = vsub.f32 %v9017_v22, %v1753_v49  ;;  %6064 = vpow2.f32 %v1862_v42  ;;  %v9020_v49 = vld [vmem:[#allocation24_spill] sm:$0xff] }
 0x2d2   : > { %v1894_v26 = vmul.f32 1.442695, %v1846_v62 }
 0x2d3   : > { %v1688_v61 = vpop.permute.xlu1 %1687 }
 0x2d4   : > { %v1833_v18 = vsub.f32 %v9015_v31, %v1688_v61 }
 0x2d5   : > { %v6061_v61 = vpop.eup %6060 }
 0x2d6   : > { %v1868_v7 = vmul.f32 1.442695, %v1833_v18  ;;  %v6063_v48 = vpop.eup %6062 }
 0x2d7   : > { %v1768_v21 = vpop.permute.xlu1 %1767 }
 0x2d8   : > { %v1849_v30 = vsub.f32 %v9016_v23, %v1768_v21  ;;  %6066 = vpow2.f32 %v1868_v7  ;;  %v9023_v7 = vld [vmem:[#allocation28_spill] sm:$0xff] }
 0x2da   : > { %v1900_v63 = vmul.f32 1.442695, %v1849_v30  ;;  %v6065_v9 = vpop.eup %6064 }
 0x2db   : > { %v1678_v20 = vpop.permute.xlu1 %1677 }
 0x2dc   : > { %v1831_v15 = vsub.f32 %v9018_v59, %v1678_v20 }
 0x2de   : > { %v1864_v51 = vmul.f32 1.442695, %v1831_v15 }
 0x2df   : > { %v1758_v45 = vpop.permute.xlu1 %1757 }
 0x2e0   : > { %6068 = vpow2.f32 %v1864_v51  ;;  %v1847_v5 = vsub.f32 %v9019_v58, %v1758_v45  ;;  %v9024_v51 = vld [vmem:[#allocation30_spill] sm:$0xff] }
 0x2e1   : > { %6070 = vpow2.f32 %v1900_v63 }
 0x2e2   : > { %v1896_v38 = vmul.f32 1.442695, %v1847_v5  ;;  %6072 = vpow2.f32 %v1894_v26  ;;  %v6067_v18 = vpop.eup %6066 }
 0x2e3   : > { %v1773_v6 = vpop.permute.xlu0 %1772  ;;  %v1703_v43 = vpop.permute.xlu1 %1702  ;;  %v2344_v59 = vpack.c.bf16 %v6067_v18, %v6061_v61 }
 0x2e4   : > { %6074 = vpow2.f32 %v1896_v38  ;;  %v1836_v28 = vsub.f32 %v9020_v49, %v1703_v43  ;;  %v1850_v26 = vsub.f32 %v9024_v51, %v1773_v6  ;;  %v9025_v49 = vld [vmem:[#allocation25_spill] sm:$0xff] }
 0x2e6   : > { %v1874_v11 = vmul.f32 1.442695, %v1836_v28 }
 0x2e7   : > { %v1708_v14 = vpop.permute.xlu0 %1707  ;;  %1994 = vadd.xlane.f32.xlu0 %v6061_v61  ;;  %v1783_v29 = vpop.permute.xlu1 %1782 }
 0x2e8   : > { %v1852_v31 = vsub.f32 %v9021_v17, %v1783_v29  ;;  %v1837_v24 = vsub.f32 %v9022_v46, %v1708_v14  ;;  %6076 = vpow2.f32 %v1874_v11  ;;  %v9026_v29 = vld [vmem:[#allocation27_spill] sm:$0xff]  ;;  %v1902_v17 = vmul.f32 1.442695, %v1850_v26 }
 0x2e9   : > { %v9029_v26 = vld [vmem:[#allocation35_spill] sm:$0xff] }
 0x2ea   : > { %v6069_v21 = vpop.eup %6068  ;;  %v1906_v62 = vmul.f32 1.442695, %v1852_v31  ;;  %v1876_v45 = vmul.f32 1.442695, %v1837_v24  ;;  %v9027_v24 = vld [vmem:[#allocation29_spill] sm:$0xff] }
 0x2eb   : > { %v1788_v42 = vpop.permute.xlu0 %1787  ;;  %2026 = vadd.xlane.f32.xlu0 %v6063_v48  ;;  %v1693_v23 = vpop.permute.xlu1 %1692  ;;  %v2343_v30 = vpack.c.bf16 %v6069_v21, %v6065_v9 }
 0x2ec   : > { %v6071_v22 = vpop.eup %6070  ;;  %v1834_v20 = vsub.f32 %v9023_v7, %v1693_v23  ;;  %6078 = vpow2.f32 %v1906_v62  ;;  %v1853_v28 = vsub.f32 %v9025_v49, %v1788_v42  ;;  %v9028_v7 = vld [vmem:[#allocation32_spill] sm:$0xff]  ;;  %v9031_v49 = vld [vmem:[#allocation31_spill] sm:$0xff] }
 0x2ed   : > { %v6073_v15 = vpop.eup %6072  ;;  %5631 = vmatprep.mubr.bf16.mxu0 %v2343_v30  ;;  %v2352_v43 = vpack.c.bf16 %v6071_v22, %v6063_v48  ;;  %6080 = vpow2.f32 %v1876_v45 }
 0x2ee   : > { %v6075_v63 = vpop.eup %6074  ;;  %5632 = vmatmul.mubr.bf16.vlgmr.msra.gmra.mrb[16].mxu0 %v2344_v59  ;;  %v1870_v14 = vmul.f32 1.442695, %v1834_v20  ;;  %v1908_v46 = vmul.f32 1.442695, %v1853_v28 }
 0x2ef   : > { %v1728_v58 = vpop.permute.xlu0 %1727  ;;  %2022 = vadd.xlane.f32.xlu0 %v6073_v15  ;;  %v1698_v5 = vpop.permute.xlu1 %1697  ;;  %v2351_v38 = vpack.c.bf16 %v6075_v63, %v6073_v15 }
 0x2f0   : > { %v1835_v11 = vsub.f32 %v9026_v29, %v1698_v5  ;;  %6082 = vpow2.f32 %v1870_v14  ;;  %v1841_v28 = vsub.f32 %v9031_v49, %v1728_v58 }
 0x2f1   : > { %5663 = vmatprep.mubr.bf16.mxu1 %v2351_v38 }
 0x2f2   : > { %v1872_v61 = vmul.f32 1.442695, %v1835_v11  ;;  %5664 = vmatmul.mubr.bf16.vlgmr.msra.gmra.mrb[16].mxu1 %v2352_v43  ;;  %v6077_v48 = vpop.eup %6076 }
 0x2f3   : > { %v1808_v31 = vpop.permute.xlu0 %1807  ;;  %1992 = vadd.xlane.f32.xlu0 %v6069_v21  ;;  %v1778_v6 = vpop.permute.xlu1 %1777 }
 0x2f4   : > { %v1851_v23 = vsub.f32 %v9027_v24, %v1778_v6  ;;  %1990 = vadd.xlane.f32.xlu1 %v6065_v9  ;;  %6084 = vpow2.f32 %v1872_v61  ;;  %v9030_v9 = vld [vmem:[#allocation34_spill] sm:$0xff] }
 0x2f5   : > { %6086 = vpow2.f32 %v1902_v17  ;;  %v9032_v17 = vld [vmem:[#allocation37_spill] sm:$0xff] }
 0x2f6   : > { %v1904_v30 = vmul.f32 1.442695, %v1851_v23  ;;  %6088 = vpow2.f32 %v1908_v46  ;;  %v6079_v59 = vpop.eup %6078  ;;  %v9033_v46 = vld [vmem:[#allocation36_spill] sm:$0xff] }
 0x2f7   : > { %v1718_v42 = vpop.permute.xlu0 %1717  ;;  %2002 = vadd.xlane.f32.xlu0 %v6077_v48  ;;  %v1723_v62 = vpop.permute.xlu1 %1722 }
 0x2f8   : > { %v1840_v20 = vsub.f32 %v9028_v7, %v1723_v62  ;;  %1996 = vadd.xlane.f32.xlu1 %v6067_v18  ;;  %6090 = vpow2.f32 %v1904_v30  ;;  %v1839_v45 = vsub.f32 %v9029_v26, %v1718_v42  ;;  %v6081_v38 = vpop.eup %6080  ;;  %v1884_v62 = vmul.f32 1.442695, %v1841_v28  ;;  %v9034_v7 = vld [vmem:[#allocation33_spill] sm:$0xff] }
 0x2fa   : > { %v1882_v21 = vmul.f32 1.442695, %v1840_v20  ;;  %v6083_v43 = vpop.eup %6082  ;;  %v1880_v61 = vmul.f32 1.442695, %v1839_v45  ;;  %v1857_v20 = vsub.f32 %v9034_v7, %v1808_v31  ;;  %v9035_v45 = vld [vmem:[#allocation38_spill] sm:$0xff]  ;;  %v9040_v7 = vld [vmem:[#allocation44_spill] sm:$0xff] }
 0x2fb   : > { %v1798_v15 = vpop.permute.xlu0 %1797  ;;  %2034 = vadd.xlane.f32.xlu0 %v6079_v59  ;;  %v1803_v51 = vpop.permute.xlu1 %1802 }
 0x2fc   : > { %v1856_v5 = vsub.f32 %v9030_v9, %v1803_v51  ;;  %2028 = vadd.xlane.f32.xlu1 %v6071_v22  ;;  %6092 = vpow2.f32 %v1882_v21  ;;  %v1855_v6 = vsub.f32 %v9032_v17, %v1798_v15  ;;  %v2346_v22 = vpack.c.bf16 %v6081_v38, %v6077_v48 }
 0x2fd   : > { %v1916_v48 = vmul.f32 1.442695, %v1857_v20 }
 0x2fe   : > { %v1914_v14 = vmul.f32 1.442695, %v1856_v5  ;;  %v6085_v29 = vpop.eup %6084  ;;  %v1912_v15 = vmul.f32 1.442695, %v1855_v6 }
 0x2ff   : > { %v1748_v11 = vpop.permute.xlu0 %1747  ;;  %1998 = vadd.xlane.f32.xlu0 %v6083_v43  ;;  %v1713_v18 = vpop.permute.xlu1 %1712  ;;  %v2345_v23 = vpack.c.bf16 %v6085_v29, %v6083_v43 }
 0x300   : > { %v1838_v24 = vsub.f32 %v9033_v46, %v1713_v18  ;;  %2024 = vadd.xlane.f32.xlu1 %v6075_v63  ;;  %v6087_v30 = vpop.eup %6086  ;;  %6094 = vpow2.f32 %v1914_v14  ;;  %v9036_v14 = vld [vmem:[#allocation43_spill] sm:$0xff] }
 0x301   : > { %v6089_v42 = vpop.eup %6088  ;;  %5635 = vmatprep.mubr.bf16.mxu0 %v2345_v23  ;;  %6096 = vpow2.f32 %v1880_v61  ;;  %v9037_v61 = vld [vmem:[#allocation40_spill] sm:$0xff] }
 0x302   : > { %v1878_v58 = vmul.f32 1.442695, %v1838_v24  ;;  %v6091_v21 = vpop.eup %6090  ;;  %5636 = vmatmul.mubr.bf16.gmra.mrb[20].mxu0 %v2346_v22  ;;  %v2354_v5 = vpack.c.bf16 %v6089_v42, %v6079_v59  ;;  %v9039_v24 = vld [vmem:[#allocation45_spill] sm:$0xff] }
 0x303   : > { %v1738_v51 = vpop.permute.xlu0 %1737  ;;  %2030 = vadd.xlane.f32.xlu0 %v6087_v30  ;;  %v1793_v26 = vpop.permute.xlu1 %1792  ;;  %v2353_v63 = vpack.c.bf16 %v6091_v21, %v6087_v30 }
 0x304   : > { %v1854_v9 = vsub.f32 %v9035_v45, %v1793_v26  ;;  %2004 = vadd.xlane.f32.xlu1 %v6081_v38  ;;  %6098 = vpow2.f32 %v1878_v58  ;;  %v1843_v18 = vsub.f32 %v9036_v14, %v1738_v51  ;;  %v9038_v38 = vld [vmem:[#allocation39_spill] sm:$0xff]  ;;  %v9041_v45 = vld [vmem:[#allocation41_spill] sm:$0xff] }
 0x305   : > { %6100 = vpow2.f32 %v1884_v62  ;;  %5667 = vmatprep.mubr.bf16.mxu1 %v2353_v63  ;;  %v1845_v6 = vsub.f32 %v9038_v38, %v1748_v11  ;;  %v9043_v38 = vld [vmem:[#allocation42_spill] sm:$0xff] }
 0x306   : > { %v1910_v43 = vmul.f32 1.442695, %v1854_v9  ;;  %v6093_v31 = vpop.eup %6092  ;;  %5668 = vmatmul.mubr.bf16.gmra.mrb[20].mxu1 %v2354_v5  ;;  %6102 = vpow2.f32 %v1912_v15  ;;  %v1888_v22 = vmul.f32 1.442695, %v1843_v18  ;;  %v9042_v5 = vld [vmem:[#allocation46_spill] sm:$0xff] }
 0x307   : > { %v1818_v49 = vpop.permute.xlu0 %1817  ;;  %v1743_v28 = vpop.permute.xlu1 %1742  ;;  %2010 = vadd.xlane.f32.xlu0 %v6093_v31  ;;  %v1892_v51 = vmul.f32 1.442695, %v1845_v6 }
 0x308   : > { %v1844_v17 = vsub.f32 %v9037_v61, %v1743_v28  ;;  %2036 = vadd.xlane.f32.xlu1 %v6089_v42  ;;  %6104 = vpow2.f32 %v1910_v43  ;;  %v1859_v23 = vsub.f32 %v9039_v24, %v1818_v49 }
 0x309   : > { %6106 = vpow2.f32 %v1916_v48 }
 0x30a   : > { %v1890_v59 = vmul.f32 1.442695, %v1844_v17  ;;  %v6095_v46 = vpop.eup %6094  ;;  %v1920_v15 = vmul.f32 1.442695, %v1859_v23 }
 0x30b   : > { %v1733_v30 = vpop.permute.xlu1 %1732  ;;  %v1828_v62 = vpop.permute.xlu0 %1827  ;;  %2042 = vadd.xlane.f32.xlu0 %v6095_v46 }
 0x30c   : > { %v1842_v20 = vsub.f32 %v9040_v7, %v1733_v30  ;;  %2000 = vadd.xlane.f32.xlu1 %v6085_v29  ;;  %6108 = vpow2.f32 %v1890_v59  ;;  %v6097_v58 = vpop.eup %6096  ;;  %v1861_v9 = vsub.f32 %v9041_v45, %v1828_v62 }
 0x30d   : > { %6110 = vpow2.f32 %v1888_v22 }
 0x30e   : > { %v1886_v26 = vmul.f32 1.442695, %v1842_v20  ;;  %v6099_v42 = vpop.eup %6098  ;;  %v1924_v18 = vmul.f32 1.442695, %v1861_v9 }
 0x30f   : > { %v1813_v11 = vpop.permute.xlu1 %1812  ;;  %v6101_v63 = vpop.eup %6100  ;;  %2006 = vadd.xlane.f32.xlu0 %v6099_v42  ;;  %v2347_v43 = vpack.c.bf16 %v6097_v58, %v6099_v42 }
 0x310   : > { %v1858_v48 = vsub.f32 %v9042_v5, %v1813_v11  ;;  %2032 = vadd.xlane.f32.xlu1 %v6091_v21  ;;  %6112 = vpow2.f32 %v1886_v26  ;;  %v2348_v49 = vpack.c.bf16 %v6101_v63, %v6093_v31  ;;  %v6103_v28 = vpop.eup %6102  ;;  %v7579_v62 = vpop.permute.xlu0 %2153 }
 0x311   : > { %6114 = vpow2.f32 %v1892_v51  ;;  %5639 = vmatprep.mubr.bf16.mxu0 %v2347_v43 }
 0x312   : > { %v1918_v29 = vmul.f32 1.442695, %v1858_v48  ;;  %v6105_v14 = vpop.eup %6104  ;;  %6116 = vpow2.f32 %v1920_v15  ;;  %5640 = vmatmul.mubr.bf16.gmra.mrb[24].mxu0 %v2348_v49  ;;  %v9044_v48 = vld [vmem:[#allocation48_spill] sm:$0xff] }
 0x313   : > { %v1823_v61 = vpop.permute.xlu1 %1822  ;;  %v6107_v17 = vpop.eup %6106  ;;  %2038 = vadd.xlane.f32.xlu0 %v6105_v14  ;;  %v2355_v59 = vpack.c.bf16 %v6103_v28, %v6105_v14  ;;  %v9045_v43 = vsub.f32 %v9044_v48, %v7333_v57 }
 0x314   : > { %6118 = vpow2.f32 %v1918_v29  ;;  %v1860_v6 = vsub.f32 %v9043_v38, %v1823_v61  ;;  %2012 = vadd.xlane.f32.xlu1 %v6101_v63  ;;  %v2356_v21 = vpack.c.bf16 %v6107_v17, %v6095_v46  ;;  %v7581_v45 = vpop.permute.xlu0 %2168 }
 0x315   : > { %5671 = vmatprep.mubr.bf16.mxu1 %v2355_v59  ;;  %6120 = vpow2.f32 %v1924_v18  ;;  %v1668_v49 = vmul.f32 1.442695, %v9045_v43  ;;  %v1928_v43 = vld [vmem:[#allocation3 + $0x10] sm:$0xff] }
 0x316   : > { %v1922_v24 = vmul.f32 1.442695, %v1860_v6  ;;  %v6109_v31 = vpop.eup %6108  ;;  %5672 = vmatmul.mubr.bf16.gmra.mrb[24].mxu1 %v2356_v21 }
 0x317   : > { %2018 = vadd.xlane.f32.xlu0 %v6109_v31  ;;  %v6111_v23 = vpop.eup %6110 }
 0x318   : > { %6122 = vpow2.f32 %v1922_v24  ;;  %2044 = vadd.xlane.f32.xlu1 %v6107_v17  ;;  %v7583_v11 = vpop.permute.xlu0 %2178 }
 0x319   : > { %6124 = vpow2.f32 %v1668_v49 }
 0x31a   : > { %v6113_v30 = vpop.eup %6112 }
 0x31b   : > { %v6115_v22 = vpop.eup %6114  ;;  %v2349_v7 = vpack.c.bf16 %v6111_v23, %v6113_v30 }
 0x31c   : > { %2008 = vadd.xlane.f32.xlu1 %v6097_v58  ;;  %v6117_v20 = vpop.eup %6116  ;;  %v2350_v51 = vpack.c.bf16 %v6115_v22, %v6109_v31  ;;  %v7585_v58 = vpop.permute.xlu1 %2158 }
 0x31d   : > { %5643 = vmatprep.mubr.bf16.mxu0 %v2349_v7  ;;  %v7587_v63 = vpop.permute.xlu0 %2188 }
 0x31e   : > { %v6119_v26 = vpop.eup %6118  ;;  %5644 = vmatmul.mubr.bf16.gmra.mrb[28].mxu0 %v2350_v51 }
 0x31f   : > { %v2357_v46 = vpack.c.bf16 %v6117_v20, %v6119_v26  ;;  %v6121_v42 = vpop.eup %6120 }
 0x320   : > { %2040 = vadd.xlane.f32.xlu1 %v6103_v28  ;;  %v7589_v5 = vpop.permute.xlu1 %2163  ;;  %v9046_v28 = vld [vmem:[#allocation49_spill] sm:$0xff] }
 0x321   : > { %5675 = vmatprep.mubr.bf16.mxu1 %v2357_v46  ;;  %v9047_v29 = vsub.f32 %v9046_v28, %v7336_v50  ;;  %v7597_v18 = vpop.permute.xlu0 %2238  ;;  %v1960_v28 = vmul.f32 %v7425_v0, %v1928_v43  ;;  %v1926_v43 = vld [vmem:[#allocation3] sm:$0xff] }
 0x322   : > { %v6123_v15 = vpop.eup %6122 }
 0x323   : > { %2050 = vadd.xlane.f32.xlu0 %v6123_v15  ;;  %v2358_v9 = vpack.c.bf16 %v6121_v42, %v6123_v15  ;;  %v1666_v14 = vmul.f32 1.442695, %v9047_v29  ;;  %v7605_v6 = vpop.eup %6124 }
 0x324   : > { %2020 = vadd.xlane.f32.xlu1 %v6115_v22  ;;  %v7599_v61 = vpop.permute.xlu1 %2173 }
 0x325   : > { %5676 = vmatmul.mubr.bf16.gmra.mrb[28].mxu1 %v2358_v9  ;;  %6126 = vpow2.f32 %v1666_v14  ;;  %v7601_v17 = vpop.permute.xlu0 %2248  ;;  %v1944_v14 = vld [vmem:[#allocation3 + $0x90] sm:$0xff] }
 0x327   : > { %2014 = vadd.xlane.f32.xlu0 %v6113_v30 }
 0x328   : > { %2052 = vadd.xlane.f32.xlu1 %v6121_v42  ;;  %v7603_v38 = vpop.permute.xlu1 %2183 }
 0x329   : > { %v7609_v57 = vpop.permute.xlu0 %2258 }
 0x32b   : > { %2046 = vadd.xlane.f32.xlu0 %v6119_v26 }
 0x32c   : > { %2016 = vadd.xlane.f32.xlu1 %v6111_v23  ;;  %v7611_v21 = vpop.permute.xlu1 %2233 }
 0x32d   : > { %v7615_v50 = vpop.permute.xlu0 %2268 }
 0x32f   : > { %v7607_v59 = vpop.eup %6126 }
 0x330   : > { %2048 = vadd.xlane.f32.xlu1 %v6117_v20  ;;  %v7617_v24 = vpop.permute.xlu1 %2243 }
 0x331   : > { %v7619_v31 = vpop.permute.xlu0 %2208 }
 0x332   : > { %9048 = vst [vmem:[#allocation47_spill] sm:$0xff] %v7619_v31 }
 0x334   : > { %v7621_v23 = vpop.permute.xlu1 %2253 }
 0x335   : > { %v7623_v30 = vpop.permute.xlu0 %2288 }
 0x336   : > { %9049 = vst [vmem:[#allocation50_spill] sm:$0xff] %v7623_v30 }
 0x338   : > { %v7625_v22 = vpop.permute.xlu1 %2263 }
 0x339   : > { %v7627_v7 = vpop.permute.xlu0 %2198 }
 0x33a   : > { %9050 = vst [vmem:[#allocation15_spill] sm:$0xff] %v7627_v7 }
 0x33c   : > { %v7629_v20 = vpop.permute.xlu1 %2203 }
 0x33d   : > { %v7631_v51 = vpop.permute.xlu0 %2278 }
 0x33e   : > { %9051 = vst [vmem:[#allocation16_spill] sm:$0xff] %v7631_v51 }
 0x340   : > { %v7633_v26 = vpop.permute.xlu1 %2283 }
 0x341   : > { %2303 = vperm.xlu1 %5950, %v7607_v59   ;;  %2308 = vperm.xlu0 %5951, %v7605_v6   ;;  %9052 = vst [vmem:[#allocation18_spill] sm:$0xff] %v7633_v26  ;;  %v7635_v46 = vpop.permute.xlu0 %2228 }
 0x342   : > { %9053 = vst [vmem:[#allocation17_spill] sm:$0xff] %v7635_v46  ;;  %v1976_v46 = vmul.f32 %v7471_v34, %v1944_v14  ;;  %v1958_v34 = vmul.f32 %v7401_v4, %v1926_v43 }
 0x344   : > { %v7637_v42 = vpop.permute.xlu1 %2193 }
 0x345   : > { %v7639_v15 = vpop.permute.xlu0 %2218 }
 0x346   : > { %9054 = vst [vmem:[#allocation19_spill] sm:$0xff] %v7639_v15  ;;  %v1942_v15 = vld [vmem:[#allocation3 + $0x80] sm:$0xff] }
 0x348   : > { %v7641_v9 = vpop.permute.xlu1 %2273 }
 0x349   : > { %9055 = vst [vmem:[#allocation20_spill] sm:$0xff] %v7641_v9  ;;  %v7643_v48 = vpop.permute.xlu0 %2298 }
 0x34a   : > { %9056 = vst [vmem:[#allocation22_spill] sm:$0xff] %v7643_v48  ;;  %v1974_v48 = vmul.f32 %v7460_v54, %v1942_v15 }
 0x34c   : > { %v7645_v49 = vpop.permute.xlu1 %2223 }
 0x34d   : > { %9057 = vst [vmem:[#allocation21_spill] sm:$0xff] %v7645_v49  ;;  %v1927_v49 = vld [vmem:[#allocation3 + $0x8] sm:$0xff] }
 0x350   : > { %v7648_v30 = vpop.permute.xlu1 %2213 }
 0x354   : > { %v7654_v31 = vpop.permute.xlu1 %2293 }
 0x355   : > { %9058 = vst [vmem:[#allocation24_spill] sm:$0xff] %v7654_v31 }
 0x374   : > { %v1995_v29 = vpop.xlane.xlu0 %1994 }
 0x375   : > { %v2056_v51 = vadd.f32 %v1995_v29, %v1960_v28  ;;  %v1959_v28 = vmul.f32 %v7416_v56, %v1927_v49  ;;  %v1932_v29 = vld [vmem:[#allocation3 + $0x30] sm:$0xff]  ;;  %v1945_v49 = vld [vmem:[#allocation3 + $0x98] sm:$0xff] }
 0x376   : > { %v1964_v54 = vmul.f32 %v7451_v12, %v1932_v29  ;;  %v1930_v12 = vld [vmem:[#allocation3 + $0x20] sm:$0xff]  ;;  %v1943_v29 = vld [vmem:[#allocation3 + $0x88] sm:$0xff] }
 0x377   : > { %2089 = vst.msk [vmem:[#allocation3 + $0x10] sm:$0xff] %vm2086_vm3, %v2056_v51 }
 0x378   : > { %v2027_v26 = vpop.xlane.xlu0 %2026 }
 0x379   : > { %v2072_v7 = vadd.f32 %v2027_v26, %v1976_v46  ;;  %v1929_v46 = vld [vmem:[#allocation3 + $0x18] sm:$0xff] }
 0x37b   : > { %2105 = vst.msk [vmem:[#allocation3 + $0x90] sm:$0xff] %vm2086_vm3, %v2072_v7 }
 0x37c   : > { %v2023_v9 = vpop.xlane.xlu0 %2022 }
 0x37d   : > { %v2070_v0 = vadd.f32 %v2023_v9, %v1974_v48  ;;  %v1961_v9 = vmul.f32 %v7407_v3, %v1929_v46  ;;  %v1948_v48 = vld [vmem:[#allocation3 + $0xb0] sm:$0xff]  ;;  %v1962_v3 = vmul.f32 %v7443_v37, %v1930_v12  ;;  %v1975_v46 = vmul.f32 %v7441_v16, %v1943_v29 }
 0x37e   : > { %v1980_v4 = vmul.f32 %v7493_v13, %v1948_v48  ;;  %v1946_v13 = vld [vmem:[#allocation3 + $0xa0] sm:$0xff]  ;;  %v1952_v12 = vld [vmem:[#allocation3 + $0xd0] sm:$0xff] }
 0x37f   : > { %2103 = vst.msk [vmem:[#allocation3 + $0x80] sm:$0xff] %vm2086_vm3, %v2070_v0 }
 0x380   : > { %v1993_v51 = vpop.xlane.xlu0 %1992 }
 0x381   : > { %v2055_v14 = vadd.f32 %v1993_v51, %v1959_v28  ;;  %v1991_v26 = vpop.xlane.xlu1 %1990  ;;  %v1977_v28 = vmul.f32 %v7449_v10, %v1945_v49  ;;  %v1978_v10 = vmul.f32 %v7482_v36, %v1946_v13  ;;  %v1949_v49 = vld [vmem:[#allocation3 + $0xb8] sm:$0xff] }
 0x382   : > { %v2054_v7 = vadd.f32 %v1991_v26, %v1958_v34 }
 0x383   : > { %2088 = vst.msk [vmem:[#allocation3 + $0x8] sm:$0xff] %vm2086_vm3, %v2055_v14 }
 0x384   : > { %2087 = vst.msk [vmem:[#allocation3] sm:$0xff] %vm2086_vm3, %v2054_v7  ;;  %v2003_v15 = vpop.xlane.xlu0 %2002 }
 0x385   : > { %v2060_v0 = vadd.f32 %v2003_v15, %v1964_v54  ;;  %v1997_v56 = vpop.xlane.xlu1 %1996  ;;  %v1933_v54 = vld [vmem:[#allocation3 + $0x38] sm:$0xff] }
 0x386   : > { %v2057_v31 = vadd.f32 %v1997_v56, %v1961_v9  ;;  %v1965_v48 = vmul.f32 %v7427_v53, %v1933_v54  ;;  %v1936_v56 = vld [vmem:[#allocation3 + $0x50] sm:$0xff]  ;;  %v1984_v53 = vmul.f32 %v7515_v55, %v1952_v12  ;;  %v1937_v55 = vld [vmem:[#allocation3 + $0x58] sm:$0xff]  ;;  %v1935_v12 = vld [vmem:[#allocation3 + $0x48] sm:$0xff] }
 0x387   : > { %2093 = vst.msk [vmem:[#allocation3 + $0x30] sm:$0xff] %vm2086_vm3, %v2060_v0  ;;  %v1968_v16 = vmul.f32 %v7504_v52, %v1936_v56  ;;  %v1947_v52 = vld [vmem:[#allocation3 + $0xa8] sm:$0xff] }
 0x388   : > { %2090 = vst.msk [vmem:[#allocation3 + $0x18] sm:$0xff] %vm2086_vm3, %v2057_v31  ;;  %v2035_v43 = vpop.xlane.xlu0 %2034 }
 0x389   : > { %v2076_v51 = vadd.f32 %v2035_v43, %v1980_v4  ;;  %v2029_v34 = vpop.xlane.xlu1 %2028  ;;  %v1981_v43 = vmul.f32 %v7473_v32, %v1949_v49  ;;  %v1940_v49 = vld [vmem:[#allocation3 + $0x70] sm:$0xff] }
 0x38a   : > { %v2073_v14 = vadd.f32 %v2029_v34, %v1977_v28 }
 0x38b   : > { %2109 = vst.msk [vmem:[#allocation3 + $0xb0] sm:$0xff] %vm2086_vm3, %v2076_v51  ;;  %v1931_v51 = vld [vmem:[#allocation3 + $0x28] sm:$0xff] }
 0x38c   : > { %2106 = vst.msk [vmem:[#allocation3 + $0x98] sm:$0xff] %vm2086_vm3, %v2073_v14  ;;  %v1999_v26 = vpop.xlane.xlu0 %1998  ;;  %v1963_v14 = vmul.f32 %v7418_v39, %v1931_v51 }
 0x38d   : > { %v2058_v7 = vadd.f32 %v1999_v26, %v1962_v3  ;;  %v2025_v31 = vpop.xlane.xlu1 %2024 }
 0x38e   : > { %v2071_v15 = vadd.f32 %v2025_v31, %v1975_v46  ;;  %v1934_v46 = vld [vmem:[#allocation3 + $0x40] sm:$0xff]  ;;  %v1979_v31 = vmul.f32 %v7462_v25, %v1947_v52 }
 0x38f   : > { %2091 = vst.msk [vmem:[#allocation3 + $0x20] sm:$0xff] %vm2086_vm3, %v2058_v7  ;;  %v1966_v7 = vmul.f32 %v7523_v33, %v1934_v46  ;;  %v1953_v33 = vld [vmem:[#allocation3 + $0xd8] sm:$0xff] }
 0x390   : > { %2104 = vst.msk [vmem:[#allocation3 + $0x88] sm:$0xff] %vm2086_vm3, %v2071_v15  ;;  %v2031_v9 = vpop.xlane.xlu0 %2030 }
 0x391   : > { %v2074_v37 = vadd.f32 %v2031_v9, %v1978_v10  ;;  %v2005_v0 = vpop.xlane.xlu1 %2004  ;;  %v1950_v10 = vld [vmem:[#allocation3 + $0xc0] sm:$0xff] }
 0x392   : > { %v2061_v4 = vadd.f32 %v2005_v0, %v1965_v48  ;;  %v1982_v48 = vmul.f32 %v7529_v60, %v1950_v10 }
 0x393   : > { %2107 = vst.msk [vmem:[#allocation3 + $0xa0] sm:$0xff] %vm2086_vm3, %v2074_v37  ;;  %v1969_v37 = vmul.f32 %v7484_v1, %v1937_v55  ;;  %v1967_v1 = vmul.f32 %v7506_v47, %v1935_v12  ;;  %v2137_v12 = vld [vmem:[#allocation4 + $0x90] sm:$0xff] }
 0x394   : > { %2094 = vst.msk [vmem:[#allocation3 + $0x38] sm:$0xff] %vm2086_vm3, %v2061_v4  ;;  %v2011_v28 = vpop.xlane.xlu0 %2010 }
 0x395   : > { %v2037_v36 = vpop.xlane.xlu1 %2036  ;;  %v2064_v34 = vadd.f32 %v2011_v28, %v1968_v16  ;;  %v1972_v16 = vmul.f32 %v7535_v41, %v1940_v49  ;;  %v1955_v49 = vld [vmem:[#allocation3 + $0xe8] sm:$0xff] }
 0x396   : > { %v2077_v29 = vadd.f32 %v2037_v36, %v1981_v43  ;;  %v1985_v43 = vmul.f32 %v7495_v8, %v1953_v33 }
 0x397   : > { %2097 = vst.msk [vmem:[#allocation3 + $0x50] sm:$0xff] %vm2086_vm3, %v2064_v34 }
 0x398   : > { %2110 = vst.msk [vmem:[#allocation3 + $0xb8] sm:$0xff] %vm2086_vm3, %v2077_v29  ;;  %v2043_v3 = vpop.xlane.xlu0 %2042  ;;  %v1951_v29 = vld [vmem:[#allocation3 + $0xc8] sm:$0xff] }
 0x399   : > { %v2001_v26 = vpop.xlane.xlu1 %2000  ;;  %v2080_v13 = vadd.f32 %v2043_v3, %v1984_v53  ;;  %v1983_v41 = vmul.f32 %v7517_v35, %v1951_v29  ;;  %v1941_v3 = vld [vmem:[#allocation3 + $0x78] sm:$0xff] }
 0x39a   : > { %v2059_v32 = vadd.f32 %v2001_v26, %v1963_v14  ;;  %v1956_v14 = vld [vmem:[#allocation3 + $0xf0] sm:$0xff] }
 0x39b   : > { %2113 = vst.msk [vmem:[#allocation3 + $0xd0] sm:$0xff] %vm2086_vm3, %v2080_v13  ;;  %v1988_v46 = vmul.f32 %v7607_v59, %v1956_v14  ;;  %v1973_v13 = vmul.f32 %v7525_v40, %v1941_v3  ;;  %v1954_v59 = vld [vmem:[#allocation3 + $0xe0] sm:$0xff]  ;;  %v2329_v3 = vmul.f32 %v7617_v24, %v2137_v12  ;;  %v2130_v12 = vld [vmem:[#allocation4 + $0x58] sm:$0xff] }
 0x39c   : > { %2092 = vst.msk [vmem:[#allocation3 + $0x28] sm:$0xff] %vm2086_vm3, %v2059_v32  ;;  %v2007_v54 = vpop.xlane.xlu0 %2006  ;;  %v1938_v32 = vld [vmem:[#allocation3 + $0x60] sm:$0xff]  ;;  %v1986_v40 = vmul.f32 %v7544_v27, %v1954_v59  ;;  %v2122_v27 = vld [vmem:[#allocation4 + $0x18] sm:$0xff]  ;;  %v2141_v59 = vld [vmem:[#allocation4 + $0xb0] sm:$0xff] }
 0x39d   : > { %v2033_v15 = vpop.xlane.xlu1 %2032  ;;  %v2062_v9 = vadd.f32 %v2007_v54, %v1966_v7  ;;  %v1970_v35 = vmul.f32 %v7541_v19, %v1938_v32 }
 0x39e   : > { %v2075_v39 = vadd.f32 %v2033_v15, %v1979_v31  ;;  %v1957_v31 = vld [vmem:[#allocation3 + $0xf8] sm:$0xff] }
 0x39f   : > { %2095 = vst.msk [vmem:[#allocation3 + $0x40] sm:$0xff] %vm2086_vm3, %v2062_v9  ;;  %v1989_v10 = vmul.f32 %v7605_v6, %v1957_v31  ;;  %v1987_v6 = vmul.f32 %v7537_v44, %v1955_v49  ;;  %v2140_v49 = vld [vmem:[#allocation4 + $0xa8] sm:$0xff] }
 0x3a0   : > { %2108 = vst.msk [vmem:[#allocation3 + $0xa8] sm:$0xff] %vm2086_vm3, %v2075_v39  ;;  %v2039_v0 = vpop.xlane.xlu0 %2038  ;;  %v1939_v39 = vld [vmem:[#allocation3 + $0x68] sm:$0xff] }
 0x3a1   : > { %v2013_v56 = vpop.xlane.xlu1 %2012  ;;  %v2078_v4 = vadd.f32 %v2039_v0, %v1982_v48  ;;  %v1971_v0 = vmul.f32 %v7531_v2, %v1939_v39  ;;  %v2139_v39 = vld [vmem:[#allocation4 + $0xa0] sm:$0xff] }
 0x3a2   : > { %v2065_v25 = vadd.f32 %v2013_v56, %v1969_v37 }
 0x3a3   : > { %2111 = vst.msk [vmem:[#allocation3 + $0xc0] sm:$0xff] %vm2086_vm3, %v2078_v4  ;;  %v2121_v4 = vld [vmem:[#allocation4 + $0x10] sm:$0xff] }
 0x3a4   : > { %2098 = vst.msk [vmem:[#allocation3 + $0x58] sm:$0xff] %vm2086_vm3, %v2065_v25  ;;  %v2019_v28 = vpop.xlane.xlu0 %2018 }
 0x3a5   : > { %v2045_v36 = vpop.xlane.xlu1 %2044  ;;  %v2068_v60 = vadd.f32 %v2019_v28, %v1972_v16  ;;  %v2119_v16 = vld [vmem:[#allocation4] sm:$0xff]  ;;  %v2120_v28 = vld [vmem:[#allocation4 + $0x8] sm:$0xff] }
 0x3a6   : > { %v2081_v51 = vadd.f32 %v2045_v36, %v1985_v43  ;;  %v2313_v36 = vmul.f32 %v7589_v5, %v2121_v4  ;;  %v2311_v2 = vmul.f32 %v7579_v62, %v2119_v16  ;;  %v2312_v44 = vmul.f32 %v7585_v58, %v2120_v28 }
 0x3a7   : > { %2101 = vst.msk [vmem:[#allocation3 + $0x70] sm:$0xff] %vm2086_vm3, %v2068_v60 }
 0x3a8   : > { %2114 = vst.msk [vmem:[#allocation3 + $0xd8] sm:$0xff] %vm2086_vm3, %v2081_v51  ;;  %v2314_v51 = vmul.f32 %v7581_v45, %v2122_v27 }
 0x3a9   : > { %v2009_v34 = vpop.xlane.xlu1 %2008 }
 0x3aa   : > { %v2063_v53 = vadd.f32 %v2009_v34, %v1967_v1  ;;  %v2135_v1 = vld [vmem:[#allocation4 + $0x80] sm:$0xff] }
 0x3ab   : > { %v2327_v62 = vmul.f32 %v7611_v21, %v2135_v1 }
 0x3ac   : > { %2096 = vst.msk [vmem:[#allocation3 + $0x48] sm:$0xff] %vm2086_vm3, %v2063_v53  ;;  %v2138_v53 = vld [vmem:[#allocation4 + $0x98] sm:$0xff] }
 0x3ad   : > { %v2041_v8 = vpop.xlane.xlu1 %2040 }
 0x3ae   : > { %v2079_v26 = vadd.f32 %v2041_v8, %v1983_v41  ;;  %v2136_v8 = vld [vmem:[#allocation4 + $0x88] sm:$0xff] }
 0x3af   : > { %v2328_v32 = vmul.f32 %v7597_v18, %v2136_v8  ;;  %v2146_v8 = vld [vmem:[#allocation4 + $0xd8] sm:$0xff] }
 0x3b0   : > { %2112 = vst.msk [vmem:[#allocation3 + $0xc8] sm:$0xff] %vm2086_vm3, %v2079_v26  ;;  %v2051_v52 = vpop.xlane.xlu0 %2050 }
 0x3b1   : > { %v2084_v47 = vadd.f32 %v2051_v52, %v1988_v46  ;;  %v2021_v7 = vpop.xlane.xlu1 %2020  ;;  %v2330_v52 = vmul.f32 %v7601_v17, %v2138_v53  ;;  %v2125_v17 = vld [vmem:[#allocation4 + $0x30] sm:$0xff]  ;;  %v2143_v53 = vld [vmem:[#allocation4 + $0xc0] sm:$0xff] }
 0x3b2   : > { %v2069_v54 = vadd.f32 %v2021_v7, %v1973_v13  ;;  %v2317_v18 = vmul.f32 %v7603_v38, %v2125_v17  ;;  %v9064_v17 = vld [vmem:[#allocation16_spill] sm:$0xff] }
 0x3b3   : > { %2117 = vst.msk [vmem:[#allocation3 + $0xf0] sm:$0xff] %vm2086_vm3, %v2084_v47 }
 0x3b4   : > { %2102 = vst.msk [vmem:[#allocation3 + $0x78] sm:$0xff] %vm2086_vm3, %v2069_v54  ;;  %v2015_v15 = vpop.xlane.xlu0 %2014  ;;  %v2123_v54 = vld [vmem:[#allocation4 + $0x20] sm:$0xff] }
 0x3b5   : > { %v2066_v55 = vadd.f32 %v2015_v15, %v1970_v35  ;;  %v2053_v9 = vpop.xlane.xlu1 %2052  ;;  %v2126_v35 = vld [vmem:[#allocation4 + $0x38] sm:$0xff]  ;;  %v2124_v15 = vld [vmem:[#allocation4 + $0x28] sm:$0xff] }
 0x3b6   : > { %v2085_v48 = vadd.f32 %v2053_v9, %v1989_v10  ;;  %v2315_v10 = vmul.f32 %v7599_v61, %v2123_v54  ;;  %v2318_v9 = vmul.f32 %v7587_v63, %v2126_v35  ;;  %v2331_v61 = vmul.f32 %v7621_v23, %v2139_v39  ;;  %v2134_v39 = vld [vmem:[#allocation4 + $0x78] sm:$0xff] }
 0x3b7   : > { %2099 = vst.msk [vmem:[#allocation3 + $0x60] sm:$0xff] %vm2086_vm3, %v2066_v55 }
 0x3b8   : > { %2118 = vst.msk [vmem:[#allocation3 + $0xf8] sm:$0xff] %vm2086_vm3, %v2085_v48  ;;  %v2047_v37 = vpop.xlane.xlu0 %2046 }
 0x3b9   : > { %v2082_v19 = vadd.f32 %v2047_v37, %v1986_v40  ;;  %v2017_v56 = vpop.xlane.xlu1 %2016  ;;  %v2316_v37 = vmul.f32 %v7583_v11, %v2124_v15 }
 0x3ba   : > { %v2067_v33 = vadd.f32 %v2017_v56, %v1971_v0  ;;  %v2142_v0 = vld [vmem:[#allocation4 + $0xb8] sm:$0xff] }
 0x3bb   : > { %2115 = vst.msk [vmem:[#allocation3 + $0xe0] sm:$0xff] %vm2086_vm3, %v2082_v19 }
 0x3bc   : > { %2100 = vst.msk [vmem:[#allocation3 + $0x68] sm:$0xff] %vm2086_vm3, %v2067_v33  ;;  %v2333_v33 = vmul.f32 %v7625_v22, %v2141_v59  ;;  %v2133_v59 = vld [vmem:[#allocation4 + $0x70] sm:$0xff] }
 0x3bd   : > { %v2049_v25 = vpop.xlane.xlu1 %2048 }
 0x3be   : > { %v2083_v43 = vadd.f32 %v2049_v25, %v1987_v6  ;;  %v2334_v25 = vmul.f32 %v7615_v50, %v2142_v0  ;;  %v2129_v50 = vld [vmem:[#allocation4 + $0x50] sm:$0xff] }
 0x3c0   : > { %2116 = vst.msk [vmem:[#allocation3 + $0xe8] sm:$0xff] %vm2086_vm3, %v2083_v43  ;;  %v2332_v43 = vmul.f32 %v7609_v57, %v2140_v49  ;;  %v2321_v57 = vmul.f32 %v7629_v20, %v2129_v50  ;;  %v9068_v50 = vld [vmem:[#allocation24_spill] sm:$0xff] }
 0x3c1   : > { %v5633_v60 = vpop.f32.mrb[16].mxu0 }
 0x3c2   : > { %v2651_v34 = vadd.f32 %v5633_v60, %v2313_v36  ;;  %v2441_v29 = vpop.f32.mrb[17].mxu0  ;;  %v2128_v60 = vld [vmem:[#allocation4 + $0x48] sm:$0xff] }
 0x3c3   : > { %v2649_v41 = vadd.f32 %v2441_v29, %v2311_v2  ;;  %v5634_v14 = vpop.f32.mrb[18].mxu0  ;;  %v2127_v2 = vld [vmem:[#allocation4 + $0x40] sm:$0xff] }
 0x3c4   : > { %2683 = vst.msk [vmem:[#allocation4 + $0x10] sm:$0xff] %vm1043_vm2, %v2651_v34  ;;  %v2652_v5 = vadd.f32 %v5634_v14, %v2314_v51  ;;  %v2444_v26 = vpop.f32.mrb[19].mxu0  ;;  %v2145_v51 = vld [vmem:[#allocation4 + $0xd0] sm:$0xff]  ;;  %v2319_v1 = vmul.f32 %v7637_v42, %v2127_v2  ;;  %v9059_v29 = vld [vmem:[#allocation47_spill] sm:$0xff] }
 0x3c5   : > { %2681 = vst.msk [vmem:[#allocation4] sm:$0xff] %vm1043_vm2, %v2649_v41  ;;  %v2650_v45 = vadd.f32 %v2444_v26, %v2312_v44  ;;  %v5665_v46 = vpop.f32.mrb[16].mxu1  ;;  %v2322_v44 = vmul.f32 %v9059_v29, %v2130_v12 }
 0x3c6   : > { %2684 = vst.msk [vmem:[#allocation4 + $0x18] sm:$0xff] %vm1043_vm2, %v2652_v5  ;;  %v2667_v58 = vadd.f32 %v5665_v46, %v2329_v3  ;;  %v2586_v13 = vpop.f32.mrb[17].mxu1  ;;  %v9060_v3 = vld [vmem:[#allocation15_spill] sm:$0xff]  ;;  %v9061_v46 = vld [vmem:[#allocation18_spill] sm:$0xff] }
 0x3c7   : > { %2682 = vst.msk [vmem:[#allocation4 + $0x8] sm:$0xff] %vm1043_vm2, %v2650_v45  ;;  %v2665_v24 = vadd.f32 %v2586_v13, %v2327_v62  ;;  %v5666_v47 = vpop.f32.mrb[18].mxu1  ;;  %v2320_v5 = vmul.f32 %v9060_v3, %v2128_v60  ;;  %v2144_v45 = vld [vmem:[#allocation4 + $0xc8] sm:$0xff] }
 0x3c8   : > { %2699 = vst.msk [vmem:[#allocation4 + $0x90] sm:$0xff] %vm1043_vm2, %v2667_v58  ;;  %v2668_v7 = vadd.f32 %v5666_v47, %v2330_v52  ;;  %v2589_v21 = vpop.f32.mrb[19].mxu1  ;;  %v2337_v52 = vmul.f32 %v9061_v46, %v2145_v51  ;;  %v9062_v13 = vld [vmem:[#allocation20_spill] sm:$0xff]  ;;  %v9063_v47 = vld [vmem:[#allocation50_spill] sm:$0xff]  ;;  %v2336_v54 = vmul.f32 %v9064_v17, %v2144_v45 }
 0x3c9   : > { %2697 = vst.msk [vmem:[#allocation4 + $0x80] sm:$0xff] %vm1043_vm2, %v2665_v24  ;;  %v2666_v31 = vadd.f32 %v2589_v21, %v2328_v32  ;;  %v2335_v42 = vmul.f32 %v9062_v13, %v2143_v53 }
 0x3ca   : > { %2700 = vst.msk [vmem:[#allocation4 + $0x98] sm:$0xff] %vm1043_vm2, %v2668_v7  ;;  %v2338_v7 = vmul.f32 %v9063_v47, %v2146_v8 }
 0x3cb   : > { %2698 = vst.msk [vmem:[#allocation4 + $0x88] sm:$0xff] %vm1043_vm2, %v2666_v31 }
 0x3d5   : > { %v5637_v55 = vpop.f32.mrb[20].mxu0 }
 0x3d6   : > { %v2655_v48 = vadd.f32 %v5637_v55, %v2317_v18  ;;  %v2457_v40 = vpop.f32.mrb[21].mxu0 }
 0x3d7   : > { %v2653_v19 = vadd.f32 %v2457_v40, %v2315_v10  ;;  %v5638_v56 = vpop.f32.mrb[22].mxu0  ;;  %v9065_v40 = vld [vmem:[#allocation21_spill] sm:$0xff] }
 0x3d8   : > { %2687 = vst.msk [vmem:[#allocation4 + $0x30] sm:$0xff] %vm1043_vm2, %v2655_v48  ;;  %v2656_v38 = vadd.f32 %v5638_v56, %v2318_v9  ;;  %v2460_v6 = vpop.f32.mrb[23].mxu0  ;;  %v2131_v9 = vld [vmem:[#allocation4 + $0x60] sm:$0xff]  ;;  %v2132_v48 = vld [vmem:[#allocation4 + $0x68] sm:$0xff]  ;;  %v9066_v56 = vld [vmem:[#allocation17_spill] sm:$0xff] }
 0x3d9   : > { %2685 = vst.msk [vmem:[#allocation4 + $0x20] sm:$0xff] %vm1043_vm2, %v2653_v19  ;;  %v2654_v63 = vadd.f32 %v2460_v6, %v2316_v37  ;;  %v5669_v4 = vpop.f32.mrb[20].mxu1  ;;  %v2325_v37 = vmul.f32 %v9065_v40, %v2133_v59  ;;  %v2323_v0 = vmul.f32 %v7648_v30, %v2131_v9  ;;  %v2326_v49 = vmul.f32 %v9066_v56, %v2134_v39  ;;  %v9067_v6 = vld [vmem:[#allocation19_spill] sm:$0xff] }
 0x3da   : > { %2688 = vst.msk [vmem:[#allocation4 + $0x38] sm:$0xff] %vm1043_vm2, %v2656_v38  ;;  %v2671_v11 = vadd.f32 %v5669_v4, %v2333_v33  ;;  %v2602_v16 = vpop.f32.mrb[21].mxu1  ;;  %v2304_v4 = vpop.permute.xlu1 %2303 }
 0x3db   : > { %2686 = vst.msk [vmem:[#allocation4 + $0x28] sm:$0xff] %vm1043_vm2, %v2654_v63  ;;  %v2669_v22 = vadd.f32 %v2602_v16, %v2331_v61  ;;  %v5670_v27 = vpop.f32.mrb[22].mxu1  ;;  %v2324_v61 = vmul.f32 %v9067_v6, %v2132_v48  ;;  %v2149_v63 = vld [vmem:[#allocation4 + $0xf0] sm:$0xff]  ;;  %v2147_v16 = vld [vmem:[#allocation4 + $0xe0] sm:$0xff] }
 0x3dc   : > { %2703 = vst.msk [vmem:[#allocation4 + $0xb0] sm:$0xff] %vm1043_vm2, %v2671_v11  ;;  %v2672_v28 = vadd.f32 %v5670_v27, %v2334_v25  ;;  %v2605_v23 = vpop.f32.mrb[23].mxu1  ;;  %v2150_v27 = vld [vmem:[#allocation4 + $0xf8] sm:$0xff]  ;;  %v2339_v2 = vmul.f32 %v9068_v50, %v2147_v16 }
 0x3dd   : > { %2701 = vst.msk [vmem:[#allocation4 + $0xa0] sm:$0xff] %vm1043_vm2, %v2669_v22  ;;  %v2670_v36 = vadd.f32 %v2605_v23, %v2332_v43  ;;  %v2148_v23 = vld [vmem:[#allocation4 + $0xe8] sm:$0xff] }
 0x3de   : > { %2704 = vst.msk [vmem:[#allocation4 + $0xb8] sm:$0xff] %vm1043_vm2, %v2672_v28  ;;  %v2309_v28 = vpop.permute.xlu0 %2308 }
 0x3df   : > { %2702 = vst.msk [vmem:[#allocation4 + $0xa8] sm:$0xff] %vm1043_vm2, %v2670_v36  ;;  %v2341_v36 = vmul.f32 %v2304_v4, %v2149_v63  ;;  %v2342_v60 = vmul.f32 %v2309_v28, %v2150_v27 }
 0x3e5   : > { %v5641_v34 = vpop.f32.mrb[24].mxu0 }
 0x3e6   : > { %v2659_v41 = vadd.f32 %v5641_v34, %v2321_v57  ;;  %v2473_v14 = vpop.f32.mrb[25].mxu0 }
 0x3e7   : > { %v2657_v26 = vadd.f32 %v2473_v14, %v2319_v1  ;;  %v5642_v62 = vpop.f32.mrb[26].mxu0  ;;  %v9069_v1 = vld [vmem:[#allocation22_spill] sm:$0xff] }
 0x3e8   : > { %2691 = vst.msk [vmem:[#allocation4 + $0x50] sm:$0xff] %vm1043_vm2, %v2659_v41  ;;  %v2660_v20 = vadd.f32 %v5642_v62, %v2322_v44  ;;  %v2476_v58 = vpop.f32.mrb[27].mxu0  ;;  %v2340_v34 = vmul.f32 %v9069_v1, %v2148_v23 }
 0x3e9   : > { %2689 = vst.msk [vmem:[#allocation4 + $0x40] sm:$0xff] %vm1043_vm2, %v2657_v26  ;;  %v2658_v32 = vadd.f32 %v2476_v58, %v2320_v5  ;;  %v5673_v24 = vpop.f32.mrb[24].mxu1 }
 0x3ea   : > { %2692 = vst.msk [vmem:[#allocation4 + $0x58] sm:$0xff] %vm1043_vm2, %v2660_v20  ;;  %v2675_v21 = vadd.f32 %v5673_v24, %v2337_v52  ;;  %v2618_v31 = vpop.f32.mrb[25].mxu1 }
 0x3eb   : > { %2690 = vst.msk [vmem:[#allocation4 + $0x48] sm:$0xff] %vm1043_vm2, %v2658_v32  ;;  %v2673_v35 = vadd.f32 %v2618_v31, %v2335_v42  ;;  %v5674_v15 = vpop.f32.mrb[26].mxu1 }
 0x3ec   : > { %2707 = vst.msk [vmem:[#allocation4 + $0xd0] sm:$0xff] %vm1043_vm2, %v2675_v21  ;;  %v2676_v18 = vadd.f32 %v5674_v15, %v2338_v7  ;;  %v2621_v10 = vpop.f32.mrb[27].mxu1 }
 0x3ed   : > { %2705 = vst.msk [vmem:[#allocation4 + $0xc0] sm:$0xff] %vm1043_vm2, %v2673_v35  ;;  %v2674_v55 = vadd.f32 %v2621_v10, %v2336_v54 }
 0x3ee   : > { %2708 = vst.msk [vmem:[#allocation4 + $0xd8] sm:$0xff] %vm1043_vm2, %v2676_v18 }
 0x3ef   : > { %2706 = vst.msk [vmem:[#allocation4 + $0xc8] sm:$0xff] %vm1043_vm2, %v2674_v55 }
 0x3f1   : > { %v5645_v19 = vpop.f32.mrb[28].mxu0 }
 0x3f2   : > { %v2663_v33 = vadd.f32 %v5645_v19, %v2325_v37  ;;  %v2489_v38 = vpop.f32.mrb[29].mxu0 }
 0x3f3   : > { %v2661_v25 = vadd.f32 %v2489_v38, %v2323_v0  ;;  %v5646_v11 = vpop.f32.mrb[30].mxu0 }
 0x3f4   : > { %2695 = vst.msk [vmem:[#allocation4 + $0x70] sm:$0xff] %vm1043_vm2, %v2663_v33  ;;  %v2664_v43 = vadd.f32 %v5646_v11, %v2326_v49  ;;  %v2492_v22 = vpop.f32.mrb[31].mxu0 }
 0x3f5   : > { %2693 = vst.msk [vmem:[#allocation4 + $0x60] sm:$0xff] %vm1043_vm2, %v2661_v25  ;;  %v2662_v30 = vadd.f32 %v2492_v22, %v2324_v61 }
 0x3f6   : > { %2696 = vst.msk [vmem:[#allocation4 + $0x78] sm:$0xff] %vm1043_vm2, %v2664_v43 }
 0x3f7   : > { %2694 = vst.msk [vmem:[#allocation4 + $0x68] sm:$0xff] %vm1043_vm2, %v2662_v30 }
 0x3f8   : > { %v5677_v12 = vpop.f32.mrb[28].mxu1 }
 0x3f9   : > { %v2679_v57 = vadd.f32 %v5677_v12, %v2341_v36  ;;  %v2634_v51 = vpop.f32.mrb[29].mxu1 }
 0x3fa   : > { %v2677_v29 = vadd.f32 %v2634_v51, %v2339_v2  ;;  %v5678_v44 = vpop.f32.mrb[30].mxu1 }
 0x3fb   : > { %2711 = vst.msk [vmem:[#allocation4 + $0xf0] sm:$0xff] %vm1043_vm2, %v2679_v57  ;;  %v2680_v53 = vadd.f32 %v5678_v44, %v2342_v60  ;;  %v2637_v41 = vpop.f32.mrb[31].mxu1 }
 0x3fc   : > { %2709 = vst.msk [vmem:[#allocation4 + $0xe0] sm:$0xff] %vm1043_vm2, %v2677_v29  ;;  %v2678_v14 = vadd.f32 %v2637_v41, %v2340_v34 }
 0x3fd   : > { %2712 = vst.msk [vmem:[#allocation4 + $0xf8] sm:$0xff] %vm1043_vm2, %v2680_v53 }
 0x3fe   : > { %2710 = vst.msk [vmem:[#allocation4 + $0xe8] sm:$0xff] %vm1043_vm2, %v2678_v14 }
 0x3ff PF: > { %s9070_s30 = sld [smem:[#allocation11_spill]] }
 0x405   : > { %p5351_p9 = scmp.ne.s32.totalorder %s6474_s17, %s9070_s30 }
 0x407   : > { %2748 = sbr.rel (%p5351_p9) target bundleno = 1902 (0x76e), region = 167 }
 0x40e   : > { %v6130_v8 = vld [vmem:[%s6743_s24] sm:$0xff]   ;;  %vm2925_vm4 = vcmask 523264   ;;  %v6132_v26 = vld [vmem:[%s6743_s24 + $0x8] sm:$0xff]   ;;  %v6134_v52 = vld [vmem:[%s6743_s24 + $0x10] sm:$0xff]   ;;  %v3328_v30 = vlaneseq }
 0x40f   : > { %v6131_v3 = vld [vmem:[%s6743_s24 + $0x40] sm:$0xff]   ;;  %5823 = vmatprep.subr.msk.bf16.mxu0 %vm2925_vm4, %v6130_v8  ;;  %v2951_v5 = vsel %vm2925_vm4, %v6130_v8, 0  ;;  %v6133_v45 = vld [vmem:[%s6743_s24 + $0x48] sm:$0xff]   ;;  %v2954_v46 = vsel %vm2925_vm4, %v6132_v26, 0  ;;  %v6135_v58 = vld [vmem:[%s6743_s24 + $0x50] sm:$0xff]   ;;  %v2957_v32 = vsel %vm2925_vm4, %v6134_v52, 0 }
 0x410   : > { %5831 = vmatprep.subr.msk.bf16.mxu1 %vm2925_vm4, %v6131_v3  ;;  %5680 = vmatpush3.bf16.xpose.msra.mxu0 %v2951_v5  ;;  %v3176_v62 = vsel %vm2925_vm4, %v6131_v3, 0  ;;  %v3179_v20 = vsel %vm2925_vm4, %v6133_v45, 0  ;;  %v6136_v13 = vld [vmem:[%s6743_s24 + $0x18] sm:$0xff]   ;;  %v6146_v24 = vld [vmem:[%s6741_s11] sm:$0xff]   ;;  %v3182_v47 = vsel %vm2925_vm4, %v6135_v58, 0  ;;  %v6140_v35 = vld [vmem:[%s6743_s24 + $0x28] sm:$0xff]  }
 0x411   : > { %5712 = vmatpush3.bf16.xpose.msra.mxu1 %v3176_v62  ;;  %5824 = vmatprep.subr.msk.bf16.mxu0 %vm2925_vm4, %v6132_v26  ;;  %v6137_v42 = vld [vmem:[%s6743_s24 + $0x58] sm:$0xff]   ;;  %v6147_v7 = vld [vmem:[%s6741_s11 + $0x40] sm:$0xff]   ;;  %v2960_v21 = vsel %vm2925_vm4, %v6136_v13, 0  ;;  %v6141_v15 = vld [vmem:[%s6743_s24 + $0x68] sm:$0xff]   ;;  %v2966_v59 = vsel %vm2925_vm4, %v6140_v35, 0  ;;  %v7859_v23 = vshrl.u32 %v3328_v30, 7 }
 0x412   : > { %5832 = vmatprep.subr.msk.bf16.mxu1 %vm2925_vm4, %v6133_v45  ;;  %5695 = vmatprep.mubr.msk.bf16.mxu0 %vm2925_vm4, %v6146_v24  ;;  %v6138_v31 = vld [vmem:[%s6743_s24 + $0x20] sm:$0xff]   ;;  %v3185_v17 = vsel %vm2925_vm4, %v6137_v42, 0  ;;  %v3191_v55 = vsel %vm2925_vm4, %v6141_v15, 0  ;;  %v6142_v9 = vld [vmem:[%s6743_s24 + $0x30] sm:$0xff]   ;;  %v6144_v40 = vld [vmem:[%s6743_s24 + $0x38] sm:$0xff]   ;;  %v7862_v50 = vand.u32 127, %v3328_v30 }
 0x413   : > { %5727 = vmatprep.mubr.msk.bf16.mxu1 %vm2925_vm4, %v6147_v7  ;;  %v6139_v54 = vld [vmem:[%s6743_s24 + $0x60] sm:$0xff]   ;;  %v2963_v18 = vsel %vm2925_vm4, %v6138_v31, 0  ;;  %v6143_v39 = vld [vmem:[%s6743_s24 + $0x70] sm:$0xff]   ;;  %v2969_v48 = vsel %vm2925_vm4, %v6142_v9, 0  ;;  %v6145_v0 = vld [vmem:[%s6743_s24 + $0x78] sm:$0xff]   ;;  %v2972_v19 = vsel %vm2925_vm4, %v6144_v40, 0 }
 0x414   : > { %v3188_v10 = vsel %vm2925_vm4, %v6139_v54, 0  ;;  %v3194_v37 = vsel %vm2925_vm4, %v6143_v39, 0  ;;  %v3197_v56 = vsel %vm2925_vm4, %v6145_v0, 0  ;;  %v6148_v49 = vld [vmem:[%s6741_s11 + $0x8] sm:$0xff]   ;;  %v6150_v38 = vld [vmem:[%s6741_s11 + $0x10] sm:$0xff]   ;;  %v6151_v61 = vld [vmem:[%s6741_s11 + $0x18] sm:$0xff]   ;;  %vm3347_vm7 = vcmp.ge.s32.totalorder %v7859_v23, %v7862_v50 }
 0x415   : > { %v6149_v33 = vld [vmem:[%s6741_s11 + $0x48] sm:$0xff]   ;;  %v6152_v6 = vld [vmem:[%s6741_s11 + $0x50] sm:$0xff]   ;;  %v6153_v63 = vld [vmem:[%s6741_s11 + $0x58] sm:$0xff]   ;;  %v3331_v36 = vadd.s32 16, %v7859_v23  ;;  %v3332_v2 = vadd.s32 24, %v7859_v23  ;;  %v3336_v24 = vadd.s32 56, %v7859_v23 }
 0x416   : > { %v6154_v4 = vld [vmem:[%s6741_s11 + $0x20] sm:$0xff]   ;;  %v6155_v11 = vld [vmem:[%s6741_s11 + $0x28] sm:$0xff]   ;;  %v6158_v43 = vld [vmem:[%s6741_s11 + $0x30] sm:$0xff]  }
 0x417   : > { %v6156_v25 = vld [vmem:[%s6741_s11 + $0x60] sm:$0xff]   ;;  %v6157_v16 = vld [vmem:[%s6741_s11 + $0x68] sm:$0xff]   ;;  %v6160_v22 = vld [vmem:[%s6741_s11 + $0x70] sm:$0xff]   ;;  %vm3349_vm5 = vcmp.ge.s32.totalorder %v3331_v36, %v7862_v50  ;;  %vm3350_vm6 = vcmp.ge.s32.totalorder %v3332_v2, %v7862_v50  ;;  %vm3354_vm9 = vcmp.ge.s32.totalorder %v3336_v24, %v7862_v50 }
 0x418   : > { %5682 = vmatpush3.bf16.xpose.msra.mxu0 %v2954_v46  ;;  %v6159_v27 = vld [vmem:[%s6741_s11 + $0x38] sm:$0xff]  }
 0x419   : > { %5714 = vmatpush3.bf16.xpose.msra.mxu1 %v3179_v20  ;;  %5825 = vmatprep.subr.msk.bf16.mxu0 %vm2925_vm4, %v6134_v52  ;;  %v6161_v28 = vld [vmem:[%s6741_s11 + $0x78] sm:$0xff]   ;;  %v3330_v20 = vadd.s32 8, %v7859_v23 }
 0x41a   : > { %5833 = vmatprep.subr.msk.bf16.mxu1 %vm2925_vm4, %v6135_v58 }
 0x41b   : > { %vm3348_vm8 = vcmp.ge.s32.totalorder %v3330_v20, %v7862_v50 }
 0x420   : > { %5684 = vmatpush3.bf16.xpose.msra.mxu0 %v2957_v32 }
 0x421   : > { %5716 = vmatpush3.bf16.xpose.msra.mxu1 %v3182_v47  ;;  %5826 = vmatprep.subr.msk.bf16.mxu0 %vm2925_vm4, %v6136_v13 }
 0x422   : > { %5834 = vmatprep.subr.msk.bf16.mxu1 %vm2925_vm4, %v6137_v42 }
 0x428   : > { %5686 = vmatpush3.bf16.xpose.msra.mxu0 %v2960_v21 }
 0x429   : > { %5718 = vmatpush3.bf16.xpose.msra.mxu1 %v3185_v17  ;;  %5827 = vmatprep.subr.msk.bf16.mxu0 %vm2925_vm4, %v6138_v31  ;;  %v3335_v31 = vadd.s32 48, %v7859_v23 }
 0x42a   : > { %5835 = vmatprep.subr.msk.bf16.mxu1 %vm2925_vm4, %v6139_v54 }
 0x42b   : > { %vm3353_vm10 = vcmp.ge.s32.totalorder %v3335_v31, %v7862_v50 }
 0x430   : > { %5688 = vmatpush3.bf16.xpose.msra.mxu0 %v2963_v18 }
 0x431   : > { %5720 = vmatpush3.bf16.xpose.msra.mxu1 %v3188_v10  ;;  %5828 = vmatprep.subr.msk.bf16.mxu0 %vm2925_vm4, %v6140_v35 }
 0x432   : > { %5836 = vmatprep.subr.msk.bf16.mxu1 %vm2925_vm4, %v6141_v15 }
 0x438   : > { %5690 = vmatpush3.bf16.xpose.msra.mxu0 %v2966_v59 }
 0x439   : > { %5722 = vmatpush3.bf16.xpose.msra.mxu1 %v3191_v55  ;;  %5829 = vmatprep.subr.msk.bf16.mxu0 %vm2925_vm4, %v6142_v9 }
 0x43a   : > { %5837 = vmatprep.subr.msk.bf16.mxu1 %vm2925_vm4, %v6143_v39 }
 0x440   : > { %5692 = vmatpush3.bf16.xpose.msra.mxu0 %v2969_v48 }
 0x441   : > { %5724 = vmatpush3.bf16.xpose.msra.mxu1 %v3194_v37  ;;  %5830 = vmatprep.subr.msk.bf16.mxu0 %vm2925_vm4, %v6144_v40 }
 0x442   : > { %5838 = vmatprep.subr.msk.bf16.mxu1 %vm2925_vm4, %v6145_v0 }
 0x448   : > { %5694 = vmatpush3.bf16.xpose.msra.mxu0 %v2972_v19 }
 0x449   : > { %5726 = vmatpush3.bf16.xpose.msra.mxu1 %v3197_v56  ;;  %v3334_v56 = vadd.s32 40, %v7859_v23 }
 0x44b   : > { %vm3352_vm11 = vcmp.ge.s32.totalorder %v3334_v56, %v7862_v50 }
 0x44f   : > { %5696 = vmatmul.mubr.msk.bf16.vlgmr.msra.gmra.mrb[0].mxu0 %vm2925_vm4, %v6148_v49 }
 0x450   : > { %5728 = vmatmul.mubr.msk.bf16.vlgmr.msra.gmra.mrb[0].mxu1 %vm2925_vm4, %v6149_v33  ;;  %5699 = vmatprep.mubr.msk.bf16.mxu0 %vm2925_vm4, %v6150_v38  ;;  %v3333_v38 = vadd.s32 32, %v7859_v23 }
 0x451   : > { %5731 = vmatprep.mubr.msk.bf16.mxu1 %vm2925_vm4, %v6152_v6 }
 0x452   : > { %vm3351_vm12 = vcmp.ge.s32.totalorder %v3333_v38, %v7862_v50  ;;  %v3341_v38 = vadd.s32 96, %v7859_v23 }
 0x457   : > { %5700 = vmatmul.mubr.msk.bf16.gmra.mrb[4].mxu0 %vm2925_vm4, %v6151_v61 }
 0x458   : > { %5732 = vmatmul.mubr.msk.bf16.gmra.mrb[4].mxu1 %vm2925_vm4, %v6153_v63  ;;  %5703 = vmatprep.mubr.msk.bf16.mxu0 %vm2925_vm4, %v6154_v4  ;;  %v6503_v4 = vmov 0  }
 0x459   : > { %5735 = vmatprep.mubr.msk.bf16.mxu1 %vm2925_vm4, %v6156_v25  ;;  %6129 = vset.pattern.permute.xlu0 %v6503_v4 }
 0x45a   : > { %6128 = vset.pattern.permute.xlu1 %v6503_v4 }
 0x45f   : > { %5704 = vmatmul.mubr.msk.bf16.gmra.mrb[8].mxu0 %vm2925_vm4, %v6155_v11 }
 0x460   : > { %5736 = vmatmul.mubr.msk.bf16.gmra.mrb[8].mxu1 %vm2925_vm4, %v6157_v16  ;;  %5707 = vmatprep.mubr.msk.bf16.mxu0 %vm2925_vm4, %v6158_v43 }
 0x461   : > { %5739 = vmatprep.mubr.msk.bf16.mxu1 %vm2925_vm4, %v6160_v22 }
 0x467   : > { %5708 = vmatmul.mubr.msk.bf16.gmra.mrb[12].mxu0 %vm2925_vm4, %v6159_v27 }
 0x468   : > { %5740 = vmatmul.mubr.msk.bf16.gmra.mrb[12].mxu1 %vm2925_vm4, %v6161_v28 }
 0x522   : > { %v5697_v12 = vpop.f32.mrb[0].mxu0 }
 0x523   : > { %v3298_v60 = vmul.f32 0.125, %v5697_v12  ;;  %v5729_v57 = vpop.f32.mrb[0].mxu1  ;;  %v3008_v51 = vpop.f32.mrb[1].mxu0 }
 0x524   : > { %v3314_v1 = vmul.f32 0.125, %v5729_v57  ;;  %v3296_v34 = vmul.f32 0.125, %v3008_v51  ;;  %v3233_v29 = vpop.f32.mrb[1].mxu1  ;;  %v5698_v44 = vpop.f32.mrb[2].mxu0 }
 0x525   : > { %v3299_v53 = vmul.f32 0.125, %v5698_v44  ;;  %v5730_v41 = vpop.f32.mrb[2].mxu1  ;;  %v3011_v14 = vpop.f32.mrb[3].mxu0  ;;  %v7867_v8 = vsel %vm3349_vm5, %v3298_v60, -inf  ;;  %v3312_v46 = vmul.f32 0.125, %v3233_v29  ;;  %v3340_v60 = vadd.s32 88, %v7859_v23 }
 0x526   : > { %9071 = vst [vmem:[#allocation51_spill] sm:$0xff] %v7867_v8  ;;  %v3236_v3 = vpop.f32.mrb[3].mxu1  ;;  %v7869_v5 = vsel %vm3349_vm5, %v3314_v1, -inf  ;;  %3463 = vmax.xlane.f32.xlu1 %v7867_v8  ;;  %v7882_v62 = vsel %vm3347_vm7, %v3296_v34, -inf  ;;  %v3315_v45 = vmul.f32 0.125, %v5730_v41  ;;  %v3297_v54 = vmul.f32 0.125, %v3011_v14 }
 0x527   : > { %9072 = vst [vmem:[#allocation52_spill] sm:$0xff] %v7869_v5  ;;  %3495 = vmax.xlane.f32.xlu0 %v7869_v5  ;;  %v7877_v26 = vsel %vm3350_vm6, %v3299_v53, -inf  ;;  %9074 = vst [vmem:[#allocation54_spill] sm:$0xff] %v7882_v62  ;;  %v3313_v47 = vmul.f32 0.125, %v3236_v3  ;;  %v7896_v35 = vsel %vm3347_vm7, %v3312_v46, -inf  ;;  %v3339_v1 = vadd.s32 80, %v7859_v23 }
 0x528   : > { %9073 = vst [vmem:[#allocation53_spill] sm:$0xff] %v7877_v26  ;;  %v7890_v7 = vsel %vm3350_vm6, %v3315_v45, -inf  ;;  %9076 = vst [vmem:[#allocation56_spill] sm:$0xff] %v7896_v35  ;;  %v7906_v55 = vsel %vm3348_vm8, %v3297_v54, -inf  ;;  %vm3358_vm13 = vcmp.ge.s32.totalorder %v3340_v60, %v7862_v50  ;;  %vm3359_vm5 = vcmp.ge.s32.totalorder %v3341_v38, %v7862_v50  ;;  %v6164_v38 = vld [vmem:[%s6745_s25 + $0x40] sm:$0xff]   ;;  %v8292_v8 = vld [vmem:[#allocation2 + $0xe8] sm:$0xff] }
 0x529   : > { %9075 = vst [vmem:[#allocation55_spill] sm:$0xff] %v7890_v7  ;;  %v7902_v59 = vsel %vm3348_vm8, %v3313_v47, -inf  ;;  %9078 = vst [vmem:[#allocation58_spill] sm:$0xff] %v7906_v55  ;;  %vm3357_vm14 = vcmp.ge.s32.totalorder %v3339_v1, %v7862_v50  ;;  %vm4067_vm6 = vcmask 7168   ;;  %v8030_v1 = vld [vmem:[#allocation2 + $0x18] sm:$0xff]  ;;  %5775 = vmatprep.subr.bf16.mxu1 %v6164_v38 }
 0x52a   : > { %3465 = vmax.xlane.f32.xlu1 %v7877_v26  ;;  %v5701_v52 = vpop.f32.mrb[4].mxu0  ;;  %9077 = vst [vmem:[#allocation57_spill] sm:$0xff] %v7902_v59  ;;  %5776 = vmatpush3.bf16.msra.mxu1 %v6164_v38  ;;  %v8276_v26 = vld [vmem:[#allocation2 + $0x60] sm:$0xff] }
 0x52b   : > { %3459 = vmax.xlane.f32.xlu0 %v7882_v62  ;;  %v3024_v58 = vpop.f32.mrb[5].mxu0  ;;  %v5733_v13 = vpop.f32.mrb[4].mxu1  ;;  %v3302_v10 = vmul.f32 0.125, %v5701_v52  ;;  %9106 = vst [vmem:[#allocation86_spill] sm:$0xff] %v8276_v26  ;;  %v8296_v62 = vld [vmem:[#allocation2 + $0xe0] sm:$0xff] }
 0x52c   : > { %v5702_v42 = vpop.f32.mrb[6].mxu0  ;;  %v3249_v32 = vpop.f32.mrb[5].mxu1  ;;  %v3318_v0 = vmul.f32 0.125, %v5733_v13  ;;  %v3300_v16 = vmul.f32 0.125, %v3024_v58  ;;  %v3338_v58 = vadd.s32 72, %v7859_v23  ;;  %v3337_v13 = vadd.s32 64, %v7859_v23 }
 0x52d   : > { %v5734_v21 = vpop.f32.mrb[6].mxu1  ;;  %v3027_v17 = vpop.f32.mrb[7].mxu0  ;;  %v3303_v18 = vmul.f32 0.125, %v5702_v42  ;;  %v7915_v19 = vsel %vm3353_vm10, %v3302_v10, -inf  ;;  %v3316_v2 = vmul.f32 0.125, %v3249_v32 }
 0x52e   : > { %3497 = vmax.xlane.f32.xlu1 %v7890_v7  ;;  %v3252_v15 = vpop.f32.mrb[7].mxu1  ;;  %v3319_v39 = vmul.f32 0.125, %v5734_v21  ;;  %9080 = vst [vmem:[#allocation60_spill] sm:$0xff] %v7915_v19  ;;  %v3301_v11 = vmul.f32 0.125, %v3027_v17  ;;  %v7927_v43 = vsel %vm3353_vm10, %v3318_v0, -inf  ;;  %v7939_v12 = vsel %vm3351_vm12, %v3300_v16, -inf }
 0x52f   : > { %3491 = vmax.xlane.f32.xlu0 %v7896_v35  ;;  %v7911_v48 = vsel %vm3354_vm9, %v3303_v18, -inf  ;;  %9082 = vst [vmem:[#allocation62_spill] sm:$0xff] %v7927_v43  ;;  %v3317_v27 = vmul.f32 0.125, %v3252_v15  ;;  %9084 = vst [vmem:[#allocation64_spill] sm:$0xff] %v7939_v12  ;;  %v7953_v14 = vsel %vm3351_vm12, %v3316_v2, -inf  ;;  %vm3356_vm15 = vcmp.ge.s32.totalorder %v3338_v58, %v7862_v50  ;;  %v8050_v58 = vld [vmem:[#allocation2 + $0x98] sm:$0xff] }
 0x530   : > { %9079 = vst [vmem:[#allocation59_spill] sm:$0xff] %v7911_v48  ;;  %v7923_v25 = vsel %vm3354_vm9, %v3319_v39, -inf  ;;  %v7935_v28 = vsel %vm3352_vm11, %v3301_v11, -inf  ;;  %9086 = vst [vmem:[#allocation66_spill] sm:$0xff] %v7953_v14  ;;  %vm3355_vm0 = vcmp.ge.s32.totalorder %v3337_v13, %v7862_v50  ;;  %v3344_v15 = vadd.s32 120, %v7859_v23  ;;  %v8054_v13 = vld [vmem:[#allocation2 + $0x80] sm:$0xff] }
 0x531   : > { %9081 = vst [vmem:[#allocation61_spill] sm:$0xff] %v7923_v25  ;;  %9083 = vst [vmem:[#allocation63_spill] sm:$0xff] %v7935_v28  ;;  %v7949_v53 = vsel %vm3352_vm11, %v3317_v27, -inf  ;;  %v3343_v18 = vadd.s32 112, %v7859_v23  ;;  %v8270_v7 = vld [vmem:[#allocation2 + $0x68] sm:$0xff] }
 0x532   : > { %3493 = vmax.xlane.f32.xlu1 %v7902_v59  ;;  %v5705_v9 = vpop.f32.mrb[8].mxu0  ;;  %9085 = vst [vmem:[#allocation65_spill] sm:$0xff] %v7949_v53  ;;  %vm3362_vm1 = vcmp.ge.s32.totalorder %v3344_v15, %v7862_v50 }
 0x533   : > { %3461 = vmax.xlane.f32.xlu0 %v7906_v55  ;;  %v3040_v40 = vpop.f32.mrb[9].mxu0  ;;  %v5737_v37 = vpop.f32.mrb[8].mxu1  ;;  %v3306_v3 = vmul.f32 0.125, %v5705_v9  ;;  %vm3361_vm2 = vcmp.ge.s32.totalorder %v3343_v18, %v7862_v50  ;;  %v8066_v18 = vld [vmem:[#allocation2 + $0x88] sm:$0xff] }
 0x534   : > { %v5706_v49 = vpop.f32.mrb[10].mxu0  ;;  %v3265_v33 = vpop.f32.mrb[9].mxu1  ;;  %v3322_v52 = vmul.f32 0.125, %v5737_v37  ;;  %v3304_v24 = vmul.f32 0.125, %v3040_v40 }
 0x535   : > { %v5738_v6 = vpop.f32.mrb[10].mxu1  ;;  %v3043_v61 = vpop.f32.mrb[11].mxu0  ;;  %v3307_v41 = vmul.f32 0.125, %v5706_v49  ;;  %v7961_v20 = vsel %vm3357_vm14, %v3306_v3, -inf  ;;  %v3320_v17 = vmul.f32 0.125, %v3265_v33  ;;  %v3342_v33 = vadd.s32 104, %v7859_v23 }
 0x536   : > { %3473 = vmax.xlane.f32.xlu1 %v7911_v48  ;;  %v3268_v63 = vpop.f32.mrb[11].mxu1  ;;  %v3323_v45 = vmul.f32 0.125, %v5738_v6  ;;  %9088 = vst [vmem:[#allocation68_spill] sm:$0xff] %v7961_v20  ;;  %v3305_v32 = vmul.f32 0.125, %v3043_v61  ;;  %v7969_v47 = vsel %vm3357_vm14, %v3322_v52, -inf  ;;  %v7977_v54 = vsel %vm3355_vm0, %v3304_v24, -inf }
 0x537   : > { %3471 = vmax.xlane.f32.xlu0 %v7915_v19  ;;  %v7959_v46 = vsel %vm3358_vm13, %v3307_v41, -inf  ;;  %9090 = vst [vmem:[#allocation70_spill] sm:$0xff] %v7969_v47  ;;  %v3321_v21 = vmul.f32 0.125, %v3268_v63  ;;  %9092 = vst [vmem:[#allocation72_spill] sm:$0xff] %v7977_v54  ;;  %v7985_v40 = vsel %vm3355_vm0, %v3320_v17, -inf  ;;  %vm3360_vm3 = vcmp.ge.s32.totalorder %v3342_v33, %v7862_v50  ;;  %v8020_v50 = vld [vmem:[#allocation2 + $0x10] sm:$0xff] }
 0x538   : > { %9087 = vst [vmem:[#allocation67_spill] sm:$0xff] %v7959_v46  ;;  %v7967_v42 = vsel %vm3358_vm13, %v3323_v45, -inf  ;;  %v7975_v31 = vsel %vm3356_vm15, %v3305_v32, -inf  ;;  %9094 = vst [vmem:[#allocation74_spill] sm:$0xff] %v7985_v40  ;;  %v6162_v24 = vld [vmem:[%s6745_s25] sm:$0xff]   ;;  %v6163_v33 = vld [vmem:[%s6745_s25 + $0x8] sm:$0xff]  }
 0x539   : > { %9089 = vst [vmem:[#allocation69_spill] sm:$0xff] %v7967_v42  ;;  %9091 = vst [vmem:[#allocation71_spill] sm:$0xff] %v7975_v31  ;;  %v7983_v10 = vsel %vm3356_vm15, %v3321_v21, -inf  ;;  %5743 = vmatprep.subr.bf16.mxu0 %v6162_v24  ;;  %v8252_v19 = vld [vmem:[#allocation2 + $0xf8] sm:$0xff]  ;;  %v8256_v48 = vld [vmem:[#allocation2 + $0xf0] sm:$0xff] }
 0x53a   : > { %3505 = vmax.xlane.f32.xlu1 %v7923_v25  ;;  %v5709_v22 = vpop.f32.mrb[12].mxu0  ;;  %9093 = vst [vmem:[#allocation73_spill] sm:$0xff] %v7983_v10  ;;  %5744 = vmatpush3.bf16.msra.mxu0 %v6162_v24  ;;  %v8216_v25 = vld [vmem:[#allocation2 + $0xc8] sm:$0xff]  ;;  %9104 = vst [vmem:[#allocation84_spill] sm:$0xff] %v8252_v19 }
 0x53b   : > { %3503 = vmax.xlane.f32.xlu0 %v7927_v43  ;;  %v3056_v30 = vpop.f32.mrb[13].mxu0  ;;  %v5741_v36 = vpop.f32.mrb[12].mxu1  ;;  %v3310_v39 = vmul.f32 0.125, %v5709_v22  ;;  %5745 = vmatprep.subr.bf16.mxu0 %v6163_v33  ;;  %9105 = vst [vmem:[#allocation85_spill] sm:$0xff] %v8256_v48 }
 0x53c   : > { %v5710_v57 = vpop.f32.mrb[14].mxu0  ;;  %v7942_v51 = vpop.f32.mrb[13].mxu1  ;;  %v3326_v56 = vmul.f32 0.125, %v5741_v36  ;;  %v3308_v63 = vmul.f32 0.125, %v3056_v30  ;;  %v8022_v36 = vld [vmem:[#allocation2 + $0x90] sm:$0xff] }
 0x53d   : > { %v5742_v34 = vpop.f32.mrb[14].mxu1  ;;  %v3059_v29 = vpop.f32.mrb[15].mxu0  ;;  %v3311_v9 = vmul.f32 0.125, %v5710_v57  ;;  %v7993_v49 = vsel %vm3361_vm2, %v3310_v39, -inf  ;;  %v3324_v16 = vmul.f32 0.125, %v7942_v51  ;;  %v8072_v39 = vld [vmem:[#allocation2 + $0x8] sm:$0xff] }
 0x53e   : > { %3469 = vmax.xlane.f32.xlu1 %v7935_v28  ;;  %v3284_v44 = vpop.f32.mrb[15].mxu1  ;;  %v3327_v37 = vmul.f32 0.125, %v5742_v34  ;;  %9096 = vst [vmem:[#allocation76_spill] sm:$0xff] %v7993_v49  ;;  %v3309_v61 = vmul.f32 0.125, %v3059_v29  ;;  %v8001_v4 = vsel %vm3361_vm2, %v3326_v56, -inf  ;;  %v8010_v22 = vsel %vm3359_vm5, %v3308_v63, -inf  ;;  %5746 = vmatpush3.bf16.msra.mxu0 %v6163_v33 }
 0x53f   : > { %3467 = vmax.xlane.f32.xlu0 %v7939_v12  ;;  %v7991_v0 = vsel %vm3362_vm1, %v3311_v9, -inf  ;;  %9098 = vst [vmem:[#allocation78_spill] sm:$0xff] %v8001_v4  ;;  %v3325_v11 = vmul.f32 0.125, %v3284_v44  ;;  %9100 = vst [vmem:[#allocation80_spill] sm:$0xff] %v8010_v22  ;;  %v8016_v30 = vsel %vm3359_vm5, %v3324_v16, -inf  ;;  %v8037_v29 = vld [vmem:[#allocation2] sm:$0xff] }
 0x540   : > { %9095 = vst [vmem:[#allocation75_spill] sm:$0xff] %v7991_v0  ;;  %v7999_v6 = vsel %vm3362_vm1, %v3327_v37, -inf  ;;  %v8007_v23 = vsel %vm3360_vm3, %v3309_v61, -inf  ;;  %9102 = vst [vmem:[#allocation82_spill] sm:$0xff] %v8016_v30  ;;  %v8087_v16 = vld [vmem:[#allocation2 + $0x38] sm:$0xff]  ;;  %v8108_v33 = vld [vmem:[#allocation2 + $0xb0] sm:$0xff] }
 0x541   : > { %9097 = vst [vmem:[#allocation77_spill] sm:$0xff] %v7999_v6  ;;  %9099 = vst [vmem:[#allocation79_spill] sm:$0xff] %v8007_v23  ;;  %v8014_v27 = vsel %vm3360_vm3, %v3325_v11, -inf  ;;  %v8121_v9 = vld [vmem:[#allocation2 + $0x28] sm:$0xff]  ;;  %v6169_v34 = vld [vmem:[%s6745_s25 + $0x20] sm:$0xff]  }
 0x542   : > { %3501 = vmax.xlane.f32.xlu1 %v7949_v53  ;;  %9101 = vst [vmem:[#allocation81_spill] sm:$0xff] %v8014_v27  ;;  %v6177_v53 = vld [vmem:[%s6745_s25 + $0x78] sm:$0xff]  }
 0x543   : > { %3499 = vmax.xlane.f32.xlu0 %v7953_v14  ;;  %v8234_v12 = vld [vmem:[#allocation2 + $0x78] sm:$0xff]  ;;  %v8238_v14 = vld [vmem:[#allocation2 + $0x70] sm:$0xff] }
 0x544   : > { %9103 = vst [vmem:[#allocation83_spill] sm:$0xff] %v8238_v14 }
 0x546   : > { %3481 = vmax.xlane.f32.xlu1 %v7959_v46  ;;  %v6175_v46 = vld [vmem:[%s6745_s25 + $0x38] sm:$0xff]  }
 0x547   : > { %3479 = vmax.xlane.f32.xlu0 %v7961_v20  ;;  %v8201_v20 = vld [vmem:[#allocation2 + $0x40] sm:$0xff] }
 0x54a   : > { %3513 = vmax.xlane.f32.xlu1 %v7967_v42 }
 0x54b   : > { %3511 = vmax.xlane.f32.xlu0 %v7969_v47  ;;  %v6176_v47 = vld [vmem:[%s6745_s25 + $0x70] sm:$0xff]  }
 0x54e   : > { %3477 = vmax.xlane.f32.xlu1 %v7975_v31 }
 0x54f   : > { %3475 = vmax.xlane.f32.xlu0 %v7977_v54 }
 0x552   : > { %3509 = vmax.xlane.f32.xlu1 %v7983_v10 }
 0x553   : > { %3507 = vmax.xlane.f32.xlu0 %v7985_v40  ;;  %v6174_v40 = vld [vmem:[%s6745_s25 + $0x68] sm:$0xff]  }
 0x556   : > { %3489 = vmax.xlane.f32.xlu1 %v7991_v0 }
 0x557   : > { %3487 = vmax.xlane.f32.xlu0 %v7993_v49  ;;  %v8159_v49 = vld [vmem:[#allocation2 + $0x58] sm:$0xff] }
 0x55a   : > { %3521 = vmax.xlane.f32.xlu1 %v7999_v6  ;;  %v6171_v6 = vld [vmem:[%s6745_s25 + $0x28] sm:$0xff]  }
 0x55b   : > { %3519 = vmax.xlane.f32.xlu0 %v8001_v4 }
 0x55e   : > { %3485 = vmax.xlane.f32.xlu1 %v8007_v23  ;;  %v6173_v23 = vld [vmem:[%s6745_s25 + $0x30] sm:$0xff]  }
 0x55f   : > { %3483 = vmax.xlane.f32.xlu0 %v8010_v22 }
 0x562   : > { %3517 = vmax.xlane.f32.xlu1 %v8014_v27 }
 0x563   : > { %3515 = vmax.xlane.f32.xlu0 %v8016_v30 }
 0x5b3   : > { %v3464_v2 = vpop.xlane.xlu1 %3463 }
 0x5b4   : > { %v3496_v60 = vpop.xlane.xlu0 %3495  ;;  %v8025_v57 = vmax.f32 %v8020_v50, %v3464_v2  ;;  %v8091_v2 = vld [vmem:[#allocation2 + $0x30] sm:$0xff] }
 0x5b5   : > { %v8028_v51 = vmax.f32 %v8022_v36, %v3496_v60 }
 0x5b6   : > { %4696 = vst.msk [vmem:[#allocation2 + $0x10] sm:$0xff] %vm4067_vm6, %v8025_v57  ;;  %3663 = vperm.xlu1 %6128, %v8025_v57  }
 0x5b7   : > { %4712 = vst.msk [vmem:[#allocation2 + $0x90] sm:$0xff] %vm4067_vm6, %v8028_v51  ;;  %3743 = vperm.xlu0 %6129, %v8028_v51   ;;  %v3466_v41 = vpop.xlane.xlu1 %3465 }
 0x5b8   : > { %v3460_v3 = vpop.xlane.xlu0 %3459  ;;  %v8045_v45 = vmax.f32 %v8030_v1, %v3466_v41  ;;  %v6165_v41 = vld [vmem:[%s6745_s25 + $0x10] sm:$0xff]  }
 0x5b9   : > { %v8048_v52 = vmax.f32 %v8037_v29, %v3460_v3  ;;  %v6166_v3 = vld [vmem:[%s6745_s25 + $0x48] sm:$0xff]   ;;  %5747 = vmatprep.subr.bf16.mxu0 %v6165_v41 }
 0x5ba   : > { %4697 = vst.msk [vmem:[#allocation2 + $0x18] sm:$0xff] %vm4067_vm6, %v8045_v45  ;;  %5777 = vmatprep.subr.bf16.mxu1 %v6166_v3  ;;  %5748 = vmatpush3.bf16.msra.mxu0 %v6165_v41  ;;  %v6170_v41 = vld [vmem:[%s6745_s25 + $0x58] sm:$0xff]  }
 0x5bb   : > { %4694 = vst.msk [vmem:[#allocation2] sm:$0xff] %vm4067_vm6, %v8048_v52  ;;  %3653 = vperm.xlu0 %6129, %v8048_v52   ;;  %v3498_v32 = vpop.xlane.xlu1 %3497  ;;  %5778 = vmatpush3.bf16.msra.mxu1 %v6166_v3  ;;  %v8127_v3 = vld [vmem:[#allocation2 + $0x20] sm:$0xff] }
 0x5bc   : > { %v3492_v21 = vpop.xlane.xlu0 %3491  ;;  %v8061_v17 = vmax.f32 %v8050_v58, %v3498_v32 }
 0x5bd   : > { %v8064_v15 = vmax.f32 %v8054_v13, %v3492_v21 }
 0x5be   : > { %4713 = vst.msk [vmem:[#allocation2 + $0x98] sm:$0xff] %vm4067_vm6, %v8061_v17 }
 0x5bf   : > { %4710 = vst.msk [vmem:[#allocation2 + $0x80] sm:$0xff] %vm4067_vm6, %v8064_v15  ;;  %3733 = vperm.xlu1 %6128, %v8064_v15   ;;  %v3494_v56 = vpop.xlane.xlu1 %3493 }
 0x5c0   : > { %v8082_v61 = vmax.f32 %v8066_v18, %v3494_v56  ;;  %v3462_v63 = vpop.xlane.xlu0 %3461  ;;  %v8104_v56 = vld [vmem:[#allocation2 + $0xb8] sm:$0xff] }
 0x5c1   : > { %v8085_v11 = vmax.f32 %v8072_v39, %v3462_v63  ;;  %v6167_v63 = vld [vmem:[%s6745_s25 + $0x18] sm:$0xff]  }
 0x5c2   : > { %4711 = vst.msk [vmem:[#allocation2 + $0x88] sm:$0xff] %vm4067_vm6, %v8082_v61  ;;  %5749 = vmatprep.subr.bf16.mxu0 %v6167_v63 }
 0x5c3   : > { %4695 = vst.msk [vmem:[#allocation2 + $0x8] sm:$0xff] %vm4067_vm6, %v8085_v11  ;;  %3668 = vperm.xlu1 %6128, %v8045_v45   ;;  %v3474_v60 = vpop.xlane.xlu1 %3473  ;;  %5750 = vmatpush3.bf16.msra.mxu0 %v6167_v63 }
 0x5c4   : > { %v3472_v32 = vpop.xlane.xlu0 %3471  ;;  %v8099_v24 = vmax.f32 %v8087_v16, %v3474_v60  ;;  %v6168_v60 = vld [vmem:[%s6745_s25 + $0x50] sm:$0xff]   ;;  %5751 = vmatprep.subr.bf16.mxu0 %v6169_v34 }
 0x5c5   : > { %v8102_v21 = vmax.f32 %v8091_v2, %v3472_v32  ;;  %5779 = vmatprep.subr.bf16.mxu1 %v6168_v60 }
 0x5c6   : > { %4701 = vst.msk [vmem:[#allocation2 + $0x38] sm:$0xff] %vm4067_vm6, %v8099_v24  ;;  %5780 = vmatpush3.bf16.msra.mxu1 %v6168_v60  ;;  %v8142_v60 = vld [vmem:[#allocation2 + $0xa8] sm:$0xff] }
 0x5c7   : > { %4700 = vst.msk [vmem:[#allocation2 + $0x30] sm:$0xff] %vm4067_vm6, %v8102_v21  ;;  %3748 = vperm.xlu1 %6128, %v8061_v17   ;;  %v3506_v38 = vpop.xlane.xlu1 %3505  ;;  %5781 = vmatprep.subr.bf16.mxu1 %v6170_v41 }
 0x5c8   : > { %v3504_v32 = vpop.xlane.xlu0 %3503  ;;  %v8116_v44 = vmax.f32 %v8104_v56, %v3506_v38  ;;  %v8146_v38 = vld [vmem:[#allocation2 + $0xa0] sm:$0xff]  ;;  %5752 = vmatpush3.bf16.msra.mxu0 %v6169_v34  ;;  %v8163_v34 = vld [vmem:[#allocation2 + $0x50] sm:$0xff] }
 0x5c9   : > { %v8119_v37 = vmax.f32 %v8108_v33, %v3504_v32  ;;  %5753 = vmatprep.subr.bf16.mxu0 %v6171_v6 }
 0x5ca   : > { %4717 = vst.msk [vmem:[#allocation2 + $0xb8] sm:$0xff] %vm4067_vm6, %v8116_v44  ;;  %5782 = vmatpush3.bf16.msra.mxu1 %v6170_v41 }
 0x5cb   : > { %4716 = vst.msk [vmem:[#allocation2 + $0xb0] sm:$0xff] %vm4067_vm6, %v8119_v37  ;;  %3658 = vperm.xlu1 %6128, %v8085_v11   ;;  %v3470_v32 = vpop.xlane.xlu1 %3469 }
 0x5cc   : > { %v3468_v4 = vpop.xlane.xlu0 %3467  ;;  %v8137_v30 = vmax.f32 %v8121_v9, %v3470_v32  ;;  %5754 = vmatpush3.bf16.msra.mxu0 %v6171_v6  ;;  %v8177_v6 = vld [vmem:[#allocation2 + $0xd8] sm:$0xff] }
 0x5cd   : > { %v8140_v63 = vmax.f32 %v8127_v3, %v3468_v4  ;;  %v6172_v4 = vld [vmem:[%s6745_s25 + $0x60] sm:$0xff]   ;;  %5755 = vmatprep.subr.bf16.mxu0 %v6173_v23 }
 0x5ce   : > { %4699 = vst.msk [vmem:[#allocation2 + $0x28] sm:$0xff] %vm4067_vm6, %v8137_v30  ;;  %5783 = vmatprep.subr.bf16.mxu1 %v6172_v4 }
 0x5cf   : > { %4698 = vst.msk [vmem:[#allocation2 + $0x20] sm:$0xff] %vm4067_vm6, %v8140_v63  ;;  %3738 = vperm.xlu1 %6128, %v8082_v61   ;;  %v3502_v32 = vpop.xlane.xlu1 %3501  ;;  %5784 = vmatpush3.bf16.msra.mxu1 %v6172_v4  ;;  %v8181_v4 = vld [vmem:[#allocation2 + $0xd0] sm:$0xff] }
 0x5d0   : > { %v3500_v22 = vpop.xlane.xlu0 %3499  ;;  %v8154_v27 = vmax.f32 %v8142_v60, %v3502_v32  ;;  %5785 = vmatprep.subr.bf16.mxu1 %v6174_v40  ;;  %5756 = vmatpush3.bf16.msra.mxu0 %v6173_v23 }
 0x5d1   : > { %v8157_v0 = vmax.f32 %v8146_v38, %v3500_v22  ;;  %5757 = vmatprep.subr.bf16.mxu0 %v6175_v46 }
 0x5d2   : > { %4715 = vst.msk [vmem:[#allocation2 + $0xa8] sm:$0xff] %vm4067_vm6, %v8154_v27 }
 0x5d3   : > { %4714 = vst.msk [vmem:[#allocation2 + $0xa0] sm:$0xff] %vm4067_vm6, %v8157_v0  ;;  %3753 = vperm.xlu0 %6129, %v8157_v0   ;;  %3683 = vperm.xlu1 %6128, %v8102_v21   ;;  %v3482_v22 = vpop.xlane.xlu1 %3481 }
 0x5d4   : > { %v3480_v41 = vpop.xlane.xlu0 %3479  ;;  %v8170_v32 = vmax.f32 %v8159_v49, %v3482_v22  ;;  %5786 = vmatpush3.bf16.msra.mxu1 %v6174_v40  ;;  %v8197_v22 = vld [vmem:[#allocation2 + $0x48] sm:$0xff]  ;;  %5758 = vmatpush3.bf16.msra.mxu0 %v6175_v46 }
 0x5d5   : > { %v8175_v42 = vmax.f32 %v8163_v34, %v3480_v41  ;;  %5787 = vmatprep.subr.bf16.mxu1 %v6176_v47 }
 0x5d6   : > { %4705 = vst.msk [vmem:[#allocation2 + $0x58] sm:$0xff] %vm4067_vm6, %v8170_v32 }
 0x5d7   : > { %4704 = vst.msk [vmem:[#allocation2 + $0x50] sm:$0xff] %vm4067_vm6, %v8175_v42  ;;  %3688 = vperm.xlu0 %6129, %v8099_v24   ;;  %3763 = vperm.xlu1 %6128, %v8119_v37   ;;  %v3514_v41 = vpop.xlane.xlu1 %3513 }
 0x5d8   : > { %v3512_v54 = vpop.xlane.xlu0 %3511  ;;  %v8190_v10 = vmax.f32 %v8177_v6, %v3514_v41  ;;  %5788 = vmatpush3.bf16.msra.mxu1 %v6176_v47  ;;  %v8220_v41 = vld [vmem:[#allocation2 + $0xc0] sm:$0xff] }
 0x5d9   : > { %v8195_v31 = vmax.f32 %v8181_v4, %v3512_v54  ;;  %5789 = vmatprep.subr.bf16.mxu1 %v6177_v53 }
 0x5da   : > { %4721 = vst.msk [vmem:[#allocation2 + $0xd8] sm:$0xff] %vm4067_vm6, %v8190_v10 }
 0x5db   : > { %4720 = vst.msk [vmem:[#allocation2 + $0xd0] sm:$0xff] %vm4067_vm6, %v8195_v31  ;;  %3768 = vperm.xlu0 %6129, %v8116_v44   ;;  %3673 = vperm.xlu1 %6128, %v8140_v63   ;;  %v3478_v54 = vpop.xlane.xlu1 %3477 }
 0x5dc   : > { %v3476_v40 = vpop.xlane.xlu0 %3475  ;;  %v8210_v23 = vmax.f32 %v8197_v22, %v3478_v54  ;;  %5790 = vmatpush3.bf16.msra.mxu1 %v6177_v53 }
 0x5dd   : > { %v8214_v28 = vmax.f32 %v8201_v20, %v3476_v40 }
 0x5de   : > { %4703 = vst.msk [vmem:[#allocation2 + $0x48] sm:$0xff] %vm4067_vm6, %v8210_v23 }
 0x5df   : > { %4702 = vst.msk [vmem:[#allocation2 + $0x40] sm:$0xff] %vm4067_vm6, %v8214_v28  ;;  %3708 = vperm.xlu0 %6129, %v8170_v32   ;;  %3678 = vperm.xlu1 %6128, %v8137_v30   ;;  %v3510_v46 = vpop.xlane.xlu1 %3509 }
 0x5e0   : > { %v3508_v47 = vpop.xlane.xlu0 %3507  ;;  %v8229_v54 = vmax.f32 %v8216_v25, %v3510_v46 }
 0x5e1   : > { %v8232_v40 = vmax.f32 %v8220_v41, %v3508_v47 }
 0x5e2   : > { %4719 = vst.msk [vmem:[#allocation2 + $0xc8] sm:$0xff] %vm4067_vm6, %v8229_v54 }
 0x5e3   : > { %4718 = vst.msk [vmem:[#allocation2 + $0xc0] sm:$0xff] %vm4067_vm6, %v8232_v40  ;;  %3788 = vperm.xlu0 %6129, %v8190_v10   ;;  %3758 = vperm.xlu1 %6128, %v8154_v27   ;;  %v3490_v53 = vpop.xlane.xlu1 %3489 }
 0x5e4   : > { %v3488_v46 = vpop.xlane.xlu0 %3487  ;;  %v8247_v47 = vmax.f32 %v8234_v12, %v3490_v53 }
 0x5e5   : > { %v8250_v43 = vmax.f32 %v8238_v14, %v3488_v46  ;;  %v3556_v14 = vsub.f32 %v8072_v39, %v8085_v11  ;;  %v3562_v39 = vsub.f32 %v8087_v16, %v8099_v24 }
 0x5e6   : > { %4709 = vst.msk [vmem:[#allocation2 + $0x78] sm:$0xff] %vm4067_vm6, %v8247_v47 }
 0x5e7   : > { %4708 = vst.msk [vmem:[#allocation2 + $0x70] sm:$0xff] %vm4067_vm6, %v8250_v43  ;;  %3698 = vperm.xlu0 %6129, %v8210_v23   ;;  %3703 = vperm.xlu1 %6128, %v8175_v42   ;;  %v3522_v53 = vpop.xlane.xlu1 %3521 }
 0x5e8   : > { %v3520_v46 = vpop.xlane.xlu0 %3519  ;;  %v8265_v55 = vmax.f32 %v8252_v19, %v3522_v53 }
 0x5e9   : > { %v8268_v35 = vmax.f32 %v8256_v48, %v3520_v46  ;;  %v3555_v46 = vsub.f32 %v8037_v29, %v8048_v52 }
 0x5ea   : > { %4725 = vst.msk [vmem:[#allocation2 + $0xf8] sm:$0xff] %vm4067_vm6, %v8265_v55 }
 0x5eb   : > { %4724 = vst.msk [vmem:[#allocation2 + $0xf0] sm:$0xff] %vm4067_vm6, %v8268_v35  ;;  %3778 = vperm.xlu0 %6129, %v8229_v54   ;;  %3783 = vperm.xlu1 %6128, %v8195_v31   ;;  %v3486_v53 = vpop.xlane.xlu1 %3485  ;;  %v3587_v52 = vmul.f32 1.442695, %v3555_v46  ;;  %v3589_v46 = vmul.f32 1.442695, %v3556_v14 }
 0x5ec   : > { %v3484_v59 = vpop.xlane.xlu0 %3483  ;;  %v8287_v19 = vmax.f32 %v8270_v7, %v3486_v53  ;;  %v3601_v14 = vmul.f32 1.442695, %v3562_v39  ;;  %v3566_v39 = vsub.f32 %v8159_v49, %v8170_v32  ;;  %v9112_v49 = vsub.f32 %v8108_v33, %v8119_v37 }
 0x5ed   : > { %v8290_v5 = vmax.f32 %v8276_v26, %v3484_v59  ;;  %v3558_v59 = vsub.f32 %v8030_v1, %v8045_v45  ;;  %6178 = vpow2.f32 %v3587_v52  ;;  %v3560_v45 = vsub.f32 %v8121_v9, %v8137_v30 }
 0x5ee   : > { %4707 = vst.msk [vmem:[#allocation2 + $0x68] sm:$0xff] %vm4067_vm6, %v8287_v19  ;;  %v3572_v52 = vsub.f32 %v8066_v18, %v8082_v61  ;;  %v3559_v30 = vsub.f32 %v8127_v3, %v8140_v63  ;;  %v9108_v61 = vsub.f32 %v8050_v58, %v8061_v17  ;;  %v3576_v63 = vsub.f32 %v8142_v60, %v8154_v27 }
 0x5ef   : > { %4706 = vst.msk [vmem:[#allocation2 + $0x60] sm:$0xff] %vm4067_vm6, %v8290_v5  ;;  %3728 = vperm.xlu0 %6129, %v8247_v47   ;;  %3693 = vperm.xlu1 %6128, %v8214_v28   ;;  %v3518_v29 = vpop.xlane.xlu1 %3517  ;;  %v3593_v1 = vmul.f32 1.442695, %v3558_v59  ;;  %v3597_v11 = vmul.f32 1.442695, %v3560_v45  ;;  %v9110_v27 = vsub.f32 %v8022_v36, %v8028_v51 }
 0x5f0   : > { %v3516_v53 = vpop.xlane.xlu0 %3515  ;;  %v8305_v48 = vmax.f32 %v8292_v8, %v3518_v29  ;;  %v9107_v29 = vsub.f32 %v8020_v50, %v8025_v57  ;;  %v3621_v16 = vmul.f32 1.442695, %v3572_v52  ;;  %v3561_v50 = vsub.f32 %v8091_v2, %v8102_v21 }
 0x5f1   : > { %v8308_v26 = vmax.f32 %v8296_v62, %v3516_v53  ;;  %6180 = vpow2.f32 %v3593_v1  ;;  %v3595_v57 = vmul.f32 1.442695, %v3559_v30  ;;  %v3625_v24 = vmul.f32 1.442695, %v9108_v61 }
 0x5f2   : > { %4723 = vst.msk [vmem:[#allocation2 + $0xe8] sm:$0xff] %vm4067_vm6, %v8305_v48  ;;  %v3591_v53 = vmul.f32 1.442695, %v9107_v29  ;;  %6182 = vpow2.f32 %v3589_v46  ;;  %v3599_v3 = vmul.f32 1.442695, %v3561_v50  ;;  %v9109_v21 = vsub.f32 %v8054_v13, %v8064_v15 }
 0x5f3   : > { %4722 = vst.msk [vmem:[#allocation2 + $0xe0] sm:$0xff] %vm4067_vm6, %v8308_v26  ;;  %3773 = vperm.xlu1 %6128, %v8232_v40   ;;  %3718 = vperm.xlu0 %6129, %v8287_v19   ;;  %6184 = vpow2.f32 %v3597_v11  ;;  %v3629_v58 = vmul.f32 1.442695, %v3576_v63  ;;  %v3623_v60 = vmul.f32 1.442695, %v9110_v27  ;;  %v3575_v13 = vsub.f32 %v8146_v38, %v8157_v0 }
 0x5f4   : > { %6186 = vpow2.f32 %v3591_v53  ;;  %v3619_v1 = vmul.f32 1.442695, %v9109_v21  ;;  %v9111_v15 = vsub.f32 %v8104_v56, %v8116_v44  ;;  %v3609_v0 = vmul.f32 1.442695, %v3566_v39 }
 0x5f5   : > { %6188 = vpow2.f32 %v3601_v14  ;;  %v3627_v51 = vmul.f32 1.442695, %v3575_v13  ;;  %v3582_v44 = vsub.f32 %v8177_v6, %v8190_v10  ;;  %v3631_v32 = vmul.f32 1.442695, %v9112_v49 }
 0x5f6   : > { %6190 = vpow2.f32 %v3621_v16  ;;  %v3633_v46 = vmul.f32 1.442695, %v9111_v15  ;;  %v3564_v53 = vsub.f32 %v8197_v22, %v8210_v23  ;;  %v9113_v6 = vsub.f32 %v8163_v34, %v8175_v42 }
 0x5f7   : > { %3723 = vperm.xlu1 %6128, %v8250_v43   ;;  %3798 = vperm.xlu0 %6129, %v8305_v48   ;;  %v8333_v9 = vpop.eup %6178  ;;  %6192 = vpow2.f32 %v3595_v57  ;;  %v3641_v29 = vmul.f32 1.442695, %v3582_v44  ;;  %v3580_v14 = vsub.f32 %v8216_v25, %v8229_v54  ;;  %v9114_v23 = vsub.f32 %v8181_v4, %v8195_v31 }
 0x5f8   : > { %6194 = vpow2.f32 %v3625_v24  ;;  %v3607_v37 = vmul.f32 1.442695, %v9113_v6  ;;  %v3605_v33 = vmul.f32 1.442695, %v3564_v53  ;;  %v3570_v34 = vsub.f32 %v8234_v12, %v8247_v47  ;;  %v9121_v6 = vld [vmem:[#allocation52_spill] sm:$0xff] }
 0x5f9   : > { %6196 = vpow2.f32 %v3599_v3  ;;  %v3639_v16 = vmul.f32 1.442695, %v9114_v23  ;;  %v3637_v42 = vmul.f32 1.442695, %v3580_v14  ;;  %v9115_v54 = vsub.f32 %v8201_v20, %v8214_v28  ;;  %v9123_v23 = vld [vmem:[#allocation53_spill] sm:$0xff] }
 0x5fa   : > { %6198 = vpow2.f32 %v3619_v1  ;;  %v3617_v31 = vmul.f32 1.442695, %v3570_v34  ;;  %v3568_v4 = vsub.f32 %v8270_v7, %v8287_v19  ;;  %v9116_v47 = vsub.f32 %v8220_v41, %v8232_v40  ;;  %v9117_v19 = vld [vmem:[#allocation83_spill] sm:$0xff]  ;;  %v9119_v41 = vld [vmem:[#allocation86_spill] sm:$0xff] }
 0x5fb   : > { %3713 = vperm.xlu1 %6128, %v8290_v5   ;;  %3808 = vperm.xlu0 %6129, %v8265_v55   ;;  %v8339_v18 = vpop.eup %6180  ;;  %6200 = vpow2.f32 %v3629_v58  ;;  %v3603_v57 = vmul.f32 1.442695, %v9115_v54  ;;  %v3584_v20 = vsub.f32 %v8292_v8, %v8305_v48  ;;  %v9118_v63 = vsub.f32 %v9117_v19, %v8250_v43  ;;  %v9126_v19 = vld [vmem:[#allocation58_spill] sm:$0xff] }
 0x5fc   : > { %v8348_v59 = vpop.eup %6182  ;;  %6202 = vpow2.f32 %v3623_v60  ;;  %v3635_v24 = vmul.f32 1.442695, %v9116_v47  ;;  %v3613_v28 = vmul.f32 1.442695, %v3568_v4  ;;  %v3567_v40 = vsub.f32 %v9119_v41, %v8290_v5  ;;  %v9125_v47 = vld [vmem:[#allocation56_spill] sm:$0xff] }
 0x5fd   : > { %v8350_v2 = vpop.eup %6184  ;;  %6204 = vpow2.f32 %v3633_v46  ;;  %v3615_v21 = vmul.f32 1.442695, %v9118_v63  ;;  %v3645_v1 = vmul.f32 1.442695, %v3584_v20  ;;  %v3583_v43 = vsub.f32 %v8296_v62, %v8308_v26 }
 0x5fe   : > { %v8357_v17 = vpop.eup %6186  ;;  %6206 = vpow2.f32 %v3627_v51  ;;  %v3611_v48 = vmul.f32 1.442695, %v3567_v40 }
 0x5ff   : > { %3793 = vperm.xlu1 %6128, %v8308_v26   ;;  %4134 = vperm.xlu0 %6129, %v8333_v9   ;;  %v8359_v45 = vpop.eup %6188  ;;  %6208 = vpow2.f32 %v3609_v0  ;;  %v3643_v5 = vmul.f32 1.442695, %v3583_v43 }
 0x600   : > { %v8373_v11 = vpop.eup %6190  ;;  %6210 = vpow2.f32 %v3631_v32 }
 0x601   : > { %v8375_v36 = vpop.eup %6192  ;;  %6212 = vpow2.f32 %v3641_v29  ;;  %v9120_v29 = vld [vmem:[#allocation51_spill] sm:$0xff] }
 0x602   : > { %v8381_v56 = vpop.eup %6194  ;;  %6214 = vpow2.f32 %v3607_v37 }
 0x603   : > { %3803 = vperm.xlu1 %6128, %v8268_v35   ;;  %4149 = vperm.xlu0 %6129, %v8339_v18   ;;  %v8383_v38 = vpop.eup %6196  ;;  %6216 = vpow2.f32 %v3605_v33  ;;  %v9122_v33 = vld [vmem:[#allocation54_spill] sm:$0xff] }
 0x604   : > { %v8392_v52 = vpop.eup %6198  ;;  %6218 = vpow2.f32 %v3639_v16 }
 0x605   : > { %v8394_v10 = vpop.eup %6200  ;;  %6220 = vpow2.f32 %v3637_v42 }
 0x606   : > { %v8403_v30 = vpop.eup %6202  ;;  %6222 = vpow2.f32 %v3603_v57 }
 0x607   : > { %4139 = vperm.xlu1 %6128, %v8348_v59   ;;  %4159 = vperm.xlu0 %6129, %v8350_v2   ;;  %v8405_v22 = vpop.eup %6204  ;;  %6224 = vpow2.f32 %v3617_v31  ;;  %v9124_v31 = vld [vmem:[#allocation55_spill] sm:$0xff] }
 0x608   : > { %v8414_v50 = vpop.eup %6206  ;;  %6226 = vpow2.f32 %v3635_v24 }
 0x609   : > { %v8416_v25 = vpop.eup %6208  ;;  %6228 = vpow2.f32 %v3613_v28 }
 0x60a   : > { %v8425_v61 = vpop.eup %6210  ;;  %6230 = vpow2.f32 %v3615_v21 }
 0x60b   : > { %4144 = vperm.xlu1 %6128, %v8357_v17   ;;  %4169 = vperm.xlu0 %6129, %v8359_v45   ;;  %v8427_v12 = vpop.eup %6212  ;;  %6232 = vpow2.f32 %v3645_v1 }
 0x60c   : > { %v8436_v3 = vpop.eup %6214  ;;  %6234 = vpow2.f32 %v3611_v48  ;;  %v9127_v48 = vld [vmem:[#allocation57_spill] sm:$0xff] }
 0x60d   : > { %v8438_v7 = vpop.eup %6216  ;;  %6236 = vpow2.f32 %v3643_v5 }
 0x60e   : > { %v8447_v58 = vpop.eup %6218 }
 0x60f   : > { %4154 = vperm.xlu1 %6128, %v8375_v36   ;;  %4219 = vperm.xlu0 %6129, %v8373_v11   ;;  %v8449_v8 = vpop.eup %6220 }
 0x610   : > { %v8455_v27 = vpop.eup %6222 }
 0x611   : > { %v8457_v60 = vpop.eup %6224 }
 0x612   : > { %v8461_v13 = vpop.eup %6226 }
 0x613   : > { %4164 = vperm.xlu1 %6128, %v8383_v38   ;;  %4229 = vperm.xlu0 %6129, %v8381_v56   ;;  %v8463_v15 = vpop.eup %6228 }
 0x614   : > { %v8467_v26 = vpop.eup %6230 }
 0x615   : > { %v8469_v62 = vpop.eup %6232 }
 0x616   : > { %v8473_v46 = vpop.eup %6234 }
 0x617   : > { %4214 = vperm.xlu1 %6128, %v8392_v52   ;;  %4239 = vperm.xlu0 %6129, %v8394_v10   ;;  %v8476_v0 = vpop.eup %6236 }
 0x61b   : > { %4224 = vperm.xlu1 %6128, %v8403_v30   ;;  %4249 = vperm.xlu0 %6129, %v8405_v22  }
 0x61f   : > { %4234 = vperm.xlu1 %6128, %v8414_v50   ;;  %4189 = vperm.xlu0 %6129, %v8416_v25  }
 0x623   : > { %4244 = vperm.xlu1 %6128, %v8425_v61   ;;  %4269 = vperm.xlu0 %6129, %v8427_v12  }
 0x627   : > { %4184 = vperm.xlu1 %6128, %v8436_v3   ;;  %4179 = vperm.xlu0 %6129, %v8438_v7  }
 0x62b   : > { %4264 = vperm.xlu1 %6128, %v8447_v58   ;;  %4259 = vperm.xlu0 %6129, %v8449_v8  }
 0x62f   : > { %4174 = vperm.xlu1 %6128, %v8455_v27   ;;  %4209 = vperm.xlu0 %6129, %v8457_v60  }
 0x633   : > { %4254 = vperm.xlu1 %6128, %v8461_v13   ;;  %4199 = vperm.xlu0 %6129, %v8463_v15  }
 0x635   : > { %v3664_v39 = vpop.permute.xlu1 %3663 }
 0x636   : > { %v3744_v51 = vpop.permute.xlu0 %3743  ;;  %v3813_v53 = vsub.f32 %v9120_v29, %v3664_v39 }
 0x637   : > { %4204 = vperm.xlu1 %6128, %v8467_v26   ;;  %4279 = vperm.xlu0 %6129, %v8469_v62   ;;  %v3829_v37 = vsub.f32 %v9121_v6, %v3744_v51 }
 0x638   : > { %v3847_v34 = vmul.f32 1.442695, %v3813_v53 }
 0x639   : > { %v3879_v54 = vmul.f32 1.442695, %v3829_v37 }
 0x63a   : > { %v3654_v49 = vpop.permute.xlu0 %3653  ;;  %6238 = vpow2.f32 %v3847_v34  ;;  %v9130_v34 = vld [vmem:[#allocation59_spill] sm:$0xff] }
 0x63b   : > { %4194 = vperm.xlu1 %6128, %v8473_v46   ;;  %v3811_v14 = vsub.f32 %v9122_v33, %v3654_v49  ;;  %6240 = vpow2.f32 %v3879_v54 }
 0x63d   : > { %v3843_v57 = vmul.f32 1.442695, %v3811_v14  ;;  %v9129_v14 = vld [vmem:[#allocation62_spill] sm:$0xff] }
 0x63e   : > { %v3734_v44 = vpop.permute.xlu1 %3733 }
 0x63f   : > { %4274 = vperm.xlu1 %6128, %v8476_v0   ;;  %v3827_v24 = vsub.f32 %v9125_v47, %v3734_v44  ;;  %6242 = vpow2.f32 %v3843_v57  ;;  %v9128_v44 = vld [vmem:[#allocation60_spill] sm:$0xff] }
 0x641   : > { %v3875_v40 = vmul.f32 1.442695, %v3827_v24 }
 0x642   : > { %v3669_v32 = vpop.permute.xlu1 %3668 }
 0x643   : > { %v3814_v16 = vsub.f32 %v9123_v23, %v3669_v32 }
 0x644   : > { %v6239_v32 = vpop.eup %6238 }
 0x645   : > { %v3849_v28 = vmul.f32 1.442695, %v3814_v16  ;;  %v6241_v29 = vpop.eup %6240 }
 0x646   : > { %v3749_v42 = vpop.permute.xlu1 %3748 }
 0x647   : > { %v3830_v4 = vsub.f32 %v9124_v31, %v3749_v42  ;;  %6244 = vpow2.f32 %v3849_v28  ;;  %v9131_v28 = vld [vmem:[#allocation64_spill] sm:$0xff] }
 0x649   : > { %v3881_v21 = vmul.f32 1.442695, %v3830_v4  ;;  %v6243_v37 = vpop.eup %6242 }
 0x64a   : > { %v3659_v20 = vpop.permute.xlu1 %3658 }
 0x64b   : > { %v3812_v63 = vsub.f32 %v9126_v19, %v3659_v20 }
 0x64d   : > { %v3845_v41 = vmul.f32 1.442695, %v3812_v63 }
 0x64e   : > { %v3739_v1 = vpop.permute.xlu1 %3738 }
 0x64f   : > { %6246 = vpow2.f32 %v3845_v41  ;;  %v3828_v43 = vsub.f32 %v9127_v48, %v3739_v1  ;;  %v9132_v41 = vld [vmem:[#allocation66_spill] sm:$0xff] }
 0x650   : > { %6248 = vpow2.f32 %v3881_v21 }
 0x651   : > { %v3877_v5 = vmul.f32 1.442695, %v3828_v43  ;;  %6250 = vpow2.f32 %v3875_v40  ;;  %v6245_v16 = vpop.eup %6244 }
 0x652   : > { %v3754_v39 = vpop.permute.xlu0 %3753  ;;  %v3684_v51 = vpop.permute.xlu1 %3683  ;;  %v4325_v19 = vpack.c.bf16 %v6245_v16, %v6239_v32 }
 0x653   : > { %6252 = vpow2.f32 %v3877_v5  ;;  %v3817_v49 = vsub.f32 %v9128_v44, %v3684_v51  ;;  %v3831_v40 = vsub.f32 %v9132_v41, %v3754_v39  ;;  %v9133_v44 = vld [vmem:[#allocation61_spill] sm:$0xff] }
 0x655   : > { %v3855_v33 = vmul.f32 1.442695, %v3817_v49 }
 0x656   : > { %v3689_v53 = vpop.permute.xlu0 %3688  ;;  %3975 = vadd.xlane.f32.xlu0 %v6239_v32  ;;  %v3764_v6 = vpop.permute.xlu1 %3763 }
 0x657   : > { %v3833_v23 = vsub.f32 %v9129_v14, %v3764_v6  ;;  %v3818_v54 = vsub.f32 %v9130_v34, %v3689_v53  ;;  %6254 = vpow2.f32 %v3855_v33  ;;  %v9134_v6 = vld [vmem:[#allocation63_spill] sm:$0xff]  ;;  %v3883_v14 = vmul.f32 1.442695, %v3831_v40 }
 0x658   : > { %v9137_v40 = vld [vmem:[#allocation71_spill] sm:$0xff] }
 0x659   : > { %v6247_v42 = vpop.eup %6246  ;;  %v3887_v24 = vmul.f32 1.442695, %v3833_v23  ;;  %v3857_v1 = vmul.f32 1.442695, %v3818_v54  ;;  %v9135_v54 = vld [vmem:[#allocation65_spill] sm:$0xff] }
 0x65a   : > { %v3769_v57 = vpop.permute.xlu0 %3768  ;;  %4007 = vadd.xlane.f32.xlu0 %v6241_v29  ;;  %v3674_v31 = vpop.permute.xlu1 %3673  ;;  %v4324_v4 = vpack.c.bf16 %v6247_v42, %v6243_v37 }
 0x65b   : > { %v6249_v47 = vpop.eup %6248  ;;  %v3815_v20 = vsub.f32 %v9131_v28, %v3674_v31  ;;  %6256 = vpow2.f32 %v3887_v24  ;;  %v3834_v49 = vsub.f32 %v9133_v44, %v3769_v57  ;;  %v9136_v28 = vld [vmem:[#allocation68_spill] sm:$0xff]  ;;  %v9139_v44 = vld [vmem:[#allocation67_spill] sm:$0xff] }
 0x65c   : > { %v6251_v63 = vpop.eup %6250  ;;  %5759 = vmatprep.mubr.bf16.mxu0 %v4324_v4  ;;  %v4333_v51 = vpack.c.bf16 %v6249_v47, %v6241_v29  ;;  %6258 = vpow2.f32 %v3857_v1 }
 0x65d   : > { %v6253_v21 = vpop.eup %6252  ;;  %5760 = vmatmul.mubr.bf16.vlgmr.msra.gmra.mrb[16].mxu0 %v4325_v19  ;;  %v3851_v53 = vmul.f32 1.442695, %v3815_v20  ;;  %v3889_v34 = vmul.f32 1.442695, %v3834_v49 }
 0x65e   : > { %v3709_v48 = vpop.permute.xlu0 %3708  ;;  %4003 = vadd.xlane.f32.xlu0 %v6251_v63  ;;  %v3679_v43 = vpop.permute.xlu1 %3678  ;;  %v4332_v5 = vpack.c.bf16 %v6253_v21, %v6251_v63 }
 0x65f   : > { %v3816_v33 = vsub.f32 %v9134_v6, %v3679_v43  ;;  %6260 = vpow2.f32 %v3851_v53  ;;  %v3822_v49 = vsub.f32 %v9139_v44, %v3709_v48 }
 0x660   : > { %5791 = vmatprep.mubr.bf16.mxu1 %v4332_v5 }
 0x661   : > { %v3853_v32 = vmul.f32 1.442695, %v3816_v33  ;;  %5792 = vmatmul.mubr.bf16.vlgmr.msra.gmra.mrb[16].mxu1 %v4333_v51  ;;  %v6255_v29 = vpop.eup %6254 }
 0x662   : > { %v3789_v23 = vpop.permute.xlu0 %3788  ;;  %3973 = vadd.xlane.f32.xlu0 %v6247_v42  ;;  %v3759_v39 = vpop.permute.xlu1 %3758 }
 0x663   : > { %v3832_v31 = vsub.f32 %v9135_v54, %v3759_v39  ;;  %3971 = vadd.xlane.f32.xlu1 %v6243_v37  ;;  %6262 = vpow2.f32 %v3853_v32  ;;  %v9138_v37 = vld [vmem:[#allocation70_spill] sm:$0xff] }
 0x664   : > { %6264 = vpow2.f32 %v3883_v14  ;;  %v9140_v14 = vld [vmem:[#allocation73_spill] sm:$0xff] }
 0x665   : > { %v3885_v4 = vmul.f32 1.442695, %v3832_v31  ;;  %6266 = vpow2.f32 %v3889_v34  ;;  %v6257_v19 = vpop.eup %6256  ;;  %v9141_v34 = vld [vmem:[#allocation72_spill] sm:$0xff] }
 0x666   : > { %v3699_v57 = vpop.permute.xlu0 %3698  ;;  %3983 = vadd.xlane.f32.xlu0 %v6255_v29  ;;  %v3704_v24 = vpop.permute.xlu1 %3703 }
 0x667   : > { %v3821_v20 = vsub.f32 %v9136_v28, %v3704_v24  ;;  %3977 = vadd.xlane.f32.xlu1 %v6245_v16  ;;  %6268 = vpow2.f32 %v3885_v4  ;;  %v3820_v1 = vsub.f32 %v9137_v40, %v3699_v57  ;;  %v6259_v5 = vpop.eup %6258  ;;  %v3865_v24 = vmul.f32 1.442695, %v3822_v49  ;;  %v9142_v28 = vld [vmem:[#allocation69_spill] sm:$0xff] }
 0x669   : > { %v3863_v42 = vmul.f32 1.442695, %v3821_v20  ;;  %v6261_v51 = vpop.eup %6260  ;;  %v3861_v32 = vmul.f32 1.442695, %v3820_v1  ;;  %v3838_v20 = vsub.f32 %v9142_v28, %v3789_v23  ;;  %v9143_v1 = vld [vmem:[#allocation74_spill] sm:$0xff]  ;;  %v9148_v28 = vld [vmem:[#allocation80_spill] sm:$0xff] }
 0x66a   : > { %v3779_v63 = vpop.permute.xlu0 %3778  ;;  %4015 = vadd.xlane.f32.xlu0 %v6257_v19  ;;  %v3784_v41 = vpop.permute.xlu1 %3783 }
 0x66b   : > { %v3837_v43 = vsub.f32 %v9138_v37, %v3784_v41  ;;  %4009 = vadd.xlane.f32.xlu1 %v6249_v47  ;;  %6270 = vpow2.f32 %v3863_v42  ;;  %v3836_v39 = vsub.f32 %v9140_v14, %v3779_v63  ;;  %v4327_v47 = vpack.c.bf16 %v6259_v5, %v6255_v29 }
 0x66c   : > { %v3897_v29 = vmul.f32 1.442695, %v3838_v20 }
 0x66d   : > { %v3895_v53 = vmul.f32 1.442695, %v3837_v43  ;;  %v6263_v6 = vpop.eup %6262  ;;  %v3893_v63 = vmul.f32 1.442695, %v3836_v39 }
 0x66e   : > { %v3729_v33 = vpop.permute.xlu0 %3728  ;;  %3979 = vadd.xlane.f32.xlu0 %v6261_v51  ;;  %v3694_v16 = vpop.permute.xlu1 %3693  ;;  %v4326_v31 = vpack.c.bf16 %v6263_v6, %v6261_v51 }
 0x66f   : > { %v3819_v54 = vsub.f32 %v9141_v34, %v3694_v16  ;;  %4005 = vadd.xlane.f32.xlu1 %v6253_v21  ;;  %v6265_v4 = vpop.eup %6264  ;;  %6272 = vpow2.f32 %v3895_v53  ;;  %v9144_v53 = vld [vmem:[#allocation79_spill] sm:$0xff] }
 0x670   : > { %v6267_v57 = vpop.eup %6266  ;;  %5763 = vmatprep.mubr.bf16.mxu0 %v4326_v31  ;;  %6274 = vpow2.f32 %v3861_v32  ;;  %v9145_v32 = vld [vmem:[#allocation76_spill] sm:$0xff] }
 0x671   : > { %v3859_v48 = vmul.f32 1.442695, %v3819_v54  ;;  %v6269_v42 = vpop.eup %6268  ;;  %5764 = vmatmul.mubr.bf16.gmra.mrb[20].mxu0 %v4327_v47  ;;  %v4335_v43 = vpack.c.bf16 %v6267_v57, %v6257_v19  ;;  %v9147_v54 = vld [vmem:[#allocation81_spill] sm:$0xff] }
 0x672   : > { %v3719_v41 = vpop.permute.xlu0 %3718  ;;  %4011 = vadd.xlane.f32.xlu0 %v6265_v4  ;;  %v3774_v40 = vpop.permute.xlu1 %3773  ;;  %v4334_v21 = vpack.c.bf16 %v6269_v42, %v6265_v4 }
 0x673   : > { %v3835_v37 = vsub.f32 %v9143_v1, %v3774_v40  ;;  %3985 = vadd.xlane.f32.xlu1 %v6259_v5  ;;  %6276 = vpow2.f32 %v3859_v48  ;;  %v3824_v16 = vsub.f32 %v9144_v53, %v3719_v41  ;;  %v9146_v5 = vld [vmem:[#allocation75_spill] sm:$0xff]  ;;  %v9149_v1 = vld [vmem:[#allocation77_spill] sm:$0xff] }
 0x674   : > { %6278 = vpow2.f32 %v3865_v24  ;;  %5795 = vmatprep.mubr.bf16.mxu1 %v4334_v21  ;;  %v3826_v39 = vsub.f32 %v9146_v5, %v3729_v33  ;;  %v9151_v5 = vld [vmem:[#allocation78_spill] sm:$0xff] }
 0x675   : > { %v3891_v51 = vmul.f32 1.442695, %v3835_v37  ;;  %v6271_v23 = vpop.eup %6270  ;;  %5796 = vmatmul.mubr.bf16.gmra.mrb[20].mxu1 %v4335_v43  ;;  %6280 = vpow2.f32 %v3893_v63  ;;  %v3869_v47 = vmul.f32 1.442695, %v3824_v16  ;;  %v9150_v43 = vld [vmem:[#allocation82_spill] sm:$0xff] }
 0x676   : > { %v3799_v44 = vpop.permute.xlu0 %3798  ;;  %v3724_v49 = vpop.permute.xlu1 %3723  ;;  %3991 = vadd.xlane.f32.xlu0 %v6271_v23  ;;  %v3873_v41 = vmul.f32 1.442695, %v3826_v39 }
 0x677   : > { %v3825_v14 = vsub.f32 %v9145_v32, %v3724_v49  ;;  %4017 = vadd.xlane.f32.xlu1 %v6267_v57  ;;  %6282 = vpow2.f32 %v3891_v51  ;;  %v3840_v31 = vsub.f32 %v9147_v54, %v3799_v44 }
 0x678   : > { %6284 = vpow2.f32 %v3897_v29 }
 0x679   : > { %v3871_v19 = vmul.f32 1.442695, %v3825_v14  ;;  %v6273_v34 = vpop.eup %6272  ;;  %v3901_v63 = vmul.f32 1.442695, %v3840_v31 }
 0x67a   : > { %v3714_v4 = vpop.permute.xlu1 %3713  ;;  %v3809_v24 = vpop.permute.xlu0 %3808  ;;  %4023 = vadd.xlane.f32.xlu0 %v6273_v34 }
 0x67b   : > { %v3823_v20 = vsub.f32 %v9148_v28, %v3714_v4  ;;  %3981 = vadd.xlane.f32.xlu1 %v6263_v6  ;;  %6286 = vpow2.f32 %v3871_v19  ;;  %v6275_v48 = vpop.eup %6274  ;;  %v3842_v37 = vsub.f32 %v9149_v1, %v3809_v24 }
 0x67c   : > { %6288 = vpow2.f32 %v3869_v47 }
 0x67d   : > { %v3867_v40 = vmul.f32 1.442695, %v3823_v20  ;;  %v6277_v57 = vpop.eup %6276  ;;  %v3905_v16 = vmul.f32 1.442695, %v3842_v37 }
 0x67e   : > { %v3794_v33 = vpop.permute.xlu1 %3793  ;;  %v6279_v21 = vpop.eup %6278  ;;  %3987 = vadd.xlane.f32.xlu0 %v6277_v57  ;;  %v4328_v51 = vpack.c.bf16 %v6275_v48, %v6277_v57 }
 0x67f   : > { %v3839_v29 = vsub.f32 %v9150_v43, %v3794_v33  ;;  %4013 = vadd.xlane.f32.xlu1 %v6269_v42  ;;  %6290 = vpow2.f32 %v3867_v40  ;;  %v4329_v44 = vpack.c.bf16 %v6279_v21, %v6271_v23  ;;  %v6281_v49 = vpop.eup %6280  ;;  %v8511_v24 = vpop.permute.xlu0 %4134 }
 0x680   : > { %6292 = vpow2.f32 %v3873_v41  ;;  %5767 = vmatprep.mubr.bf16.mxu0 %v4328_v51 }
 0x681   : > { %v3899_v6 = vmul.f32 1.442695, %v3839_v29  ;;  %v6283_v53 = vpop.eup %6282  ;;  %6294 = vpow2.f32 %v3901_v63  ;;  %5768 = vmatmul.mubr.bf16.gmra.mrb[24].mxu0 %v4329_v44  ;;  %v9152_v29 = vld [vmem:[#allocation84_spill] sm:$0xff] }
 0x682   : > { %v3804_v32 = vpop.permute.xlu1 %3803  ;;  %v6285_v14 = vpop.eup %6284  ;;  %4019 = vadd.xlane.f32.xlu0 %v6283_v53  ;;  %v4336_v19 = vpack.c.bf16 %v6281_v49, %v6283_v53  ;;  %v9153_v51 = vsub.f32 %v9152_v29, %v8265_v55 }
 0x683   : > { %6296 = vpow2.f32 %v3899_v6  ;;  %v3841_v39 = vsub.f32 %v9151_v5, %v3804_v32  ;;  %3993 = vadd.xlane.f32.xlu1 %v6279_v21  ;;  %v4337_v42 = vpack.c.bf16 %v6285_v14, %v6273_v34  ;;  %v8513_v1 = vpop.permute.xlu0 %4149 }
 0x684   : > { %5799 = vmatprep.mubr.bf16.mxu1 %v4336_v19  ;;  %6298 = vpow2.f32 %v3905_v16  ;;  %v3649_v44 = vmul.f32 1.442695, %v9153_v51  ;;  %v3909_v51 = vld [vmem:[#allocation3 + $0x10] sm:$0xff] }
 0x685   : > { %v3903_v54 = vmul.f32 1.442695, %v3841_v39  ;;  %v6287_v23 = vpop.eup %6286  ;;  %5800 = vmatmul.mubr.bf16.gmra.mrb[24].mxu1 %v4337_v42 }
 0x686   : > { %3999 = vadd.xlane.f32.xlu0 %v6287_v23  ;;  %v6289_v31 = vpop.eup %6288 }
 0x687   : > { %6300 = vpow2.f32 %v3903_v54  ;;  %4025 = vadd.xlane.f32.xlu1 %v6285_v14  ;;  %v8515_v33 = vpop.permute.xlu0 %4159 }
 0x688   : > { %6302 = vpow2.f32 %v3649_v44 }
 0x689   : > { %v6291_v4 = vpop.eup %6290 }
 0x68a   : > { %v6293_v47 = vpop.eup %6292  ;;  %v4330_v28 = vpack.c.bf16 %v6289_v31, %v6291_v4 }
 0x68b   : > { %3989 = vadd.xlane.f32.xlu1 %v6275_v48  ;;  %v6295_v20 = vpop.eup %6294  ;;  %v4331_v41 = vpack.c.bf16 %v6293_v47, %v6287_v23  ;;  %v8517_v48 = vpop.permute.xlu1 %4139 }
 0x68c   : > { %5771 = vmatprep.mubr.bf16.mxu0 %v4330_v28  ;;  %v8519_v21 = vpop.permute.xlu0 %4169 }
 0x68d   : > { %v6297_v40 = vpop.eup %6296  ;;  %5772 = vmatmul.mubr.bf16.gmra.mrb[28].mxu0 %v4331_v41 }
 0x68e   : > { %v4338_v34 = vpack.c.bf16 %v6295_v20, %v6297_v40  ;;  %v6299_v57 = vpop.eup %6298 }
 0x68f   : > { %4021 = vadd.xlane.f32.xlu1 %v6281_v49  ;;  %v8521_v43 = vpop.permute.xlu1 %4144  ;;  %v9154_v49 = vld [vmem:[#allocation85_spill] sm:$0xff] }
 0x690   : > { %5803 = vmatprep.mubr.bf16.mxu1 %v4338_v34  ;;  %v9155_v6 = vsub.f32 %v9154_v49, %v8268_v35  ;;  %v8529_v16 = vpop.permute.xlu0 %4219  ;;  %v3941_v49 = vmul.f32 %v8357_v17, %v3909_v51  ;;  %v3907_v51 = vld [vmem:[#allocation3] sm:$0xff] }
 0x691   : > { %v6301_v63 = vpop.eup %6300 }
 0x692   : > { %4031 = vadd.xlane.f32.xlu0 %v6301_v63  ;;  %v4339_v37 = vpack.c.bf16 %v6299_v57, %v6301_v63  ;;  %v3647_v53 = vmul.f32 1.442695, %v9155_v6  ;;  %v8537_v39 = vpop.eup %6302 }
 0x693   : > { %4001 = vadd.xlane.f32.xlu1 %v6293_v47  ;;  %v8531_v32 = vpop.permute.xlu1 %4154 }
 0x694   : > { %5804 = vmatmul.mubr.bf16.gmra.mrb[28].mxu1 %v4339_v37  ;;  %6304 = vpow2.f32 %v3647_v53  ;;  %v8533_v14 = vpop.permute.xlu0 %4229  ;;  %v3925_v53 = vld [vmem:[#allocation3 + $0x90] sm:$0xff] }
 0x696   : > { %3995 = vadd.xlane.f32.xlu0 %v6291_v4 }
 0x697   : > { %4033 = vadd.xlane.f32.xlu1 %v6299_v57  ;;  %v8535_v5 = vpop.permute.xlu1 %4164 }
 0x698   : > { %v8541_v55 = vpop.permute.xlu0 %4239 }
 0x69a   : > { %4027 = vadd.xlane.f32.xlu0 %v6297_v40 }
 0x69b   : > { %3997 = vadd.xlane.f32.xlu1 %v6289_v31  ;;  %v8543_v42 = vpop.permute.xlu1 %4214 }
 0x69c   : > { %v8547_v35 = vpop.permute.xlu0 %4249 }
 0x69e   : > { %v8539_v19 = vpop.eup %6304 }
 0x69f   : > { %4029 = vadd.xlane.f32.xlu1 %v6295_v20  ;;  %v8549_v54 = vpop.permute.xlu1 %4224 }
 0x6a0   : > { %v8551_v23 = vpop.permute.xlu0 %4189 }
 0x6a1   : > { %9156 = vst [vmem:[#allocation83_spill] sm:$0xff] %v8551_v23 }
 0x6a3   : > { %v8553_v31 = vpop.permute.xlu1 %4234 }
 0x6a4   : > { %v8555_v4 = vpop.permute.xlu0 %4269 }
 0x6a5   : > { %9157 = vst [vmem:[#allocation86_spill] sm:$0xff] %v8555_v4 }
 0x6a7   : > { %v8557_v47 = vpop.permute.xlu1 %4244 }
 0x6a8   : > { %v8559_v28 = vpop.permute.xlu0 %4179 }
 0x6a9   : > { %9158 = vst [vmem:[#allocation51_spill] sm:$0xff] %v8559_v28 }
 0x6ab   : > { %v8561_v20 = vpop.permute.xlu1 %4184 }
 0x6ac   : > { %v8563_v41 = vpop.permute.xlu0 %4259 }
 0x6ad   : > { %9159 = vst [vmem:[#allocation52_spill] sm:$0xff] %v8563_v41 }
 0x6af   : > { %v8565_v40 = vpop.permute.xlu1 %4264 }
 0x6b0   : > { %4284 = vperm.xlu1 %6128, %v8539_v19   ;;  %4289 = vperm.xlu0 %6129, %v8537_v39   ;;  %9160 = vst [vmem:[#allocation54_spill] sm:$0xff] %v8565_v40  ;;  %v8567_v34 = vpop.permute.xlu0 %4209 }
 0x6b1   : > { %9161 = vst [vmem:[#allocation53_spill] sm:$0xff] %v8567_v34  ;;  %v3957_v34 = vmul.f32 %v8403_v30, %v3925_v53  ;;  %v3939_v30 = vmul.f32 %v8333_v9, %v3907_v51 }
 0x6b3   : > { %v8569_v57 = vpop.permute.xlu1 %4174 }
 0x6b4   : > { %v8571_v63 = vpop.permute.xlu0 %4199 }
 0x6b5   : > { %9162 = vst [vmem:[#allocation55_spill] sm:$0xff] %v8571_v63  ;;  %v3923_v63 = vld [vmem:[#allocation3 + $0x80] sm:$0xff] }
 0x6b7   : > { %v8573_v37 = vpop.permute.xlu1 %4254 }
 0x6b8   : > { %9163 = vst [vmem:[#allocation56_spill] sm:$0xff] %v8573_v37  ;;  %v8575_v29 = vpop.permute.xlu0 %4279 }
 0x6b9   : > { %9164 = vst [vmem:[#allocation58_spill] sm:$0xff] %v8575_v29  ;;  %v3955_v29 = vmul.f32 %v8392_v52, %v3923_v63 }
 0x6bb   : > { %v8577_v44 = vpop.permute.xlu1 %4204 }
 0x6bc   : > { %9165 = vst [vmem:[#allocation57_spill] sm:$0xff] %v8577_v44  ;;  %v3908_v44 = vld [vmem:[#allocation3 + $0x8] sm:$0xff] }
 0x6bf   : > { %v8580_v4 = vpop.permute.xlu1 %4194 }
 0x6c3   : > { %v8586_v23 = vpop.permute.xlu1 %4274 }
 0x6c4   : > { %9166 = vst [vmem:[#allocation60_spill] sm:$0xff] %v8586_v23 }
 0x6e3   : > { %v3976_v6 = vpop.xlane.xlu0 %3975 }
 0x6e4   : > { %v4037_v41 = vadd.f32 %v3976_v6, %v3941_v49  ;;  %v3940_v49 = vmul.f32 %v8348_v59, %v3908_v44  ;;  %v3913_v6 = vld [vmem:[#allocation3 + $0x30] sm:$0xff]  ;;  %v3926_v44 = vld [vmem:[#allocation3 + $0x98] sm:$0xff] }
 0x6e5   : > { %v3945_v52 = vmul.f32 %v8383_v38, %v3913_v6  ;;  %v3911_v38 = vld [vmem:[#allocation3 + $0x20] sm:$0xff]  ;;  %v3924_v6 = vld [vmem:[#allocation3 + $0x88] sm:$0xff] }
 0x6e6   : > { %4070 = vst.msk [vmem:[#allocation3 + $0x10] sm:$0xff] %vm4067_vm6, %v4037_v41 }
 0x6e7   : > { %v4008_v40 = vpop.xlane.xlu0 %4007 }
 0x6e8   : > { %v4053_v28 = vadd.f32 %v4008_v40, %v3957_v34  ;;  %v3910_v34 = vld [vmem:[#allocation3 + $0x18] sm:$0xff] }
 0x6ea   : > { %4086 = vst.msk [vmem:[#allocation3 + $0x90] sm:$0xff] %vm4067_vm6, %v4053_v28 }
 0x6eb   : > { %v4004_v37 = vpop.xlane.xlu0 %4003 }
 0x6ec   : > { %v4051_v17 = vadd.f32 %v4004_v37, %v3955_v29  ;;  %v3942_v37 = vmul.f32 %v8339_v18, %v3910_v34  ;;  %v3929_v29 = vld [vmem:[#allocation3 + $0xb0] sm:$0xff]  ;;  %v3943_v18 = vmul.f32 %v8375_v36, %v3911_v38  ;;  %v3956_v34 = vmul.f32 %v8373_v11, %v3924_v6 }
 0x6ed   : > { %v3961_v9 = vmul.f32 %v8425_v61, %v3929_v29  ;;  %v3927_v61 = vld [vmem:[#allocation3 + $0xa0] sm:$0xff]  ;;  %v3933_v38 = vld [vmem:[#allocation3 + $0xd0] sm:$0xff] }
 0x6ee   : > { %4084 = vst.msk [vmem:[#allocation3 + $0x80] sm:$0xff] %vm4067_vm6, %v4051_v17 }
 0x6ef   : > { %v3974_v41 = vpop.xlane.xlu0 %3973 }
 0x6f0   : > { %v4036_v53 = vadd.f32 %v3974_v41, %v3940_v49  ;;  %v3972_v40 = vpop.xlane.xlu1 %3971  ;;  %v3958_v49 = vmul.f32 %v8381_v56, %v3926_v44  ;;  %v3959_v56 = vmul.f32 %v8414_v50, %v3927_v61  ;;  %v3930_v44 = vld [vmem:[#allocation3 + $0xb8] sm:$0xff] }
 0x6f1   : > { %v4035_v28 = vadd.f32 %v3972_v40, %v3939_v30 }
 0x6f2   : > { %4069 = vst.msk [vmem:[#allocation3 + $0x8] sm:$0xff] %vm4067_vm6, %v4036_v53 }
 0x6f3   : > { %4068 = vst.msk [vmem:[#allocation3] sm:$0xff] %vm4067_vm6, %v4035_v28  ;;  %v3984_v63 = vpop.xlane.xlu0 %3983 }
 0x6f4   : > { %v4041_v17 = vadd.f32 %v3984_v63, %v3945_v52  ;;  %v3978_v59 = vpop.xlane.xlu1 %3977  ;;  %v3914_v52 = vld [vmem:[#allocation3 + $0x38] sm:$0xff] }
 0x6f5   : > { %v4038_v23 = vadd.f32 %v3978_v59, %v3942_v37  ;;  %v3946_v29 = vmul.f32 %v8359_v45, %v3914_v52  ;;  %v3917_v59 = vld [vmem:[#allocation3 + $0x50] sm:$0xff]  ;;  %v3965_v45 = vmul.f32 %v8447_v58, %v3933_v38  ;;  %v3918_v58 = vld [vmem:[#allocation3 + $0x58] sm:$0xff]  ;;  %v3916_v38 = vld [vmem:[#allocation3 + $0x48] sm:$0xff] }
 0x6f6   : > { %4074 = vst.msk [vmem:[#allocation3 + $0x30] sm:$0xff] %vm4067_vm6, %v4041_v17  ;;  %v3949_v11 = vmul.f32 %v8436_v3, %v3917_v59  ;;  %v3928_v3 = vld [vmem:[#allocation3 + $0xa8] sm:$0xff] }
 0x6f7   : > { %4071 = vst.msk [vmem:[#allocation3 + $0x18] sm:$0xff] %vm4067_vm6, %v4038_v23  ;;  %v4016_v51 = vpop.xlane.xlu0 %4015 }
 0x6f8   : > { %v4057_v41 = vadd.f32 %v4016_v51, %v3961_v9  ;;  %v4010_v30 = vpop.xlane.xlu1 %4009  ;;  %v3962_v51 = vmul.f32 %v8405_v22, %v3930_v44  ;;  %v3921_v44 = vld [vmem:[#allocation3 + $0x70] sm:$0xff] }
 0x6f9   : > { %v4054_v53 = vadd.f32 %v4010_v30, %v3958_v49 }
 0x6fa   : > { %4090 = vst.msk [vmem:[#allocation3 + $0xb0] sm:$0xff] %vm4067_vm6, %v4057_v41  ;;  %v3912_v41 = vld [vmem:[#allocation3 + $0x28] sm:$0xff] }
 0x6fb   : > { %4087 = vst.msk [vmem:[#allocation3 + $0x98] sm:$0xff] %vm4067_vm6, %v4054_v53  ;;  %v3980_v40 = vpop.xlane.xlu0 %3979  ;;  %v3944_v53 = vmul.f32 %v8350_v2, %v3912_v41 }
 0x6fc   : > { %v4039_v28 = vadd.f32 %v3980_v40, %v3943_v18  ;;  %v4006_v23 = vpop.xlane.xlu1 %4005 }
 0x6fd   : > { %v4052_v63 = vadd.f32 %v4006_v23, %v3956_v34  ;;  %v3915_v34 = vld [vmem:[#allocation3 + $0x40] sm:$0xff]  ;;  %v3960_v23 = vmul.f32 %v8394_v10, %v3928_v3 }
 0x6fe   : > { %4072 = vst.msk [vmem:[#allocation3 + $0x20] sm:$0xff] %vm4067_vm6, %v4039_v28  ;;  %v3947_v28 = vmul.f32 %v8455_v27, %v3915_v34  ;;  %v3934_v27 = vld [vmem:[#allocation3 + $0xd8] sm:$0xff] }
 0x6ff   : > { %4085 = vst.msk [vmem:[#allocation3 + $0x88] sm:$0xff] %vm4067_vm6, %v4052_v63  ;;  %v4012_v37 = vpop.xlane.xlu0 %4011 }
 0x700   : > { %v4055_v36 = vadd.f32 %v4012_v37, %v3959_v56  ;;  %v3986_v17 = vpop.xlane.xlu1 %3985  ;;  %v3931_v56 = vld [vmem:[#allocation3 + $0xc0] sm:$0xff] }
 0x701   : > { %v4042_v9 = vadd.f32 %v3986_v17, %v3946_v29  ;;  %v3963_v29 = vmul.f32 %v8461_v13, %v3931_v56 }
 0x702   : > { %4088 = vst.msk [vmem:[#allocation3 + $0xa0] sm:$0xff] %vm4067_vm6, %v4055_v36  ;;  %v3950_v36 = vmul.f32 %v8416_v25, %v3918_v58  ;;  %v3948_v25 = vmul.f32 %v8438_v7, %v3916_v38  ;;  %v4118_v38 = vld [vmem:[#allocation4 + $0x90] sm:$0xff] }
 0x703   : > { %4075 = vst.msk [vmem:[#allocation3 + $0x38] sm:$0xff] %vm4067_vm6, %v4042_v9  ;;  %v3992_v49 = vpop.xlane.xlu0 %3991 }
 0x704   : > { %v4018_v50 = vpop.xlane.xlu1 %4017  ;;  %v4045_v30 = vadd.f32 %v3992_v49, %v3949_v11  ;;  %v3953_v11 = vmul.f32 %v8467_v26, %v3921_v44  ;;  %v3936_v44 = vld [vmem:[#allocation3 + $0xe8] sm:$0xff] }
 0x705   : > { %v4058_v6 = vadd.f32 %v4018_v50, %v3962_v51  ;;  %v3966_v51 = vmul.f32 %v8427_v12, %v3934_v27 }
 0x706   : > { %4078 = vst.msk [vmem:[#allocation3 + $0x50] sm:$0xff] %vm4067_vm6, %v4045_v30 }
 0x707   : > { %4091 = vst.msk [vmem:[#allocation3 + $0xb8] sm:$0xff] %vm4067_vm6, %v4058_v6  ;;  %v4024_v18 = vpop.xlane.xlu0 %4023  ;;  %v3932_v6 = vld [vmem:[#allocation3 + $0xc8] sm:$0xff] }
 0x708   : > { %v3982_v40 = vpop.xlane.xlu1 %3981  ;;  %v4061_v61 = vadd.f32 %v4024_v18, %v3965_v45  ;;  %v3964_v26 = vmul.f32 %v8449_v8, %v3932_v6  ;;  %v3922_v18 = vld [vmem:[#allocation3 + $0x78] sm:$0xff] }
 0x709   : > { %v4040_v22 = vadd.f32 %v3982_v40, %v3944_v53  ;;  %v3937_v53 = vld [vmem:[#allocation3 + $0xf0] sm:$0xff] }
 0x70a   : > { %4094 = vst.msk [vmem:[#allocation3 + $0xd0] sm:$0xff] %vm4067_vm6, %v4061_v61  ;;  %v3969_v34 = vmul.f32 %v8539_v19, %v3937_v53  ;;  %v3954_v61 = vmul.f32 %v8457_v60, %v3922_v18  ;;  %v3935_v19 = vld [vmem:[#allocation3 + $0xe0] sm:$0xff]  ;;  %v4310_v18 = vmul.f32 %v8549_v54, %v4118_v38  ;;  %v4111_v38 = vld [vmem:[#allocation4 + $0x58] sm:$0xff] }
 0x70b   : > { %4073 = vst.msk [vmem:[#allocation3 + $0x28] sm:$0xff] %vm4067_vm6, %v4040_v22  ;;  %v3988_v52 = vpop.xlane.xlu0 %3987  ;;  %v3919_v22 = vld [vmem:[#allocation3 + $0x60] sm:$0xff]  ;;  %v3967_v60 = vmul.f32 %v8476_v0, %v3935_v19  ;;  %v4103_v0 = vld [vmem:[#allocation4 + $0x18] sm:$0xff]  ;;  %v4122_v19 = vld [vmem:[#allocation4 + $0xb0] sm:$0xff] }
 0x70c   : > { %v4014_v63 = vpop.xlane.xlu1 %4013  ;;  %v4043_v37 = vadd.f32 %v3988_v52, %v3947_v28  ;;  %v3951_v8 = vmul.f32 %v8473_v46, %v3919_v22 }
 0x70d   : > { %v4056_v2 = vadd.f32 %v4014_v63, %v3960_v23  ;;  %v3938_v23 = vld [vmem:[#allocation3 + $0xf8] sm:$0xff] }
 0x70e   : > { %4076 = vst.msk [vmem:[#allocation3 + $0x40] sm:$0xff] %vm4067_vm6, %v4043_v37  ;;  %v3970_v56 = vmul.f32 %v8537_v39, %v3938_v23  ;;  %v3968_v39 = vmul.f32 %v8469_v62, %v3936_v44  ;;  %v4121_v44 = vld [vmem:[#allocation4 + $0xa8] sm:$0xff] }
 0x70f   : > { %4089 = vst.msk [vmem:[#allocation3 + $0xa8] sm:$0xff] %vm4067_vm6, %v4056_v2  ;;  %v4020_v17 = vpop.xlane.xlu0 %4019  ;;  %v3920_v2 = vld [vmem:[#allocation3 + $0x68] sm:$0xff] }
 0x710   : > { %v3994_v59 = vpop.xlane.xlu1 %3993  ;;  %v4059_v9 = vadd.f32 %v4020_v17, %v3963_v29  ;;  %v3952_v17 = vmul.f32 %v8463_v15, %v3920_v2  ;;  %v4120_v2 = vld [vmem:[#allocation4 + $0xa0] sm:$0xff] }
 0x711   : > { %v4046_v10 = vadd.f32 %v3994_v59, %v3950_v36 }
 0x712   : > { %4092 = vst.msk [vmem:[#allocation3 + $0xc0] sm:$0xff] %vm4067_vm6, %v4059_v9  ;;  %v4102_v9 = vld [vmem:[#allocation4 + $0x10] sm:$0xff] }
 0x713   : > { %4079 = vst.msk [vmem:[#allocation3 + $0x58] sm:$0xff] %vm4067_vm6, %v4046_v10  ;;  %v4000_v49 = vpop.xlane.xlu0 %3999 }
 0x714   : > { %v4026_v50 = vpop.xlane.xlu1 %4025  ;;  %v4049_v13 = vadd.f32 %v4000_v49, %v3953_v11  ;;  %v4100_v11 = vld [vmem:[#allocation4] sm:$0xff]  ;;  %v4101_v49 = vld [vmem:[#allocation4 + $0x8] sm:$0xff] }
 0x715   : > { %v4062_v41 = vadd.f32 %v4026_v50, %v3966_v51  ;;  %v4294_v50 = vmul.f32 %v8521_v43, %v4102_v9  ;;  %v4292_v15 = vmul.f32 %v8511_v24, %v4100_v11  ;;  %v4293_v62 = vmul.f32 %v8517_v48, %v4101_v49 }
 0x716   : > { %4082 = vst.msk [vmem:[#allocation3 + $0x70] sm:$0xff] %vm4067_vm6, %v4049_v13 }
 0x717   : > { %4095 = vst.msk [vmem:[#allocation3 + $0xd8] sm:$0xff] %vm4067_vm6, %v4062_v41  ;;  %v4295_v41 = vmul.f32 %v8513_v1, %v4103_v0 }
 0x718   : > { %v3990_v30 = vpop.xlane.xlu1 %3989 }
 0x719   : > { %v4044_v45 = vadd.f32 %v3990_v30, %v3948_v25  ;;  %v4116_v25 = vld [vmem:[#allocation4 + $0x80] sm:$0xff] }
 0x71a   : > { %v4308_v24 = vmul.f32 %v8543_v42, %v4116_v25 }
 0x71b   : > { %4077 = vst.msk [vmem:[#allocation3 + $0x48] sm:$0xff] %vm4067_vm6, %v4044_v45  ;;  %v4119_v45 = vld [vmem:[#allocation4 + $0x98] sm:$0xff] }
 0x71c   : > { %v4022_v12 = vpop.xlane.xlu1 %4021 }
 0x71d   : > { %v4060_v40 = vadd.f32 %v4022_v12, %v3964_v26  ;;  %v4117_v12 = vld [vmem:[#allocation4 + $0x88] sm:$0xff] }
 0x71e   : > { %v4309_v22 = vmul.f32 %v8529_v16, %v4117_v12  ;;  %v4127_v12 = vld [vmem:[#allocation4 + $0xd8] sm:$0xff] }
 0x71f   : > { %4093 = vst.msk [vmem:[#allocation3 + $0xc8] sm:$0xff] %vm4067_vm6, %v4060_v40  ;;  %v4032_v3 = vpop.xlane.xlu0 %4031 }
 0x720   : > { %v4065_v7 = vadd.f32 %v4032_v3, %v3969_v34  ;;  %v4002_v28 = vpop.xlane.xlu1 %4001  ;;  %v4311_v3 = vmul.f32 %v8533_v14, %v4119_v45  ;;  %v4106_v14 = vld [vmem:[#allocation4 + $0x30] sm:$0xff]  ;;  %v4124_v45 = vld [vmem:[#allocation4 + $0xc0] sm:$0xff] }
 0x721   : > { %v4050_v52 = vadd.f32 %v4002_v28, %v3954_v61  ;;  %v4298_v16 = vmul.f32 %v8535_v5, %v4106_v14  ;;  %v9172_v14 = vld [vmem:[#allocation52_spill] sm:$0xff] }
 0x722   : > { %4098 = vst.msk [vmem:[#allocation3 + $0xf0] sm:$0xff] %vm4067_vm6, %v4065_v7 }
 0x723   : > { %4083 = vst.msk [vmem:[#allocation3 + $0x78] sm:$0xff] %vm4067_vm6, %v4050_v52  ;;  %v3996_v63 = vpop.xlane.xlu0 %3995  ;;  %v4104_v52 = vld [vmem:[#allocation4 + $0x20] sm:$0xff] }
 0x724   : > { %v4047_v58 = vadd.f32 %v3996_v63, %v3951_v8  ;;  %v4034_v37 = vpop.xlane.xlu1 %4033  ;;  %v4107_v8 = vld [vmem:[#allocation4 + $0x38] sm:$0xff]  ;;  %v4105_v63 = vld [vmem:[#allocation4 + $0x28] sm:$0xff] }
 0x725   : > { %v4066_v29 = vadd.f32 %v4034_v37, %v3970_v56  ;;  %v4296_v56 = vmul.f32 %v8531_v32, %v4104_v52  ;;  %v4299_v37 = vmul.f32 %v8519_v21, %v4107_v8  ;;  %v4312_v32 = vmul.f32 %v8553_v31, %v4120_v2  ;;  %v4115_v2 = vld [vmem:[#allocation4 + $0x78] sm:$0xff] }
 0x726   : > { %4080 = vst.msk [vmem:[#allocation3 + $0x60] sm:$0xff] %vm4067_vm6, %v4047_v58 }
 0x727   : > { %4099 = vst.msk [vmem:[#allocation3 + $0xf8] sm:$0xff] %vm4067_vm6, %v4066_v29  ;;  %v4028_v36 = vpop.xlane.xlu0 %4027 }
 0x728   : > { %v4063_v46 = vadd.f32 %v4028_v36, %v3967_v60  ;;  %v3998_v59 = vpop.xlane.xlu1 %3997  ;;  %v4297_v36 = vmul.f32 %v8515_v33, %v4105_v63 }
 0x729   : > { %v4048_v27 = vadd.f32 %v3998_v59, %v3952_v17  ;;  %v4123_v17 = vld [vmem:[#allocation4 + $0xb8] sm:$0xff] }
 0x72a   : > { %4096 = vst.msk [vmem:[#allocation3 + $0xe0] sm:$0xff] %vm4067_vm6, %v4063_v46 }
 0x72b   : > { %4081 = vst.msk [vmem:[#allocation3 + $0x68] sm:$0xff] %vm4067_vm6, %v4048_v27  ;;  %v4314_v27 = vmul.f32 %v8557_v47, %v4122_v19  ;;  %v4114_v19 = vld [vmem:[#allocation4 + $0x70] sm:$0xff] }
 0x72c   : > { %v4030_v10 = vpop.xlane.xlu1 %4029 }
 0x72d   : > { %v4064_v51 = vadd.f32 %v4030_v10, %v3968_v39  ;;  %v4315_v10 = vmul.f32 %v8547_v35, %v4123_v17  ;;  %v4110_v35 = vld [vmem:[#allocation4 + $0x50] sm:$0xff] }
 0x72f   : > { %4097 = vst.msk [vmem:[#allocation3 + $0xe8] sm:$0xff] %vm4067_vm6, %v4064_v51  ;;  %v4313_v51 = vmul.f32 %v8541_v55, %v4121_v44  ;;  %v4302_v55 = vmul.f32 %v8561_v20, %v4110_v35  ;;  %v9176_v35 = vld [vmem:[#allocation60_spill] sm:$0xff] }
 0x730   : > { %v5761_v13 = vpop.f32.mrb[16].mxu0 }
 0x731   : > { %v4632_v30 = vadd.f32 %v5761_v13, %v4294_v50  ;;  %v4422_v6 = vpop.f32.mrb[17].mxu0  ;;  %v4109_v13 = vld [vmem:[#allocation4 + $0x48] sm:$0xff] }
 0x732   : > { %v4630_v26 = vadd.f32 %v4422_v6, %v4292_v15  ;;  %v5762_v53 = vpop.f32.mrb[18].mxu0  ;;  %v4108_v15 = vld [vmem:[#allocation4 + $0x40] sm:$0xff] }
 0x733   : > { %4664 = vst.msk [vmem:[#allocation4 + $0x10] sm:$0xff] %vm2925_vm4, %v4632_v30  ;;  %v4633_v43 = vadd.f32 %v5762_v53, %v4295_v41  ;;  %v4425_v40 = vpop.f32.mrb[19].mxu0  ;;  %v4126_v41 = vld [vmem:[#allocation4 + $0xd0] sm:$0xff]  ;;  %v4300_v25 = vmul.f32 %v8569_v57, %v4108_v15  ;;  %v9167_v6 = vld [vmem:[#allocation83_spill] sm:$0xff] }
 0x734   : > { %4662 = vst.msk [vmem:[#allocation4] sm:$0xff] %vm2925_vm4, %v4630_v26  ;;  %v4631_v1 = vadd.f32 %v4425_v40, %v4293_v62  ;;  %v5793_v34 = vpop.f32.mrb[16].mxu1  ;;  %v4303_v62 = vmul.f32 %v9167_v6, %v4111_v38 }
 0x735   : > { %4665 = vst.msk [vmem:[#allocation4 + $0x18] sm:$0xff] %vm2925_vm4, %v4633_v43  ;;  %v4648_v48 = vadd.f32 %v5793_v34, %v4310_v18  ;;  %v4567_v61 = vpop.f32.mrb[17].mxu1  ;;  %v9168_v18 = vld [vmem:[#allocation51_spill] sm:$0xff]  ;;  %v9169_v34 = vld [vmem:[#allocation54_spill] sm:$0xff] }
 0x736   : > { %4663 = vst.msk [vmem:[#allocation4 + $0x8] sm:$0xff] %vm2925_vm4, %v4631_v1  ;;  %v4646_v54 = vadd.f32 %v4567_v61, %v4308_v24  ;;  %v5794_v7 = vpop.f32.mrb[18].mxu1  ;;  %v4301_v43 = vmul.f32 %v9168_v18, %v4109_v13  ;;  %v4125_v1 = vld [vmem:[#allocation4 + $0xc8] sm:$0xff] }
 0x737   : > { %4680 = vst.msk [vmem:[#allocation4 + $0x90] sm:$0xff] %vm2925_vm4, %v4648_v48  ;;  %v4649_v28 = vadd.f32 %v5794_v7, %v4311_v3  ;;  %v4570_v42 = vpop.f32.mrb[19].mxu1  ;;  %v4318_v3 = vmul.f32 %v9169_v34, %v4126_v41  ;;  %v9170_v61 = vld [vmem:[#allocation56_spill] sm:$0xff]  ;;  %v9171_v7 = vld [vmem:[#allocation86_spill] sm:$0xff]  ;;  %v4317_v52 = vmul.f32 %v9172_v14, %v4125_v1 }
 0x738   : > { %4678 = vst.msk [vmem:[#allocation4 + $0x80] sm:$0xff] %vm2925_vm4, %v4646_v54  ;;  %v4647_v23 = vadd.f32 %v4570_v42, %v4309_v22  ;;  %v4316_v57 = vmul.f32 %v9170_v61, %v4124_v45 }
 0x739   : > { %4681 = vst.msk [vmem:[#allocation4 + $0x98] sm:$0xff] %vm2925_vm4, %v4649_v28  ;;  %v4319_v28 = vmul.f32 %v9171_v7, %v4127_v12 }
 0x73a   : > { %4679 = vst.msk [vmem:[#allocation4 + $0x88] sm:$0xff] %vm2925_vm4, %v4647_v23 }
 0x744   : > { %v5765_v58 = vpop.f32.mrb[20].mxu0 }
 0x745   : > { %v4636_v29 = vadd.f32 %v5765_v58, %v4298_v16  ;;  %v4438_v60 = vpop.f32.mrb[21].mxu0 }
 0x746   : > { %v4634_v46 = vadd.f32 %v4438_v60, %v4296_v56  ;;  %v5766_v59 = vpop.f32.mrb[22].mxu0  ;;  %v9173_v60 = vld [vmem:[#allocation57_spill] sm:$0xff] }
 0x747   : > { %4668 = vst.msk [vmem:[#allocation4 + $0x30] sm:$0xff] %vm2925_vm4, %v4636_v29  ;;  %v4637_v5 = vadd.f32 %v5766_v59, %v4299_v37  ;;  %v4441_v39 = vpop.f32.mrb[23].mxu0  ;;  %v4112_v37 = vld [vmem:[#allocation4 + $0x60] sm:$0xff]  ;;  %v4113_v29 = vld [vmem:[#allocation4 + $0x68] sm:$0xff]  ;;  %v9174_v59 = vld [vmem:[#allocation53_spill] sm:$0xff] }
 0x748   : > { %4666 = vst.msk [vmem:[#allocation4 + $0x20] sm:$0xff] %vm2925_vm4, %v4634_v46  ;;  %v4635_v21 = vadd.f32 %v4441_v39, %v4297_v36  ;;  %v5797_v9 = vpop.f32.mrb[20].mxu1  ;;  %v4306_v36 = vmul.f32 %v9173_v60, %v4114_v19  ;;  %v4304_v17 = vmul.f32 %v8580_v4, %v4112_v37  ;;  %v4307_v44 = vmul.f32 %v9174_v59, %v4115_v2  ;;  %v9175_v39 = vld [vmem:[#allocation55_spill] sm:$0xff] }
 0x749   : > { %4669 = vst.msk [vmem:[#allocation4 + $0x38] sm:$0xff] %vm2925_vm4, %v4637_v5  ;;  %v4652_v33 = vadd.f32 %v5797_v9, %v4314_v27  ;;  %v4583_v11 = vpop.f32.mrb[21].mxu1  ;;  %v4285_v9 = vpop.permute.xlu1 %4284 }
 0x74a   : > { %4667 = vst.msk [vmem:[#allocation4 + $0x28] sm:$0xff] %vm2925_vm4, %v4635_v21  ;;  %v4650_v47 = vadd.f32 %v4583_v11, %v4312_v32  ;;  %v5798_v0 = vpop.f32.mrb[22].mxu1  ;;  %v4305_v32 = vmul.f32 %v9175_v39, %v4113_v29  ;;  %v4130_v21 = vld [vmem:[#allocation4 + $0xf0] sm:$0xff]  ;;  %v4128_v11 = vld [vmem:[#allocation4 + $0xe0] sm:$0xff] }
 0x74b   : > { %4684 = vst.msk [vmem:[#allocation4 + $0xb0] sm:$0xff] %vm2925_vm4, %v4652_v33  ;;  %v4653_v49 = vadd.f32 %v5798_v0, %v4315_v10  ;;  %v4586_v31 = vpop.f32.mrb[23].mxu1  ;;  %v4131_v0 = vld [vmem:[#allocation4 + $0xf8] sm:$0xff]  ;;  %v4320_v15 = vmul.f32 %v9176_v35, %v4128_v11 }
 0x74c   : > { %4682 = vst.msk [vmem:[#allocation4 + $0xa0] sm:$0xff] %vm2925_vm4, %v4650_v47  ;;  %v4651_v50 = vadd.f32 %v4586_v31, %v4313_v51  ;;  %v4129_v31 = vld [vmem:[#allocation4 + $0xe8] sm:$0xff] }
 0x74d   : > { %4685 = vst.msk [vmem:[#allocation4 + $0xb8] sm:$0xff] %vm2925_vm4, %v4653_v49  ;;  %v4290_v49 = vpop.permute.xlu0 %4289 }
 0x74e   : > { %4683 = vst.msk [vmem:[#allocation4 + $0xa8] sm:$0xff] %vm2925_vm4, %v4651_v50  ;;  %v4322_v50 = vmul.f32 %v4285_v9, %v4130_v21  ;;  %v4323_v13 = vmul.f32 %v4290_v49, %v4131_v0 }
 0x754   : > { %v5769_v30 = vpop.f32.mrb[24].mxu0 }
 0x755   : > { %v4640_v26 = vadd.f32 %v5769_v30, %v4302_v55  ;;  %v4454_v53 = vpop.f32.mrb[25].mxu0 }
 0x756   : > { %v4638_v40 = vadd.f32 %v4454_v53, %v4300_v25  ;;  %v5770_v24 = vpop.f32.mrb[26].mxu0  ;;  %v9177_v25 = vld [vmem:[#allocation58_spill] sm:$0xff] }
 0x757   : > { %4672 = vst.msk [vmem:[#allocation4 + $0x50] sm:$0xff] %vm2925_vm4, %v4640_v26  ;;  %v4641_v20 = vadd.f32 %v5770_v24, %v4303_v62  ;;  %v4457_v48 = vpop.f32.mrb[27].mxu0  ;;  %v4321_v30 = vmul.f32 %v9177_v25, %v4129_v31 }
 0x758   : > { %4670 = vst.msk [vmem:[#allocation4 + $0x40] sm:$0xff] %vm2925_vm4, %v4638_v40  ;;  %v4639_v22 = vadd.f32 %v4457_v48, %v4301_v43  ;;  %v5801_v54 = vpop.f32.mrb[24].mxu1 }
 0x759   : > { %4673 = vst.msk [vmem:[#allocation4 + $0x58] sm:$0xff] %vm2925_vm4, %v4641_v20  ;;  %v4656_v42 = vadd.f32 %v5801_v54, %v4318_v3  ;;  %v4599_v23 = vpop.f32.mrb[25].mxu1 }
 0x75a   : > { %4671 = vst.msk [vmem:[#allocation4 + $0x48] sm:$0xff] %vm2925_vm4, %v4639_v22  ;;  %v4654_v8 = vadd.f32 %v4599_v23, %v4316_v57  ;;  %v5802_v63 = vpop.f32.mrb[26].mxu1 }
 0x75b   : > { %4688 = vst.msk [vmem:[#allocation4 + $0xd0] sm:$0xff] %vm2925_vm4, %v4656_v42  ;;  %v4657_v16 = vadd.f32 %v5802_v63, %v4319_v28  ;;  %v4602_v56 = vpop.f32.mrb[27].mxu1 }
 0x75c   : > { %4686 = vst.msk [vmem:[#allocation4 + $0xc0] sm:$0xff] %vm2925_vm4, %v4654_v8  ;;  %v4655_v58 = vadd.f32 %v4602_v56, %v4317_v52 }
 0x75d   : > { %4689 = vst.msk [vmem:[#allocation4 + $0xd8] sm:$0xff] %vm2925_vm4, %v4657_v16 }
 0x75e   : > { %4687 = vst.msk [vmem:[#allocation4 + $0xc8] sm:$0xff] %vm2925_vm4, %v4655_v58 }
 0x760   : > { %v5773_v46 = vpop.f32.mrb[28].mxu0 }
 0x761   : > { %v4644_v27 = vadd.f32 %v5773_v46, %v4306_v36  ;;  %v4470_v5 = vpop.f32.mrb[29].mxu0 }
 0x762   : > { %v4642_v10 = vadd.f32 %v4470_v5, %v4304_v17  ;;  %v5774_v33 = vpop.f32.mrb[30].mxu0 }
 0x763   : > { %4676 = vst.msk [vmem:[#allocation4 + $0x70] sm:$0xff] %vm2925_vm4, %v4644_v27  ;;  %v4645_v51 = vadd.f32 %v5774_v33, %v4307_v44  ;;  %v4473_v47 = vpop.f32.mrb[31].mxu0 }
 0x764   : > { %4674 = vst.msk [vmem:[#allocation4 + $0x60] sm:$0xff] %vm2925_vm4, %v4642_v10  ;;  %v4643_v4 = vadd.f32 %v4473_v47, %v4305_v32 }
 0x765   : > { %4677 = vst.msk [vmem:[#allocation4 + $0x78] sm:$0xff] %vm2925_vm4, %v4645_v51 }
 0x766   : > { %4675 = vst.msk [vmem:[#allocation4 + $0x68] sm:$0xff] %vm2925_vm4, %v4643_v4 }
 0x767   : > { %v5805_v38 = vpop.f32.mrb[28].mxu1 }
 0x768   : > { %v4660_v55 = vadd.f32 %v5805_v38, %v4322_v50  ;;  %v4615_v41 = vpop.f32.mrb[29].mxu1 }
 0x769   : > { %v4658_v6 = vadd.f32 %v4615_v41, %v4320_v15  ;;  %v5806_v62 = vpop.f32.mrb[30].mxu1 }
 0x76a   : > { %4692 = vst.msk [vmem:[#allocation4 + $0xf0] sm:$0xff] %vm2925_vm4, %v4660_v55  ;;  %v4661_v45 = vadd.f32 %v5806_v62, %v4323_v13  ;;  %v4618_v26 = vpop.f32.mrb[31].mxu1 }
 0x76b   : > { %4690 = vst.msk [vmem:[#allocation4 + $0xe0] sm:$0xff] %vm2925_vm4, %v4658_v6  ;;  %v4659_v53 = vadd.f32 %v4618_v26, %v4321_v30 }
 0x76c   : > { %4693 = vst.msk [vmem:[#allocation4 + $0xf8] sm:$0xff] %vm2925_vm4, %v4661_v45 }
 0x76d   : > { %4691 = vst.msk [vmem:[#allocation4 + $0xe8] sm:$0xff] %vm2925_vm4, %v4659_v53 }
 0x76e PF: > { %p5416_p10 = scmp.ne.s32.totalorder %s6474_s17, 1 }
 0x76f   : > { %v4732_v12 = vld [vmem:[#allocation3 + $0x10] sm:$0xff] (!%p5416_p10)  ;;  %v4730_v18 = vld [vmem:[#allocation3] sm:$0xff] (!%p5416_p10)  ;;  %v4733_v43 = vld [vmem:[#allocation3 + $0x18] sm:$0xff] (!%p5416_p10)  ;;  %v6504_v40 = vmov (!%p5416_p10), 0   ;;  %s6505_s17 = smov (!%p5416_p10), 64   ;;  %vm5082_vm4 = vcmask (!%p5416_p10), 523264  }
 0x770   : > { %4729 = sbr.rel (%p5416_p10) target bundleno = 2211 (0x8a3), region = 171  ;;  %6307 = vset.pattern.permute.xlu1 (!%p5416_p10), %v6504_v40  ;;  %6306 = vset.pattern.permute.xlu0 (!%p5416_p10), %v6504_v40  ;;  %6308 = vrcp.f32 (!%p5416_p10), %v4732_v12  ;;  %v4731_v24 = vld [vmem:[#allocation3 + $0x8] sm:$0xff] (!%p5416_p10)  ;;  %v4734_v34 = vld [vmem:[#allocation3 + $0x20] sm:$0xff] (!%p5416_p10)  ;;  %v4737_v3 = vld [vmem:[#allocation3 + $0x38] sm:$0xff] (!%p5416_p10) }
 0x771   : > { %6310 = vrcp.f32 (!%p5416_p10), %v4730_v18  ;;  %v4735_v1 = vld [vmem:[#allocation3 + $0x28] sm:$0xff] (!%p5416_p10)  ;;  %v4736_v20 = vld [vmem:[#allocation3 + $0x30] sm:$0xff] (!%p5416_p10)  ;;  %v4746_v57 = vld [vmem:[#allocation3 + $0x80] sm:$0xff] (!%p5416_p10) }
 0x772   : > { %6312 = vrcp.f32 (!%p5416_p10), %v4733_v43  ;;  %v4738_v54 = vld [vmem:[#allocation3 + $0x40] sm:$0xff] (!%p5416_p10)  ;;  %v4748_v28 = vld [vmem:[#allocation3 + $0x90] sm:$0xff] (!%p5416_p10)  ;;  %v4747_v23 = vld [vmem:[#allocation3 + $0x88] sm:$0xff] (!%p5416_p10) }
 0x773   : > { %6314 = vrcp.f32 (!%p5416_p10), %v4731_v24  ;;  %v4750_v52 = vld [vmem:[#allocation3 + $0xa0] sm:$0xff] (!%p5416_p10)  ;;  %v4749_v63 = vld [vmem:[#allocation3 + $0x98] sm:$0xff] (!%p5416_p10)  ;;  %v4752_v56 = vld [vmem:[#allocation3 + $0xb0] sm:$0xff] (!%p5416_p10) }
 0x774   : > { %6316 = vrcp.f32 (!%p5416_p10), %v4735_v1  ;;  %v4751_v58 = vld [vmem:[#allocation3 + $0xa8] sm:$0xff] (!%p5416_p10)  ;;  %v4754_v2 = vld [vmem:[#allocation3 + $0xc0] sm:$0xff] (!%p5416_p10)  ;;  %v4753_v60 = vld [vmem:[#allocation3 + $0xb8] sm:$0xff] (!%p5416_p10) }
 0x775   : > { %6318 = vrcp.f32 (!%p5416_p10), %v4734_v34  ;;  %v4756_v17 = vld [vmem:[#allocation3 + $0xd0] sm:$0xff] (!%p5416_p10)  ;;  %v4755_v59 = vld [vmem:[#allocation3 + $0xc8] sm:$0xff] (!%p5416_p10)  ;;  %v4758_v27 = vld [vmem:[#allocation3 + $0xe0] sm:$0xff] (!%p5416_p10) }
 0x776   : > { %6320 = vrcp.f32 (!%p5416_p10), %v4737_v3  ;;  %v4757_v39 = vld [vmem:[#allocation3 + $0xd8] sm:$0xff] (!%p5416_p10)  ;;  %v4760_v21 = vld [vmem:[#allocation3 + $0xf0] sm:$0xff] (!%p5416_p10)  ;;  %v4759_v10 = vld [vmem:[#allocation3 + $0xe8] sm:$0xff] (!%p5416_p10) }
 0x777   : > { %6322 = vrcp.f32 %v4736_v20  ;;  %v4739_v11 = vld [vmem:[#allocation3 + $0x48] sm:$0xff]  ;;  %v4761_v47 = vld [vmem:[#allocation3 + $0xf8] sm:$0xff]  ;;  %v4740_v31 = vld [vmem:[#allocation3 + $0x50] sm:$0xff] }
 0x778   : > { %6324 = vrcp.f32 %v4746_v57  ;;  %v4741_v49 = vld [vmem:[#allocation3 + $0x58] sm:$0xff]  ;;  %v4743_v35 = vld [vmem:[#allocation3 + $0x68] sm:$0xff]  ;;  %v4742_v38 = vld [vmem:[#allocation3 + $0x60] sm:$0xff] }
 0x779   : > { %6326 = vrcp.f32 %v4738_v54  ;;  %v4745_v55 = vld [vmem:[#allocation3 + $0x78] sm:$0xff]  ;;  %v4744_v25 = vld [vmem:[#allocation3 + $0x70] sm:$0xff] }
 0x77a   : > { %v6309_v48 = vpop.eup %6308  ;;  %6328 = vrcp.f32 %v4748_v28  ;;  %v4812_v54 = vld [vmem:[#allocation4 + $0x90] sm:$0xff] }
 0x77b   : > { %v6311_v61 = vpop.eup %6310  ;;  %4838 = vperm.xlu1 %6307, %v6309_v48   ;;  %6330 = vrcp.f32 %v4747_v23  ;;  %v4810_v48 = vld [vmem:[#allocation4 + $0x80] sm:$0xff] }
 0x77c   : > { %v6313_v22 = vpop.eup %6312  ;;  %4828 = vperm.xlu0 %6306, %v6311_v61   ;;  %6332 = vrcp.f32 %v4750_v52  ;;  %v4814_v52 = vld [vmem:[#allocation4 + $0xa0] sm:$0xff] }
 0x77d   : > { %v6315_v7 = vpop.eup %6314  ;;  %6334 = vrcp.f32 %v4749_v63 }
 0x77e   : > { %v6317_v42 = vpop.eup %6316  ;;  %6336 = vrcp.f32 %v4752_v56 }
 0x77f   : > { %4843 = vperm.xlu1 %6307, %v6313_v22   ;;  %v6319_v14 = vpop.eup %6318  ;;  %6338 = vrcp.f32 %v4751_v58  ;;  %v4816_v58 = vld [vmem:[#allocation4 + $0xb0] sm:$0xff] }
 0x780   : > { %4833 = vperm.xlu0 %6306, %v6315_v7   ;;  %v6321_v8 = vpop.eup %6320  ;;  %6340 = vrcp.f32 %v4754_v2  ;;  %v4811_v7 = vld [vmem:[#allocation4 + $0x88] sm:$0xff] }
 0x781   : > { %v6323_v16 = vpop.eup %6322  ;;  %6342 = vrcp.f32 %v4753_v60 }
 0x782   : > { %v6325_v19 = vpop.eup %6324  ;;  %6344 = vrcp.f32 %v4756_v17  ;;  %v4818_v17 = vld [vmem:[#allocation4 + $0xc0] sm:$0xff] }
 0x783   : > { %4853 = vperm.xlu1 %6307, %v6317_v42   ;;  %v6327_v37 = vpop.eup %6326  ;;  %6346 = vrcp.f32 %v4755_v59 }
 0x784   : > { %4848 = vperm.xlu0 %6306, %v6319_v14   ;;  %v6329_v29 = vpop.eup %6328  ;;  %6348 = vrcp.f32 %v4758_v27 }
 0x785   : > { %v6331_v36 = vpop.eup %6330  ;;  %6350 = vrcp.f32 %v4757_v39  ;;  %v4820_v39 = vld [vmem:[#allocation4 + $0xd0] sm:$0xff] }
 0x786   : > { %v6333_v46 = vpop.eup %6332  ;;  %6352 = vrcp.f32 %v4760_v21 }
 0x787   : > { %4863 = vperm.xlu1 %6307, %v6321_v8   ;;  %v6335_v44 = vpop.eup %6334  ;;  %6354 = vrcp.f32 %v4759_v10  ;;  %v4813_v8 = vld [vmem:[#allocation4 + $0x98] sm:$0xff] }
 0x788   : > { %4858 = vperm.xlu0 %6306, %v6323_v16   ;;  %v6337_v5 = vpop.eup %6336  ;;  %6356 = vrcp.f32 %v4739_v11  ;;  %v4822_v11 = vld [vmem:[#allocation4 + $0xe0] sm:$0xff] }
 0x789   : > { %v6339_v32 = vpop.eup %6338  ;;  %6358 = vrcp.f32 %v4761_v47 }
 0x78a   : > { %v6341_v9 = vpop.eup %6340  ;;  %6360 = vrcp.f32 %v4741_v49 }
 0x78b   : > { %4908 = vperm.xlu1 %6307, %v6325_v19   ;;  %v6343_v33 = vpop.eup %6342  ;;  %6362 = vrcp.f32 %v4740_v31  ;;  %v4824_v31 = vld [vmem:[#allocation4 + $0xf0] sm:$0xff] }
 0x78c   : > { %4868 = vperm.xlu0 %6306, %v6327_v37   ;;  %v6345_v51 = vpop.eup %6344  ;;  %6364 = vrcp.f32 %v4743_v35  ;;  %v4815_v37 = vld [vmem:[#allocation4 + $0xa8] sm:$0xff] }
 0x78d   : > { %v6347_v0 = vpop.eup %6346  ;;  %6366 = vrcp.f32 %v4742_v38 }
 0x78e   : > { %v6349_v4 = vpop.eup %6348  ;;  %6368 = vrcp.f32 %v4745_v55  ;;  %v4825_v55 = vld [vmem:[#allocation4 + $0xf8] sm:$0xff] }
 0x78f   : > { %4918 = vperm.xlu1 %6307, %v6329_v29   ;;  %v6351_v50 = vpop.eup %6350  ;;  %6370 = vrcp.f32 %v4744_v25 }
 0x790   : > { %4913 = vperm.xlu0 %6306, %v6331_v36   ;;  %v6353_v15 = vpop.eup %6352 }
 0x791   : > { %v6355_v13 = vpop.eup %6354 }
 0x792   : > { %v6357_v41 = vpop.eup %6356 }
 0x793   : > { %4928 = vperm.xlu1 %6307, %v6333_v46   ;;  %v6359_v30 = vpop.eup %6358  ;;  %v4817_v46 = vld [vmem:[#allocation4 + $0xb8] sm:$0xff] }
 0x794   : > { %4923 = vperm.xlu0 %6306, %v6335_v44   ;;  %v6361_v6 = vpop.eup %6360 }
 0x795   : > { %v6363_v62 = vpop.eup %6362 }
 0x796   : > { %v6365_v45 = vpop.eup %6364 }
 0x797   : > { %4938 = vperm.xlu1 %6307, %v6337_v5   ;;  %v6367_v26 = vpop.eup %6366 }
 0x798   : > { %4933 = vperm.xlu0 %6306, %v6339_v32   ;;  %v6369_v53 = vpop.eup %6368  ;;  %v4819_v32 = vld [vmem:[#allocation4 + $0xc8] sm:$0xff] }
 0x799   : > { %v6371_v12 = vpop.eup %6370 }
 0x79b   : > { %4948 = vperm.xlu1 %6307, %v6341_v9  }
 0x79c   : > { %4943 = vperm.xlu0 %6306, %v6343_v33  }
 0x79f   : > { %4958 = vperm.xlu1 %6307, %v6345_v51   ;;  %v4821_v51 = vld [vmem:[#allocation4 + $0xd8] sm:$0xff] }
 0x7a0   : > { %4953 = vperm.xlu0 %6306, %v6347_v0  }
 0x7a3   : > { %4968 = vperm.xlu1 %6307, %v6349_v4  }
 0x7a4   : > { %4963 = vperm.xlu0 %6306, %v6351_v50   ;;  %v4823_v50 = vld [vmem:[#allocation4 + $0xe8] sm:$0xff] }
 0x7a7   : > { %4978 = vperm.xlu1 %6307, %v6353_v15  }
 0x7a8   : > { %4973 = vperm.xlu0 %6306, %v6355_v13  }
 0x7ab   : > { %4873 = vperm.xlu1 %6307, %v6357_v41  }
 0x7ac   : > { %4983 = vperm.xlu0 %6306, %v6359_v30  }
 0x7af   : > { %4883 = vperm.xlu1 %6307, %v6361_v6  }
 0x7b0   : > { %4878 = vperm.xlu0 %6306, %v6363_v62  }
 0x7b3   : > { %4893 = vperm.xlu1 %6307, %v6365_v45  }
 0x7b4   : > { %4888 = vperm.xlu0 %6306, %v6367_v26  }
 0x7b7   : > { %4903 = vperm.xlu1 %6307, %v6369_v53   ;;  %v4794_v53 = vld [vmem:[#allocation4] sm:$0xff] }
 0x7b8   : > { %4898 = vperm.xlu0 %6306, %v6371_v12  }
 0x7fa   : > { %v8710_v18 = vpop.permute.xlu1 %4838 }
 0x7fb   : > { %v8712_v43 = vpop.permute.xlu0 %4828 }
 0x7fe   : > { %v8714_v40 = vpop.permute.xlu1 %4843 }
 0x7ff   : > { %v8716_v24 = vpop.permute.xlu0 %4833 }
 0x802   : > { %v8718_v1 = vpop.permute.xlu1 %4853 }
 0x803   : > { %v8720_v34 = vpop.permute.xlu0 %4848 }
 0x806   : > { %v8722_v3 = vpop.permute.xlu1 %4863 }
 0x807   : > { %v8724_v20 = vpop.permute.xlu0 %4858 }
 0x80a   : > { %v4909_v61 = vpop.permute.xlu1 %4908 }
 0x80b   : > { %v5002_v57 = vmul.f32 %v4909_v61, %v4810_v48  ;;  %v8726_v22 = vpop.permute.xlu0 %4868  ;;  %v4986_v48 = vmul.f32 %v8712_v43, %v4794_v53  ;;  %v4796_v61 = vld [vmem:[#allocation4 + $0x10] sm:$0xff] }
 0x80d   : > { %5034 = vrot.lane.b32.xlu0 %v5002_v57, %s6505_s17 }
 0x80e   : > { %v4919_v28 = vpop.permute.xlu1 %4918 }
 0x80f   : > { %v5004_v42 = vmul.f32 %v4919_v28, %v4812_v54  ;;  %v4914_v23 = vpop.permute.xlu0 %4913  ;;  %v4795_v54 = vld [vmem:[#allocation4 + $0x8] sm:$0xff] }
 0x810   : > { %v5003_v14 = vmul.f32 %v4914_v23, %v4811_v7  ;;  %v4987_v23 = vmul.f32 %v8716_v24, %v4795_v54  ;;  %v4799_v24 = vld [vmem:[#allocation4 + $0x28] sm:$0xff] }
 0x811   : > { %5038 = vrot.lane.b32.xlu0 %v5004_v42, %s6505_s17  ;;  %v4988_v42 = vmul.f32 %v8710_v18, %v4796_v61 }
 0x812   : > { %5036 = vrot.lane.b32.xlu1 %v5003_v14, %s6505_s17  ;;  %v4929_v63 = vpop.permute.xlu1 %4928  ;;  %v4798_v14 = vld [vmem:[#allocation4 + $0x20] sm:$0xff] }
 0x813   : > { %v5006_v16 = vmul.f32 %v4929_v63, %v4814_v52  ;;  %v4924_v56 = vpop.permute.xlu0 %4923 }
 0x814   : > { %v5005_v19 = vmul.f32 %v4924_v56, %v4813_v8  ;;  %v4797_v8 = vld [vmem:[#allocation4 + $0x18] sm:$0xff]  ;;  %v4990_v56 = vmul.f32 %v8720_v34, %v4798_v14  ;;  %v4802_v34 = vld [vmem:[#allocation4 + $0x40] sm:$0xff] }
 0x815   : > { %5042 = vrot.lane.b32.xlu0 %v5006_v16, %s6505_s17 }
 0x816   : > { %5040 = vrot.lane.b32.xlu1 %v5005_v19, %s6505_s17  ;;  %v4939_v2 = vpop.permute.xlu1 %4938  ;;  %v4989_v19 = vmul.f32 %v8714_v40, %v4797_v8  ;;  %v4801_v40 = vld [vmem:[#allocation4 + $0x38] sm:$0xff] }
 0x817   : > { %v5008_v29 = vmul.f32 %v4939_v2, %v4816_v58  ;;  %v4934_v60 = vpop.permute.xlu0 %4933  ;;  %v4800_v58 = vld [vmem:[#allocation4 + $0x30] sm:$0xff] }
 0x818   : > { %v5007_v36 = vmul.f32 %v4934_v60, %v4815_v37  ;;  %v4992_v60 = vmul.f32 %v8724_v20, %v4800_v58  ;;  %v4804_v20 = vld [vmem:[#allocation4 + $0x50] sm:$0xff] }
 0x819   : > { %5046 = vrot.lane.b32.xlu0 %v5008_v29, %s6505_s17 }
 0x81a   : > { %5044 = vrot.lane.b32.xlu1 %v5007_v36, %s6505_s17  ;;  %v4949_v59 = vpop.permute.xlu1 %4948  ;;  %v4991_v36 = vmul.f32 %v8718_v1, %v4799_v24  ;;  %v4803_v1 = vld [vmem:[#allocation4 + $0x48] sm:$0xff] }
 0x81b   : > { %v5010_v44 = vmul.f32 %v4949_v59, %v4818_v17  ;;  %v4944_v27 = vpop.permute.xlu0 %4943 }
 0x81c   : > { %v5009_v5 = vmul.f32 %v4944_v27, %v4817_v46  ;;  %v4994_v27 = vmul.f32 %v8726_v22, %v4802_v34 }
 0x81d   : > { %5050 = vrot.lane.b32.xlu0 %v5010_v44, %s6505_s17 }
 0x81e   : > { %5048 = vrot.lane.b32.xlu1 %v5009_v5, %s6505_s17  ;;  %v4959_v21 = vpop.permute.xlu1 %4958  ;;  %v4993_v5 = vmul.f32 %v8722_v3, %v4801_v40 }
 0x81f   : > { %v5012_v9 = vmul.f32 %v4959_v21, %v4820_v39  ;;  %v4954_v10 = vpop.permute.xlu0 %4953 }
 0x820   : > { %v5011_v33 = vmul.f32 %v4954_v10, %v4819_v32 }
 0x821   : > { %5054 = vrot.lane.b32.xlu0 %v5012_v9, %s6505_s17 }
 0x822   : > { %5052 = vrot.lane.b32.xlu1 %v5011_v33, %s6505_s17  ;;  %v4969_v47 = vpop.permute.xlu1 %4968 }
 0x823   : > { %v5014_v0 = vmul.f32 %v4969_v47, %v4822_v11  ;;  %v4964_v49 = vpop.permute.xlu0 %4963  ;;  %v4806_v11 = vld [vmem:[#allocation4 + $0x60] sm:$0xff] }
 0x824   : > { %v5013_v4 = vmul.f32 %v4964_v49, %v4821_v51  ;;  %v4805_v51 = vld [vmem:[#allocation4 + $0x58] sm:$0xff] }
 0x825   : > { %5058 = vrot.lane.b32.xlu0 %v5014_v0, %s6505_s17 }
 0x826   : > { %5056 = vrot.lane.b32.xlu1 %v5013_v4, %s6505_s17  ;;  %v4979_v35 = vpop.permute.xlu1 %4978 }
 0x827   : > { %v5016_v15 = vmul.f32 %v4979_v35, %v4824_v31  ;;  %v4974_v38 = vpop.permute.xlu0 %4973  ;;  %v4808_v31 = vld [vmem:[#allocation4 + $0x70] sm:$0xff]  ;;  %v4807_v35 = vld [vmem:[#allocation4 + $0x68] sm:$0xff] }
 0x828   : > { %v5015_v13 = vmul.f32 %v4974_v38, %v4823_v50 }
 0x829   : > { %5062 = vrot.lane.b32.xlu0 %v5016_v15, %s6505_s17 }
 0x82a   : > { %5060 = vrot.lane.b32.xlu1 %v5015_v13, %s6505_s17  ;;  %v4874_v30 = vpop.permute.xlu1 %4873 }
 0x82b   : > { %v4984_v41 = vpop.permute.xlu0 %4983  ;;  %v4995_v33 = vmul.f32 %v4874_v30, %v4803_v1  ;;  %v4809_v30 = vld [vmem:[#allocation4 + $0x78] sm:$0xff] }
 0x82c   : > { %v5017_v25 = vmul.f32 %v4984_v41, %v4825_v55 }
 0x82e   : > { %5064 = vrot.lane.b32.xlu1 %v5017_v25, %s6505_s17  ;;  %v8744_v62 = vpop.permute.xlu1 %4883 }
 0x82f   : > { %v4879_v6 = vpop.permute.xlu0 %4878  ;;  %v4997_v4 = vmul.f32 %v8744_v62, %v4805_v51 }
 0x830   : > { %v4996_v10 = vmul.f32 %v4879_v6, %v4804_v20 }
 0x832   : > { %v8746_v26 = vpop.permute.xlu1 %4893 }
 0x833   : > { %v4889_v45 = vpop.permute.xlu0 %4888  ;;  %v4999_v41 = vmul.f32 %v8746_v26, %v4807_v35 }
 0x834   : > { %v4998_v49 = vmul.f32 %v4889_v45, %v4806_v11 }
 0x836   : > { %v8751_v7 = vpop.permute.xlu1 %4903 }
 0x837   : > { %v8748_v12 = vpop.permute.xlu0 %4898  ;;  %v5001_v53 = vmul.f32 %v8751_v7, %v4809_v30 }
 0x838   : > { %v5000_v55 = vmul.f32 %v8748_v12, %v4808_v31 }
 0x87f   : > { %v5035_v57 = vpop.permute.xlu0 %5034 }
 0x880   : > { %v5083_v28 = vsel %vm5082_vm4, %v4986_v48, %v5035_v57 }
 0x881   : > { %5099 = vst [vmem:[%s6747_s29] sm:$0xff] %v5083_v28 }
 0x883   : > { %v5039_v52 = vpop.permute.xlu0 %5038 }
 0x884   : > { %v5037_v63 = vpop.permute.xlu1 %5036  ;;  %v5085_v43 = vsel %vm5082_vm4, %v4988_v42, %v5039_v52 }
 0x885   : > { %v5084_v16 = vsel %vm5082_vm4, %v4987_v23, %v5037_v63  ;;  %5101 = vst [vmem:[%s6747_s29 + $0x10] sm:$0xff] %v5085_v43 }
 0x886   : > { %5100 = vst [vmem:[%s6747_s29 + $0x8] sm:$0xff] %v5084_v16 }
 0x887   : > { %v5043_v18 = vpop.permute.xlu0 %5042 }
 0x888   : > { %v5041_v37 = vpop.permute.xlu1 %5040  ;;  %v5087_v2 = vsel %vm5082_vm4, %v4990_v56, %v5043_v18 }
 0x889   : > { %v5086_v29 = vsel %vm5082_vm4, %v4989_v19, %v5041_v37  ;;  %5103 = vst [vmem:[%s6747_s29 + $0x20] sm:$0xff] %v5087_v2 }
 0x88a   : > { %5102 = vst [vmem:[%s6747_s29 + $0x18] sm:$0xff] %v5086_v29 }
 0x88b   : > { %v5047_v17 = vpop.permute.xlu0 %5046 }
 0x88c   : > { %v5045_v46 = vpop.permute.xlu1 %5044  ;;  %v5089_v59 = vsel %vm5082_vm4, %v4992_v60, %v5047_v17 }
 0x88d   : > { %v5088_v44 = vsel %vm5082_vm4, %v4991_v36, %v5045_v46  ;;  %5105 = vst [vmem:[%s6747_s29 + $0x30] sm:$0xff] %v5089_v59 }
 0x88e   : > { %5104 = vst [vmem:[%s6747_s29 + $0x28] sm:$0xff] %v5088_v44 }
 0x88f   : > { %v5051_v39 = vpop.permute.xlu0 %5050 }
 0x890   : > { %v5049_v32 = vpop.permute.xlu1 %5048  ;;  %v5091_v21 = vsel %vm5082_vm4, %v4994_v27, %v5051_v39 }
 0x891   : > { %v5090_v9 = vsel %vm5082_vm4, %v4993_v5, %v5049_v32  ;;  %5107 = vst [vmem:[%s6747_s29 + $0x40] sm:$0xff] %v5091_v21 }
 0x892   : > { %5106 = vst [vmem:[%s6747_s29 + $0x38] sm:$0xff] %v5090_v9 }
 0x893   : > { %v5055_v22 = vpop.permute.xlu0 %5054 }
 0x894   : > { %v5053_v3 = vpop.permute.xlu1 %5052  ;;  %v5093_v47 = vsel %vm5082_vm4, %v4996_v10, %v5055_v22 }
 0x895   : > { %v5092_v0 = vsel %vm5082_vm4, %v4995_v33, %v5053_v3  ;;  %5109 = vst [vmem:[%s6747_s29 + $0x50] sm:$0xff] %v5093_v47 }
 0x896   : > { %5108 = vst [vmem:[%s6747_s29 + $0x48] sm:$0xff] %v5092_v0 }
 0x897   : > { %v5059_v50 = vpop.permute.xlu0 %5058 }
 0x898   : > { %v5057_v15 = vpop.permute.xlu1 %5056  ;;  %v5095_v38 = vsel %vm5082_vm4, %v4998_v49, %v5059_v50 }
 0x899   : > { %v5094_v13 = vsel %vm5082_vm4, %v4997_v4, %v5057_v15  ;;  %5111 = vst [vmem:[%s6747_s29 + $0x60] sm:$0xff] %v5095_v38 }
 0x89a   : > { %5110 = vst [vmem:[%s6747_s29 + $0x58] sm:$0xff] %v5094_v13 }
 0x89b   : > { %v5063_v25 = vpop.permute.xlu0 %5062 }
 0x89c   : > { %v5061_v6 = vpop.permute.xlu1 %5060  ;;  %v5097_v62 = vsel %vm5082_vm4, %v5000_v55, %v5063_v25 }
 0x89d   : > { %v5096_v45 = vsel %vm5082_vm4, %v4999_v41, %v5061_v6  ;;  %5113 = vst [vmem:[%s6747_s29 + $0x70] sm:$0xff] %v5097_v62 }
 0x89e   : > { %5112 = vst [vmem:[%s6747_s29 + $0x68] sm:$0xff] %v5096_v45 }
 0x8a0   : > { %v5065_v48 = vpop.permute.xlu1 %5064 }
 0x8a1   : > { %v5098_v61 = vsel %vm5082_vm4, %v5001_v53, %v5065_v48 }
 0x8a2   : > { %5114 = vst [vmem:[%s6747_s29 + $0x78] sm:$0xff] %v5098_v61 }
 0x8a3 PF: > { %s9178_s5 = sld [smem:[#allocation11_spill]]  ;;  %s9179_s8 = sld [smem:[#allocation12_spill]] }
 0x8a4   : > { %s5131_s9 = sshll.u32 %s6747_s29, 4  ;;  %s9180_s25 = sld [smem:[#allocation87_spill]]  ;;  %s8800_s9 = int_to_ptr.vmem [resolvable:$true] %s5131_s9 }
 0x8a5   : > { %s8809_s30 = scalar_lea.sflag [#allocation9], %s707_s7  ;;  %s6372_s17 = scalar_lea.vmem %s8800_s9, 2048 }
 0x8a6   : > { %p6373_p11 = scmp.ne.s32.totalorder %s8800_s9, %s6372_s17  ;;  %s6506_s29 = smov [#allocation8]  }
 0x8a8   : > { %p6374_p12 = pnand %p6373_p11, %p6638_p13 }
 0x8a9   : > { %s5418_s18 = sshll.u32 %s9178_s5, 4  ;;  %s5419_s6 = sshll.u32 %s9179_s8, 5 }
 0x8aa   : > { %s5128_s10 = sadd.s32 %s5419_s6, %s5418_s18  ;;  %p6375_p0 = pneg %p6374_p12 }
 0x8ab   : > { %s5420_s4 = sshll.u32 %s5128_s10, 7  ;;  %s6376_s5 = sshll.u32 %s6506_s29, 4  ;;  %s6377_s5 = int_to_ptr.vmem [resolvable:$false] %s6376_s5 }
 0x8ac   : > { %s8805_s13 = scalar_lea.hbm %s9180_s25, %s5420_s4  ;;  %s6378_s8 = scalar_lea.vmem %s6377_s5, 4096 }
 0x8ad   : > { %p6379_p2 = scmp.lt.s32.totalorder %s8800_s9, %s6377_s5  ;;  %p6380_p4 = scmp.lt.s32.totalorder %s6378_s8, %s6372_s17 }
 0x8af   : > { %p6381_p1 = por %p6380_p4, %p6379_p2 }
 0x8b1   : > { %p6382_p5 = pnand %p6381_p1, %p6375_p0 }
 0x8b3   : > { %6385 = shalt.err (!%p6382_p5)
}
 0x8b4   : > { %s6386_s7 = scalar_lea.hbm %s8805_s13, 2048  ;;  %s6390_s10 = scalar_lea.hbm %s9180_s25, 8192 }
 0x8b5   : > { %p6387_p6 = scmp.ne.s32.totalorder %s8805_s13, %s6386_s7  ;;  %p6391_p9 = scmp.lt.u32.totalorder %s8805_s13, %s9180_s25 }
 0x8b6   : > { %p6392_p10 = scmp.lt.u32.totalorder %s6390_s10, %s6386_s7  ;;  %p6394_p12 = scmp.lt.u32.totalorder %s6386_s7, %s8805_s13 }
 0x8b7   : > { %p6388_p7 = pnand %p6387_p6, %p6638_p13 }
 0x8b8   : > { %p6393_p11 = por %p6392_p10, %p6391_p9 }
 0x8b9   : > { %p6389_p8 = pneg %p6388_p7 }
 0x8ba   : > { %p6395_p0 = por %p6394_p12, %p6393_p11 }
 0x8bc   : > { %p6396_p2 = pnand %p6395_p0, %p6389_p8 }
 0x8be   : > { %6399 = shalt.err (!%p6396_p2)
}
 0x8bf   : > { %s6507_s24 = smov 128   ;;  %s6508_s17 = smov 8  }
 0x8c0   : > { %5839 = dma.vmem_to_hbm [thread:$0]  (%p6638_p13), %s8800_s9, 2048, %s8805_s13, %s8809_s30, %s6507_s24, %s6507_s24, %s6508_s17  }
 0x8c1 PF: > { %p5845_p4 = scmp.ge.s32.totalorder %s6498_s23, 2  ;;  %s5146_s29 = sand.u32 1, %s6454_s12  }
 0x8c2   : > { %s5147_s5 = scalar_lea.sflag [#allocation9], %s5146_s29 }
 0x8c3   : > { %p5842_p1 = pnand %p5845_p4, %p6652_p3 }
 0x8c5   : > { %6449 = dma.done.wait (!%p5842_p1), %s5147_s5, 2048  }
 0x8c6   : > { %6451 = vsyncadd (!%p5842_p1), %s5147_s5, 4294965248  ;;  %s16_s23 = sadd.s32 1, %s6498_s23   ;;  %s9181_s17 = sld [smem:[#allocation13_spill]] }
 0x8c7   : > { %p13_p5 = scmp.ge.s32.totalorder %s16_s23, 10   ;;  %s9182_s3 = sld [smem:[#allocation14_spill]] }
 0x8c8   : > { %s9183_s12 = smov %s6466_s15  ;;  %s9184_s13 = smov %s6462_s14 }
 0x8c9   : > { %s9185_s14 = smov %s6646_s20  ;;  %s9186_s15 = smov %s6470_s16 }
 0x8ca   : > { %s9187_s16 = smov %s6643_s19  ;;  %s9188_s18 = smov %s6490_s21 }
 0x8cb   : > { %s9189_s19 = smov %s6494_s22  ;;  %s9190_s20 = smov %s9194_s26 }
 0x8cc   : > { %s9191_s21 = smov %s9198_s27  ;;  %15 = sbr.rel (!%p13_p5) target bundleno = 9 (0x9), region = 227 }
 0x8cd   : > { %s9192_s22 = smov %s9182_s3 }
 0x8d3   :  { %5152 = vsyncpa [#allocation9], 1 }
 0x8d4   :  { %5154 = vsyncpa [#allocation9 + $0x1], 1 }

</bundles_post_ra>
